<compile_context>
chip_gen: v5e
topology: v5e:2x2
jax: 0.10.0
libtpu: 0.0.40
codegen_flags: <defaults>
</compile_context>

<pallas_src>
import math
from functools import partial

import jax
import jax.numpy as jnp
from jax import lax
from jax.experimental import pallas as pl
from jax.experimental.pallas import tpu as pltpu

LN_EPS = 1e-5          # torch.nn.LayerNorm default
_NEG_INF = -1e9        # additive mask value for padded keys


def _layernorm(v, w, b):
    # LayerNorm subclass in the reference casts to fp32 internally.
    v = v.astype(jnp.float32)
    m = jnp.mean(v, axis=-1, keepdims=True)
    c = v - m
    var = jnp.mean(c * c, axis=-1, keepdims=True)
    return (c * lax.rsqrt(var + LN_EPS)) * w + b


def _transformer_kernel(n_head, l_real, use_mask, *refs):
    if use_mask:
        (x_ref, mask_ref, ln1w_ref, ln1b_ref, wqkv_ref, bqkv_ref,
         ow_ref, ob_ref, ln2w_ref, ln2b_ref, fcw_ref, fcb_ref,
         pjw_ref, pjb_ref, o_ref, ctx_ref) = refs
    else:
        (x_ref, ln1w_ref, ln1b_ref, wqkv_ref, bqkv_ref,
         ow_ref, ob_ref, ln2w_ref, ln2b_ref, fcw_ref, fcb_ref,
         pjw_ref, pjb_ref, o_ref, ctx_ref) = refs
        mask_ref = None

    layer = pl.program_id(1)

    # The output block (same index across the layer axis) is the resident carry.
    @pl.when(layer == 0)
    def _():
        o_ref[...] = x_ref[...]

    x = o_ref[...].astype(jnp.float32)               # (Lp, E) current activations
    L, E = x.shape
    dh = E // n_head

    # Additive attention bias: optional user mask + in-kernel pad-key mask.
    bias = mask_ref[...] if use_mask else None
    if l_real != L:
        kidx = lax.broadcasted_iota(jnp.int32, (1, L), 1)
        pad = jnp.where(kidx >= l_real, _NEG_INF, 0.0).astype(jnp.float32)
        bias = pad if bias is None else bias + pad

    # ---- x + attn(ln_1(x)) ----
    h = _layernorm(x, ln1w_ref[...], ln1b_ref[...])
    # Fused QKV projection: weight pre-transposed (E, 3E) bf16, 1/sqrt(dh) folded into Q.
    qkv = jnp.dot(h.astype(jnp.bfloat16), wqkv_ref[...],
                  preferred_element_type=jnp.float32) + bqkv_ref[...]
    qb = qkv[:, 0 * E:1 * E].astype(jnp.bfloat16)
    kb = qkv[:, 1 * E:2 * E].astype(jnp.bfloat16)
    vb = qkv[:, 2 * E:3 * E].astype(jnp.bfloat16)

    # Per-head softmax(QK^T)V, written into a bf16 VMEM scratch at column hi*dh;
    # the output projection is then a single full-K matmul.
    for hi in range(n_head):                         # static, unrolled over heads
        sl = slice(hi * dh, (hi + 1) * dh)
        s = lax.dot_general(qb[:, sl], kb[:, sl],
                            (((1,), (1,)), ((), ())),
                            preferred_element_type=jnp.float32)   # (L, L)
        if bias is not None:
            s = s + bias
        s = s - jnp.max(s, axis=-1, keepdims=True)
        e = jnp.exp(s)
        p = e * pl.reciprocal(jnp.sum(e, axis=-1, keepdims=True), approx=True)
        hv = jnp.dot(p.astype(jnp.bfloat16), vb[:, sl],
                     preferred_element_type=jnp.float32)          # (L, dh)
        ctx_ref[:, sl] = hv.astype(jnp.bfloat16)

    attn = jnp.dot(ctx_ref[...], ow_ref[...],
                   preferred_element_type=jnp.float32) + ob_ref[...]
    x1 = x + attn

    # ---- x + mlp(ln_2(x)) ----
    h2 = _layernorm(x1, ln2w_ref[...], ln2b_ref[...])
    u = jnp.dot(h2.astype(jnp.bfloat16), fcw_ref[...],
                preferred_element_type=jnp.float32) + fcb_ref[...]
    u = u * jax.nn.sigmoid(1.702 * u)                # QuickGELU (fp32)
    m = jnp.dot(u.astype(jnp.bfloat16), pjw_ref[...],
                preferred_element_type=jnp.float32) + pjb_ref[...]

    o_ref[...] = (x1 + m).astype(o_ref.dtype)


def _run_transformer(x_ble, mask, sp, n_head, l_real):
    """x_ble: (B, Lp, E); sp: stacked per-layer params (leading `layers` dim)."""
    B, L, E = x_ble.shape
    layers = sp["wqkv"].shape[0]
    use_mask = mask is not None

    xspec = pl.BlockSpec((None, L, E), lambda b, l: (b, 0, 0))

    def wspec(r, c):  # per-layer weight block, indexed by the layer grid axis
        return pl.BlockSpec((None, r, c), lambda b, l: (l, 0, 0))

    in_specs = [xspec]
    inputs = [x_ble]
    if use_mask:
        in_specs.append(pl.BlockSpec((L, L), lambda b, l: (0, 0)))
        inputs.append(mask)
    in_specs += [
        wspec(1, E), wspec(1, E),              # ln1 weight / bias
        wspec(E, 3 * E), wspec(1, 3 * E),      # fused QKV W^T (bf16), bias (fp32)
        wspec(E, E), wspec(1, E),              # out_proj W^T (bf16), bias
        wspec(1, E), wspec(1, E),              # ln2 weight / bias
        wspec(E, 4 * E), wspec(1, 4 * E),      # c_fc W^T (bf16), bias
        wspec(4 * E, E), wspec(1, E),          # c_proj W^T (bf16), bias
    ]
    inputs += [sp["ln1_w"], sp["ln1_b"], sp["wqkv"], sp["bqkv"],
               sp["ow"], sp["ob"], sp["ln2_w"], sp["ln2_b"],
               sp["fc_w"], sp["fc_b"], sp["pj_w"], sp["pj_b"]]

    return pl.pallas_call(
        partial(_transformer_kernel, n_head, l_real, use_mask),
        out_shape=jax.ShapeDtypeStruct((B, L, E), x_ble.dtype),
        grid=(B, layers),
        in_specs=in_specs,
        out_specs=xspec,
        scratch_shapes=[pltpu.VMEM((L, E), jnp.bfloat16)],   # concat(heads) context
        compiler_params=pltpu.CompilerParams(
            dimension_semantics=("parallel", "arbitrary"),
            vmem_limit_bytes=48 * 1024 * 1024,
        ),
    )(*inputs)


# ----------------------------- host-side weight prep (run ONCE) -----------------------------

def prepare_stacked_params(params, n_head, weight_dtype=jnp.bfloat16):
    """PyTorch-layout per-layer params -> stacked kernel layout (layers leading dim)."""
    per_layer = []
    for p in params:
        E = p["ln1_w"].shape[0]
        dh = E // n_head
        scale = 1.0 / math.sqrt(dh)
        wq, wk, wv = jnp.split(p["in_proj_w"], 3, axis=0)
        bq, bk, bv = jnp.split(p["in_proj_b"], 3)
        wqkv = jnp.concatenate([wq * scale, wk, wv], axis=0).T      # (E, 3E)
        bqkv = jnp.concatenate([bq * scale, bk, bv]).reshape(1, 3 * E)
        per_layer.append(dict(
            ln1_w=p["ln1_w"].reshape(1, E).astype(jnp.float32),
            ln1_b=p["ln1_b"].reshape(1, E).astype(jnp.float32),
            wqkv=wqkv.astype(weight_dtype),
            bqkv=bqkv.astype(jnp.float32),
            ow=p["out_w"].T.astype(weight_dtype),                   # (E, E)
            ob=p["out_b"].reshape(1, E).astype(jnp.float32),
            ln2_w=p["ln2_w"].reshape(1, E).astype(jnp.float32),
            ln2_b=p["ln2_b"].reshape(1, E).astype(jnp.float32),
            fc_w=p["fc_w"].T.astype(weight_dtype),                  # (E, 4E)
            fc_b=p["fc_b"].reshape(1, 4 * E).astype(jnp.float32),
            pj_w=p["proj_w"].T.astype(weight_dtype),                # (4E, E)
            pj_b=p["proj_b"].reshape(1, E).astype(jnp.float32),
        ))
    return {k: jnp.stack([lp[k] for lp in per_layer]) for k in per_layer[0]}


def transformer_forward(x_lbe, stacked_params, n_head, attn_mask=None):
    """x_lbe: (L, B, E) float32, same layout as the PyTorch module."""
    L, B, E = x_lbe.shape
    Lp = ((L + 127) // 128) * 128      # lane-dense score tiles / dense stores

    mask = None
    if attn_mask is not None:
        mask = jnp.zeros((Lp, Lp), jnp.float32)
        mask = mask.at[:L, :L].set(attn_mask.astype(jnp.float32))
        # pad-key masking is generated in-kernel (broadcasted_iota); pad rows are discarded.

    x = jnp.transpose(x_lbe, (1, 0, 2))              # (B, L, E) for the kernel
    if Lp != L:
        x = jnp.pad(x, ((0, 0), (0, Lp - L), (0, 0)))

    x = _run_transformer(x, mask, stacked_params, n_head, L)

    x = x[:, :L, :]
    return jnp.transpose(x, (1, 0, 2))


# ----------------------------- parameter init (PyTorch layout) -----------------------------

def init_params(key, width, layers):
    E = width
    params = []
    for layer in range(layers):
        ks = jax.random.split(jax.random.fold_in(key, layer), 8)
        nrm = lambda k, shp: 0.02 * jax.random.normal(k, shp, jnp.float32)
        params.append(dict(
            ln1_w=jnp.ones((E,), jnp.float32),
            ln1_b=jnp.zeros((E,), jnp.float32),
            in_proj_w=nrm(ks[0], (3 * E, E)),        # torch MHA in_proj_weight
            in_proj_b=nrm(ks[1], (3 * E,)),
            out_w=nrm(ks[2], (E, E)),
            out_b=nrm(ks[3], (E,)),
            ln2_w=jnp.ones((E,), jnp.float32),
            ln2_b=jnp.zeros((E,), jnp.float32),
            fc_w=nrm(ks[4], (4 * E, E)),
            fc_b=nrm(ks[5], (4 * E,)),
            proj_w=nrm(ks[6], (E, 4 * E)),
            proj_b=nrm(ks[7], (E,)),
        ))
    return params


# ----------------------------- pure-JAX reference -----------------------------

def _ref_block(x, mask, p, n_head):
    L, B, E = x.shape
    dh = E // n_head

    def ln(v, w, b):
        m = jnp.mean(v, -1, keepdims=True)
        c = v - m
        var = jnp.mean(c * c, -1, keepdims=True)
        return c * lax.rsqrt(var + LN_EPS) * w + b

    h = ln(x, p["ln1_w"], p["ln1_b"])
    wq, wk, wv = (p["in_proj_w"][:E], p["in_proj_w"][E:2 * E], p["in_proj_w"][2 * E:])
    bq, bk, bv = (p["in_proj_b"][:E], p["in_proj_b"][E:2 * E], p["in_proj_b"][2 * E:])
    q = h @ wq.T + bq
    k = h @ wk.T + bk
    v = h @ wv.T + bv
    qh = q.reshape(L, B, n_head, dh).transpose(1, 2, 0, 3)
    kh = k.reshape(L, B, n_head, dh).transpose(1, 2, 0, 3)
    vh = v.reshape(L, B, n_head, dh).transpose(1, 2, 0, 3)
    s = (qh / math.sqrt(dh)) @ kh.transpose(0, 1, 3, 2)
    if mask is not None:
        s = s + mask
    pattn = jax.nn.softmax(s, axis=-1)
    o = (pattn @ vh).transpose(2, 0, 1, 3).reshape(L, B, E)
    attn = o @ p["out_w"].T + p["out_b"]
    x1 = x + attn
    h2 = ln(x1, p["ln2_w"], p["ln2_b"])
    u = h2 @ p["fc_w"].T + p["fc_b"]
    u = u * jax.nn.sigmoid(1.702 * u)
    return x1 + (u @ p["proj_w"].T + p["proj_b"])


def reference_forward(x, params, n_head, attn_mask=None):
    mask = None if attn_mask is None else attn_mask.astype(jnp.float32)
    for p in params:
        x = _ref_block(x, mask, p, n_head)
    return x


# ----------------------------- main -----------------------------

if __name__ == "__main__":
    key = jax.random.PRNGKey(0)
    L, B, width, heads, layers = 8, 2, 32, 4, 2   # small, consistent with the module

    x = jax.random.normal(jax.random.fold_in(key, 100), (L, B, width), jnp.float32)
    params = init_params(key, width, layers)
    stacked = prepare_stacked_params(params, heads)   # weight prep hoisted: done once

    fwd = jax.jit(transformer_forward, static_argnames=("n_head",))

    # no-mask path (vision-style)
    out = jax.block_until_ready(fwd(x, stacked, n_head=heads, attn_mask=None))
    ref = reference_forward(x, params, heads, attn_mask=None)
    assert out.shape == (L, B, width)
    assert jnp.allclose(out, ref, rtol=5e-2, atol=5e-2), "Pallas output mismatch (no mask)"

    # causal-mask path (text-style)
    causal = jnp.where(jnp.arange(L)[None, :] > jnp.arange(L)[:, None], _NEG_INF, 0.0)
    out_m = jax.block_until_ready(fwd(x, stacked, n_head=heads, attn_mask=causal))
    ref_m = reference_forward(x, params, heads, attn_mask=causal)
    assert jnp.allclose(out_m, ref_m, rtol=5e-2, atol=5e-2), "Pallas output mismatch (causal mask)"

    print("KERNEL_OK")
</pallas_src>

<mosaic_0001>
module attributes {stable_mosaic.version = 11 : i64} {
  func.func @_transformer_kernel(%arg0: i32, %arg1: i32, %arg2: memref<1x128x32xf32, #tpu.memory_space<vmem>>, %arg3: memref<1x1x32xf32, #tpu.memory_space<vmem>>, %arg4: memref<1x1x32xf32, #tpu.memory_space<vmem>>, %arg5: memref<1x32x96xbf16, #tpu.memory_space<vmem>>, %arg6: memref<1x1x96xf32, #tpu.memory_space<vmem>>, %arg7: memref<1x32x32xbf16, #tpu.memory_space<vmem>>, %arg8: memref<1x1x32xf32, #tpu.memory_space<vmem>>, %arg9: memref<1x1x32xf32, #tpu.memory_space<vmem>>, %arg10: memref<1x1x32xf32, #tpu.memory_space<vmem>>, %arg11: memref<1x32x128xbf16, #tpu.memory_space<vmem>>, %arg12: memref<1x1x128xf32, #tpu.memory_space<vmem>>, %arg13: memref<1x128x32xbf16, #tpu.memory_space<vmem>>, %arg14: memref<1x1x32xf32, #tpu.memory_space<vmem>>, %arg15: memref<1x128x32xf32, #tpu.memory_space<vmem>>, %arg16: memref<128x32xbf16, #tpu.memory_space<vmem>>) attributes {dimension_semantics = [#tpu.dimension_semantics<parallel>, #tpu.dimension_semantics<arbitrary>], iteration_bounds = array<i64: 2, 2>, scalar_prefetch = 0 : i64, scratch_operands = 1 : i64, tpu.core_type = #tpu.core_type<tc>, window_params = [{transform_indices = @transform_0, window_bounds = array<i64: 1, 128, 32>}, {transform_indices = @transform_1, window_bounds = array<i64: 1, 1, 32>}, {transform_indices = @transform_2, window_bounds = array<i64: 1, 1, 32>}, {transform_indices = @transform_3, window_bounds = array<i64: 1, 32, 96>}, {transform_indices = @transform_4, window_bounds = array<i64: 1, 1, 96>}, {transform_indices = @transform_5, window_bounds = array<i64: 1, 32, 32>}, {transform_indices = @transform_6, window_bounds = array<i64: 1, 1, 32>}, {transform_indices = @transform_7, window_bounds = array<i64: 1, 1, 32>}, {transform_indices = @transform_8, window_bounds = array<i64: 1, 1, 32>}, {transform_indices = @transform_9, window_bounds = array<i64: 1, 32, 128>}, {transform_indices = @transform_10, window_bounds = array<i64: 1, 1, 128>}, {transform_indices = @transform_11, window_bounds = array<i64: 1, 128, 32>}, {transform_indices = @transform_12, window_bounds = array<i64: 1, 1, 32>}, {transform_indices = @transform_13, window_bounds = array<i64: 1, 128, 32>}]} {
    %c0_i32 = arith.constant 0 : i32
    %0 = arith.cmpi eq, %arg1, %c0_i32 : i32
    %1 = arith.extui %0 : i1 to i32
    %c0_i32_0 = arith.constant 0 : i32
    %2 = arith.cmpi ne, %1, %c0_i32_0 : i32
    scf.if %2 {
      %c0_82 = arith.constant 0 : index
      %c0_83 = arith.constant 0 : index
      %c0_84 = arith.constant 0 : index
      %190 = vector.load %arg2[%c0_82, %c0_83, %c0_84] : memref<1x128x32xf32, #tpu.memory_space<vmem>>, vector<1x128x32xf32>
      %191 = vector.shape_cast %190 : vector<1x128x32xf32> to vector<128x32xf32>
      %c0_85 = arith.constant 0 : index
      %c0_86 = arith.constant 0 : index
      %c0_87 = arith.constant 0 : index
      %192 = vector.load %arg15[%c0_85, %c0_86, %c0_87] : memref<1x128x32xf32, #tpu.memory_space<vmem>>, vector<1x128x32xf32>
      %193 = vector.shape_cast %192 : vector<1x128x32xf32> to vector<128x32xf32>
      %194 = vector.shape_cast %191 : vector<128x32xf32> to vector<1x128x32xf32>
      tpu.vector_store %arg15[%c0_85, %c0_86, %c0_87], %194 {strides = array<i32>} : memref<1x128x32xf32, #tpu.memory_space<vmem>>, vector<1x128x32xf32>,
    } else {
    }
    %c0 = arith.constant 0 : index
    %c0_1 = arith.constant 0 : index
    %c0_2 = arith.constant 0 : index
    %3 = vector.load %arg15[%c0, %c0_1, %c0_2] : memref<1x128x32xf32, #tpu.memory_space<vmem>>, vector<1x128x32xf32>
    %4 = vector.shape_cast %3 : vector<1x128x32xf32> to vector<128x32xf32>
    %5 = tpu.iota {dimensions = array<i32: 1>} : vector<1x128xi32>
    %c8_i32 = arith.constant 8 : i32
    %6 = vector.broadcast %c8_i32 : i32 to vector<1x128xi32>
    %7 = arith.cmpi sge, %5, %6 : vector<1x128xi32>
    %cst = arith.constant -1.000000e+09 : f32
    %cst_3 = arith.constant 0.000000e+00 : f32
    %8 = vector.broadcast %cst : f32 to vector<1x128xf32>
    %9 = vector.broadcast %cst_3 : f32 to vector<1x128xf32>
    %10 = arith.select %7, %8, %9 : vector<1x128xi1>, vector<1x128xf32>
    %c0_4 = arith.constant 0 : index
    %c0_5 = arith.constant 0 : index
    %c0_6 = arith.constant 0 : index
    %11 = vector.load %arg3[%c0_4, %c0_5, %c0_6] : memref<1x1x32xf32, #tpu.memory_space<vmem>>, vector<1x1x32xf32>
    %12 = vector.shape_cast %11 : vector<1x1x32xf32> to vector<1x32xf32>
    %c0_7 = arith.constant 0 : index
    %c0_8 = arith.constant 0 : index
    %c0_9 = arith.constant 0 : index
    %13 = vector.load %arg4[%c0_7, %c0_8, %c0_9] : memref<1x1x32xf32, #tpu.memory_space<vmem>>, vector<1x1x32xf32>
    %14 = vector.shape_cast %13 : vector<1x1x32xf32> to vector<1x32xf32>
    %cst_10 = arith.constant dense<0.000000e+00> : vector<128xf32>
    %15 = vector.multi_reduction <add>, %4, %cst_10 [1] : vector<128x32xf32> to vector<128xf32>
    %16 = vector.shape_cast %15 : vector<128xf32> to vector<128x1xf32>
    %cst_11 = arith.constant 3.200000e+01 : f32
    %17 = vector.broadcast %cst_11 : f32 to vector<128x1xf32>
    %18 = arith.divf %16, %17 : vector<128x1xf32>
    %19 = vector.broadcast %18 : vector<128x1xf32> to vector<128x32xf32>
    %20 = arith.subf %4, %19 : vector<128x32xf32>
    %21 = arith.mulf %20, %20 : vector<128x32xf32>
    %cst_12 = arith.constant dense<0.000000e+00> : vector<128xf32>
    %22 = vector.multi_reduction <add>, %21, %cst_12 [1] : vector<128x32xf32> to vector<128xf32>
    %23 = vector.shape_cast %22 : vector<128xf32> to vector<128x1xf32>
    %cst_13 = arith.constant 3.200000e+01 : f32
    %24 = vector.broadcast %cst_13 : f32 to vector<128x1xf32>
    %25 = arith.divf %23, %24 : vector<128x1xf32>
    %cst_14 = arith.constant 9.99999974E-6 : f32
    %26 = vector.broadcast %cst_14 : f32 to vector<128x1xf32>
    %27 = arith.addf %25, %26 : vector<128x1xf32>
    %28 = math.rsqrt %27 : vector<128x1xf32>
    %29 = vector.broadcast %28 : vector<128x1xf32> to vector<128x32xf32>
    %30 = arith.mulf %20, %29 : vector<128x32xf32>
    %31 = vector.broadcast %12 : vector<1x32xf32> to vector<128x32xf32>
    %32 = arith.mulf %30, %31 : vector<128x32xf32>
    %33 = vector.broadcast %14 : vector<1x32xf32> to vector<128x32xf32>
    %34 = arith.addf %32, %33 : vector<128x32xf32>
    %35 = arith.truncf %34 : vector<128x32xf32> to vector<128x32xbf16>
    %c0_15 = arith.constant 0 : index
    %c0_16 = arith.constant 0 : index
    %c0_17 = arith.constant 0 : index
    %36 = vector.load %arg5[%c0_15, %c0_16, %c0_17] : memref<1x32x96xbf16, #tpu.memory_space<vmem>>, vector<1x32x96xbf16>
    %37 = vector.shape_cast %36 : vector<1x32x96xbf16> to vector<32x96xbf16>
    %cst_18 = arith.constant dense<0.000000e+00> : vector<128x96xf32>
    %38 = tpu.matmul %35, %37, %cst_18 {dimension_numbers = #tpu.dot_dimension_numbers<[1], [0], [0], [1], [0, 0, 1, 1], [], []>} : vector<128x32xbf16>, vector<32x96xbf16>, vector<128x96xf32> -> vector<128x96xf32>
    %c0_19 = arith.constant 0 : index
    %c0_20 = arith.constant 0 : index
    %c0_21 = arith.constant 0 : index
    %39 = vector.load %arg6[%c0_19, %c0_20, %c0_21] : memref<1x1x96xf32, #tpu.memory_space<vmem>>, vector<1x1x96xf32>
    %40 = vector.shape_cast %39 : vector<1x1x96xf32> to vector<1x96xf32>
    %41 = vector.broadcast %40 : vector<1x96xf32> to vector<128x96xf32>
    %42 = arith.addf %38, %41 : vector<128x96xf32>
    %43 = vector.extract_strided_slice %42 {offsets = [0, 0], sizes = [128, 32], strides = [1, 1]} : vector<128x96xf32> to vector<128x32xf32>
    %44 = arith.truncf %43 : vector<128x32xf32> to vector<128x32xbf16>
    %45 = vector.extract_strided_slice %42 {offsets = [0, 32], sizes = [128, 32], strides = [1, 1]} : vector<128x96xf32> to vector<128x32xf32>
    %46 = arith.truncf %45 : vector<128x32xf32> to vector<128x32xbf16>
    %47 = vector.extract_strided_slice %42 {offsets = [0, 64], sizes = [128, 32], strides = [1, 1]} : vector<128x96xf32> to vector<128x32xf32>
    %48 = arith.truncf %47 : vector<128x32xf32> to vector<128x32xbf16>
    %49 = vector.extract_strided_slice %44 {offsets = [0, 0], sizes = [128, 8], strides = [1, 1]} : vector<128x32xbf16> to vector<128x8xbf16>
    %50 = vector.extract_strided_slice %46 {offsets = [0, 0], sizes = [128, 8], strides = [1, 1]} : vector<128x32xbf16> to vector<128x8xbf16>
    %cst_22 = arith.constant dense<0.000000e+00> : vector<128x128xf32>
    %51 = tpu.matmul %49, %50, %cst_22 {dimension_numbers = #tpu.dot_dimension_numbers<[1], [1], [0], [0], [0, 0, 1, 0], [], []>} : vector<128x8xbf16>, vector<128x8xbf16>, vector<128x128xf32> -> vector<128x128xf32>
    %52 = vector.broadcast %10 : vector<1x128xf32> to vector<128x128xf32>
    %53 = arith.addf %51, %52 : vector<128x128xf32>
    %cst_23 = arith.constant dense<0xFF800000> : vector<128xf32>
    %54 = vector.multi_reduction <maximumf>, %53, %cst_23 [1] : vector<128x128xf32> to vector<128xf32>
    %55 = vector.shape_cast %54 : vector<128xf32> to vector<128x1xf32>
    %56 = vector.broadcast %55 : vector<128x1xf32> to vector<128x128xf32>
    %57 = arith.subf %53, %56 : vector<128x128xf32>
    %58 = math.exp %57 : vector<128x128xf32>
    %cst_24 = arith.constant dense<0.000000e+00> : vector<128xf32>
    %59 = vector.multi_reduction <add>, %58, %cst_24 [1] : vector<128x128xf32> to vector<128xf32>
    %60 = vector.shape_cast %59 : vector<128xf32> to vector<128x1xf32>
    %61 = tpu.reciprocal %60 {approx = true} : vector<128x1xf32> -> vector<128x1xf32>
    %62 = vector.broadcast %61 : vector<128x1xf32> to vector<128x128xf32>
    %63 = arith.mulf %58, %62 : vector<128x128xf32>
    %64 = arith.truncf %63 : vector<128x128xf32> to vector<128x128xbf16>
    %65 = vector.extract_strided_slice %48 {offsets = [0, 0], sizes = [128, 8], strides = [1, 1]} : vector<128x32xbf16> to vector<128x8xbf16>
    %cst_25 = arith.constant dense<0.000000e+00> : vector<128x8xf32>
    %66 = tpu.matmul %64, %65, %cst_25 {dimension_numbers = #tpu.dot_dimension_numbers<[1], [0], [0], [1], [0, 0, 1, 1], [], []>} : vector<128x128xbf16>, vector<128x8xbf16>, vector<128x8xf32> -> vector<128x8xf32>
    %67 = arith.truncf %66 : vector<128x8xf32> to vector<128x8xbf16>
    %c0_26 = arith.constant 0 : index
    %c0_27 = arith.constant 0 : index
    %68 = vector.load %arg16[%c0_26, %c0_27] : memref<128x32xbf16, #tpu.memory_space<vmem>>, vector<128x8xbf16>
    tpu.vector_store %arg16[%c0_26, %c0_27], %67 {strides = array<i32>} : memref<128x32xbf16, #tpu.memory_space<vmem>>, vector<128x8xbf16>,
    %69 = vector.extract_strided_slice %44 {offsets = [0, 8], sizes = [128, 8], strides = [1, 1]} : vector<128x32xbf16> to vector<128x8xbf16>
    %70 = vector.extract_strided_slice %46 {offsets = [0, 8], sizes = [128, 8], strides = [1, 1]} : vector<128x32xbf16> to vector<128x8xbf16>
    %cst_28 = arith.constant dense<0.000000e+00> : vector<128x128xf32>
    %71 = tpu.matmul %69, %70, %cst_28 {dimension_numbers = #tpu.dot_dimension_numbers<[1], [1], [0], [0], [0, 0, 1, 0], [], []>} : vector<128x8xbf16>, vector<128x8xbf16>, vector<128x128xf32> -> vector<128x128xf32>
    %72 = vector.broadcast %10 : vector<1x128xf32> to vector<128x128xf32>
    %73 = arith.addf %71, %72 : vector<128x128xf32>
    %cst_29 = arith.constant dense<0xFF800000> : vector<128xf32>
    %74 = vector.multi_reduction <maximumf>, %73, %cst_29 [1] : vector<128x128xf32> to vector<128xf32>
    %75 = vector.shape_cast %74 : vector<128xf32> to vector<128x1xf32>
    %76 = vector.broadcast %75 : vector<128x1xf32> to vector<128x128xf32>
    %77 = arith.subf %73, %76 : vector<128x128xf32>
    %78 = math.exp %77 : vector<128x128xf32>
    %cst_30 = arith.constant dense<0.000000e+00> : vector<128xf32>
    %79 = vector.multi_reduction <add>, %78, %cst_30 [1] : vector<128x128xf32> to vector<128xf32>
    %80 = vector.shape_cast %79 : vector<128xf32> to vector<128x1xf32>
    %81 = tpu.reciprocal %80 {approx = true} : vector<128x1xf32> -> vector<128x1xf32>
    %82 = vector.broadcast %81 : vector<128x1xf32> to vector<128x128xf32>
    %83 = arith.mulf %78, %82 : vector<128x128xf32>
    %84 = arith.truncf %83 : vector<128x128xf32> to vector<128x128xbf16>
    %85 = vector.extract_strided_slice %48 {offsets = [0, 8], sizes = [128, 8], strides = [1, 1]} : vector<128x32xbf16> to vector<128x8xbf16>
    %cst_31 = arith.constant dense<0.000000e+00> : vector<128x8xf32>
    %86 = tpu.matmul %84, %85, %cst_31 {dimension_numbers = #tpu.dot_dimension_numbers<[1], [0], [0], [1], [0, 0, 1, 1], [], []>} : vector<128x128xbf16>, vector<128x8xbf16>, vector<128x8xf32> -> vector<128x8xf32>
    %87 = arith.truncf %86 : vector<128x8xf32> to vector<128x8xbf16>
    %c0_32 = arith.constant 0 : index
    %c8 = arith.constant 8 : index
    %88 = vector.load %arg16[%c0_32, %c8] : memref<128x32xbf16, #tpu.memory_space<vmem>>, vector<128x8xbf16>
    tpu.vector_store %arg16[%c0_32, %c8], %87 {strides = array<i32>} : memref<128x32xbf16, #tpu.memory_space<vmem>>, vector<128x8xbf16>,
    %89 = vector.extract_strided_slice %44 {offsets = [0, 16], sizes = [128, 8], strides = [1, 1]} : vector<128x32xbf16> to vector<128x8xbf16>
    %90 = vector.extract_strided_slice %46 {offsets = [0, 16], sizes = [128, 8], strides = [1, 1]} : vector<128x32xbf16> to vector<128x8xbf16>
    %cst_33 = arith.constant dense<0.000000e+00> : vector<128x128xf32>
    %91 = tpu.matmul %89, %90, %cst_33 {dimension_numbers = #tpu.dot_dimension_numbers<[1], [1], [0], [0], [0, 0, 1, 0], [], []>} : vector<128x8xbf16>, vector<128x8xbf16>, vector<128x128xf32> -> vector<128x128xf32>
    %92 = vector.broadcast %10 : vector<1x128xf32> to vector<128x128xf32>
    %93 = arith.addf %91, %92 : vector<128x128xf32>
    %cst_34 = arith.constant dense<0xFF800000> : vector<128xf32>
    %94 = vector.multi_reduction <maximumf>, %93, %cst_34 [1] : vector<128x128xf32> to vector<128xf32>
    %95 = vector.shape_cast %94 : vector<128xf32> to vector<128x1xf32>
    %96 = vector.broadcast %95 : vector<128x1xf32> to vector<128x128xf32>
    %97 = arith.subf %93, %96 : vector<128x128xf32>
    %98 = math.exp %97 : vector<128x128xf32>
    %cst_35 = arith.constant dense<0.000000e+00> : vector<128xf32>
    %99 = vector.multi_reduction <add>, %98, %cst_35 [1] : vector<128x128xf32> to vector<128xf32>
    %100 = vector.shape_cast %99 : vector<128xf32> to vector<128x1xf32>
    %101 = tpu.reciprocal %100 {approx = true} : vector<128x1xf32> -> vector<128x1xf32>
    %102 = vector.broadcast %101 : vector<128x1xf32> to vector<128x128xf32>
    %103 = arith.mulf %98, %102 : vector<128x128xf32>
    %104 = arith.truncf %103 : vector<128x128xf32> to vector<128x128xbf16>
    %105 = vector.extract_strided_slice %48 {offsets = [0, 16], sizes = [128, 8], strides = [1, 1]} : vector<128x32xbf16> to vector<128x8xbf16>
    %cst_36 = arith.constant dense<0.000000e+00> : vector<128x8xf32>
    %106 = tpu.matmul %104, %105, %cst_36 {dimension_numbers = #tpu.dot_dimension_numbers<[1], [0], [0], [1], [0, 0, 1, 1], [], []>} : vector<128x128xbf16>, vector<128x8xbf16>, vector<128x8xf32> -> vector<128x8xf32>
    %107 = arith.truncf %106 : vector<128x8xf32> to vector<128x8xbf16>
    %c0_37 = arith.constant 0 : index
    %c16 = arith.constant 16 : index
    %108 = vector.load %arg16[%c0_37, %c16] : memref<128x32xbf16, #tpu.memory_space<vmem>>, vector<128x8xbf16>
    tpu.vector_store %arg16[%c0_37, %c16], %107 {strides = array<i32>} : memref<128x32xbf16, #tpu.memory_space<vmem>>, vector<128x8xbf16>,
    %109 = vector.extract_strided_slice %44 {offsets = [0, 24], sizes = [128, 8], strides = [1, 1]} : vector<128x32xbf16> to vector<128x8xbf16>
    %110 = vector.extract_strided_slice %46 {offsets = [0, 24], sizes = [128, 8], strides = [1, 1]} : vector<128x32xbf16> to vector<128x8xbf16>
    %cst_38 = arith.constant dense<0.000000e+00> : vector<128x128xf32>
    %111 = tpu.matmul %109, %110, %cst_38 {dimension_numbers = #tpu.dot_dimension_numbers<[1], [1], [0], [0], [0, 0, 1, 0], [], []>} : vector<128x8xbf16>, vector<128x8xbf16>, vector<128x128xf32> -> vector<128x128xf32>
    %112 = vector.broadcast %10 : vector<1x128xf32> to vector<128x128xf32>
    %113 = arith.addf %111, %112 : vector<128x128xf32>
    %cst_39 = arith.constant dense<0xFF800000> : vector<128xf32>
    %114 = vector.multi_reduction <maximumf>, %113, %cst_39 [1] : vector<128x128xf32> to vector<128xf32>
    %115 = vector.shape_cast %114 : vector<128xf32> to vector<128x1xf32>
    %116 = vector.broadcast %115 : vector<128x1xf32> to vector<128x128xf32>
    %117 = arith.subf %113, %116 : vector<128x128xf32>
    %118 = math.exp %117 : vector<128x128xf32>
    %cst_40 = arith.constant dense<0.000000e+00> : vector<128xf32>
    %119 = vector.multi_reduction <add>, %118, %cst_40 [1] : vector<128x128xf32> to vector<128xf32>
    %120 = vector.shape_cast %119 : vector<128xf32> to vector<128x1xf32>
    %121 = tpu.reciprocal %120 {approx = true} : vector<128x1xf32> -> vector<128x1xf32>
    %122 = vector.broadcast %121 : vector<128x1xf32> to vector<128x128xf32>
    %123 = arith.mulf %118, %122 : vector<128x128xf32>
    %124 = arith.truncf %123 : vector<128x128xf32> to vector<128x128xbf16>
    %125 = vector.extract_strided_slice %48 {offsets = [0, 24], sizes = [128, 8], strides = [1, 1]} : vector<128x32xbf16> to vector<128x8xbf16>
    %cst_41 = arith.constant dense<0.000000e+00> : vector<128x8xf32>
    %126 = tpu.matmul %124, %125, %cst_41 {dimension_numbers = #tpu.dot_dimension_numbers<[1], [0], [0], [1], [0, 0, 1, 1], [], []>} : vector<128x128xbf16>, vector<128x8xbf16>, vector<128x8xf32> -> vector<128x8xf32>
    %127 = arith.truncf %126 : vector<128x8xf32> to vector<128x8xbf16>
    %c0_42 = arith.constant 0 : index
    %c24 = arith.constant 24 : index
    %128 = vector.load %arg16[%c0_42, %c24] : memref<128x32xbf16, #tpu.memory_space<vmem>>, vector<128x8xbf16>
    tpu.vector_store %arg16[%c0_42, %c24], %127 {strides = array<i32>} : memref<128x32xbf16, #tpu.memory_space<vmem>>, vector<128x8xbf16>,
    %c0_43 = arith.constant 0 : index
    %c0_44 = arith.constant 0 : index
    %129 = vector.load %arg16[%c0_43, %c0_44] : memref<128x32xbf16, #tpu.memory_space<vmem>>, vector<128x32xbf16>
    %c0_45 = arith.constant 0 : index
    %c0_46 = arith.constant 0 : index
    %c0_47 = arith.constant 0 : index
    %130 = vector.load %arg7[%c0_45, %c0_46, %c0_47] : memref<1x32x32xbf16, #tpu.memory_space<vmem>>, vector<1x32x32xbf16>
    %131 = vector.shape_cast %130 : vector<1x32x32xbf16> to vector<32x32xbf16>
    %cst_48 = arith.constant dense<0.000000e+00> : vector<128x32xf32>
    %132 = tpu.matmul %129, %131, %cst_48 {dimension_numbers = #tpu.dot_dimension_numbers<[1], [0], [0], [1], [0, 0, 1, 1], [], []>} : vector<128x32xbf16>, vector<32x32xbf16>, vector<128x32xf32> -> vector<128x32xf32>
    %c0_49 = arith.constant 0 : index
    %c0_50 = arith.constant 0 : index
    %c0_51 = arith.constant 0 : index
    %133 = vector.load %arg8[%c0_49, %c0_50, %c0_51] : memref<1x1x32xf32, #tpu.memory_space<vmem>>, vector<1x1x32xf32>
    %134 = vector.shape_cast %133 : vector<1x1x32xf32> to vector<1x32xf32>
    %135 = vector.broadcast %134 : vector<1x32xf32> to vector<128x32xf32>
    %136 = arith.addf %132, %135 : vector<128x32xf32>
    %137 = arith.addf %4, %136 : vector<128x32xf32>
    %c0_52 = arith.constant 0 : index
    %c0_53 = arith.constant 0 : index
    %c0_54 = arith.constant 0 : index
    %138 = vector.load %arg9[%c0_52, %c0_53, %c0_54] : memref<1x1x32xf32, #tpu.memory_space<vmem>>, vector<1x1x32xf32>
    %139 = vector.shape_cast %138 : vector<1x1x32xf32> to vector<1x32xf32>
    %c0_55 = arith.constant 0 : index
    %c0_56 = arith.constant 0 : index
    %c0_57 = arith.constant 0 : index
    %140 = vector.load %arg10[%c0_55, %c0_56, %c0_57] : memref<1x1x32xf32, #tpu.memory_space<vmem>>, vector<1x1x32xf32>
    %141 = vector.shape_cast %140 : vector<1x1x32xf32> to vector<1x32xf32>
    %cst_58 = arith.constant dense<0.000000e+00> : vector<128xf32>
    %142 = vector.multi_reduction <add>, %137, %cst_58 [1] : vector<128x32xf32> to vector<128xf32>
    %143 = vector.shape_cast %142 : vector<128xf32> to vector<128x1xf32>
    %cst_59 = arith.constant 3.200000e+01 : f32
    %144 = vector.broadcast %cst_59 : f32 to vector<128x1xf32>
    %145 = arith.divf %143, %144 : vector<128x1xf32>
    %146 = vector.broadcast %145 : vector<128x1xf32> to vector<128x32xf32>
    %147 = arith.subf %137, %146 : vector<128x32xf32>
    %148 = arith.mulf %147, %147 : vector<128x32xf32>
    %cst_60 = arith.constant dense<0.000000e+00> : vector<128xf32>
    %149 = vector.multi_reduction <add>, %148, %cst_60 [1] : vector<128x32xf32> to vector<128xf32>
    %150 = vector.shape_cast %149 : vector<128xf32> to vector<128x1xf32>
    %cst_61 = arith.constant 3.200000e+01 : f32
    %151 = vector.broadcast %cst_61 : f32 to vector<128x1xf32>
    %152 = arith.divf %150, %151 : vector<128x1xf32>
    %cst_62 = arith.constant 9.99999974E-6 : f32
    %153 = vector.broadcast %cst_62 : f32 to vector<128x1xf32>
    %154 = arith.addf %152, %153 : vector<128x1xf32>
    %155 = math.rsqrt %154 : vector<128x1xf32>
    %156 = vector.broadcast %155 : vector<128x1xf32> to vector<128x32xf32>
    %157 = arith.mulf %147, %156 : vector<128x32xf32>
    %158 = vector.broadcast %139 : vector<1x32xf32> to vector<128x32xf32>
    %159 = arith.mulf %157, %158 : vector<128x32xf32>
    %160 = vector.broadcast %141 : vector<1x32xf32> to vector<128x32xf32>
    %161 = arith.addf %159, %160 : vector<128x32xf32>
    %162 = arith.truncf %161 : vector<128x32xf32> to vector<128x32xbf16>
    %c0_63 = arith.constant 0 : index
    %c0_64 = arith.constant 0 : index
    %c0_65 = arith.constant 0 : index
    %163 = vector.load %arg11[%c0_63, %c0_64, %c0_65] : memref<1x32x128xbf16, #tpu.memory_space<vmem>>, vector<1x32x128xbf16>
    %164 = vector.shape_cast %163 : vector<1x32x128xbf16> to vector<32x128xbf16>
    %cst_66 = arith.constant dense<0.000000e+00> : vector<128x128xf32>
    %165 = tpu.matmul %162, %164, %cst_66 {dimension_numbers = #tpu.dot_dimension_numbers<[1], [0], [0], [1], [0, 0, 1, 1], [], []>} : vector<128x32xbf16>, vector<32x128xbf16>, vector<128x128xf32> -> vector<128x128xf32>
    %c0_67 = arith.constant 0 : index
    %c0_68 = arith.constant 0 : index
    %c0_69 = arith.constant 0 : index
    %166 = vector.load %arg12[%c0_67, %c0_68, %c0_69] : memref<1x1x128xf32, #tpu.memory_space<vmem>>, vector<1x1x128xf32>
    %167 = vector.shape_cast %166 : vector<1x1x128xf32> to vector<1x128xf32>
    %168 = vector.broadcast %167 : vector<1x128xf32> to vector<128x128xf32>
    %169 = arith.addf %165, %168 : vector<128x128xf32>
    %cst_70 = arith.constant 1.702000e+00 : f32
    %170 = vector.broadcast %cst_70 : f32 to vector<128x128xf32>
    %171 = arith.mulf %170, %169 : vector<128x128xf32>
    %172 = arith.negf %171 : vector<128x128xf32>
    %173 = math.exp %172 : vector<128x128xf32>
    %cst_71 = arith.constant 1.000000e+00 : f32
    %174 = vector.broadcast %cst_71 : f32 to vector<128x128xf32>
    %175 = arith.addf %174, %173 : vector<128x128xf32>
    %176 = arith.divf %174, %175 : vector<128x128xf32>
    %177 = arith.mulf %169, %176 : vector<128x128xf32>
    %178 = arith.truncf %177 : vector<128x128xf32> to vector<128x128xbf16>
    %c0_72 = arith.constant 0 : index
    %c0_73 = arith.constant 0 : index
    %c0_74 = arith.constant 0 : index
    %179 = vector.load %arg13[%c0_72, %c0_73, %c0_74] : memref<1x128x32xbf16, #tpu.memory_space<vmem>>, vector<1x128x32xbf16>
    %180 = vector.shape_cast %179 : vector<1x128x32xbf16> to vector<128x32xbf16>
    %cst_75 = arith.constant dense<0.000000e+00> : vector<128x32xf32>
    %181 = tpu.matmul %178, %180, %cst_75 {dimension_numbers = #tpu.dot_dimension_numbers<[1], [0], [0], [1], [0, 0, 1, 1], [], []>} : vector<128x128xbf16>, vector<128x32xbf16>, vector<128x32xf32> -> vector<128x32xf32>
    %c0_76 = arith.constant 0 : index
    %c0_77 = arith.constant 0 : index
    %c0_78 = arith.constant 0 : index
    %182 = vector.load %arg14[%c0_76, %c0_77, %c0_78] : memref<1x1x32xf32, #tpu.memory_space<vmem>>, vector<1x1x32xf32>
    %183 = vector.shape_cast %182 : vector<1x1x32xf32> to vector<1x32xf32>
    %184 = vector.broadcast %183 : vector<1x32xf32> to vector<128x32xf32>
    %185 = arith.addf %181, %184 : vector<128x32xf32>
    %186 = arith.addf %137, %185 : vector<128x32xf32>
    %c0_79 = arith.constant 0 : index
    %c0_80 = arith.constant 0 : index
    %c0_81 = arith.constant 0 : index
    %187 = vector.load %arg15[%c0_79, %c0_80, %c0_81] : memref<1x128x32xf32, #tpu.memory_space<vmem>>, vector<1x128x32xf32>
    %188 = vector.shape_cast %187 : vector<1x128x32xf32> to vector<128x32xf32>
    %189 = vector.shape_cast %186 : vector<128x32xf32> to vector<1x128x32xf32>
    tpu.vector_store %arg15[%c0_79, %c0_80, %c0_81], %189 {strides = array<i32>} : memref<1x128x32xf32, #tpu.memory_space<vmem>>, vector<1x128x32xf32>,
    return
  }
  func.func @transform_0(%arg0: i32, %arg1: i32) -> (i32, i32, i32) {
    %c0_i32 = arith.constant 0 : i32
    %c0_i32_0 = arith.constant 0 : i32
    %c0_i32_1 = arith.constant 0 : i32
    return %arg0, %c0_i32, %c0_i32_0 : i32, i32, i32
  }
  func.func @transform_1(%arg0: i32, %arg1: i32) -> (i32, i32, i32) {
    %c0_i32 = arith.constant 0 : i32
    %c0_i32_0 = arith.constant 0 : i32
    %c0_i32_1 = arith.constant 0 : i32
    return %arg1, %c0_i32, %c0_i32_0 : i32, i32, i32
  }
  func.func @transform_2(%arg0: i32, %arg1: i32) -> (i32, i32, i32) {
    %c0_i32 = arith.constant 0 : i32
    %c0_i32_0 = arith.constant 0 : i32
    %c0_i32_1 = arith.constant 0 : i32
    return %arg1, %c0_i32, %c0_i32_0 : i32, i32, i32
  }
  func.func @transform_3(%arg0: i32, %arg1: i32) -> (i32, i32, i32) {
    %c0_i32 = arith.constant 0 : i32
    %c0_i32_0 = arith.constant 0 : i32
    %c0_i32_1 = arith.constant 0 : i32
    return %arg1, %c0_i32, %c0_i32_0 : i32, i32, i32
  }
  func.func @transform_4(%arg0: i32, %arg1: i32) -> (i32, i32, i32) {
    %c0_i32 = arith.constant 0 : i32
    %c0_i32_0 = arith.constant 0 : i32
    %c0_i32_1 = arith.constant 0 : i32
    return %arg1, %c0_i32, %c0_i32_0 : i32, i32, i32
  }
  func.func @transform_5(%arg0: i32, %arg1: i32) -> (i32, i32, i32) {
    %c0_i32 = arith.constant 0 : i32
    %c0_i32_0 = arith.constant 0 : i32
    %c0_i32_1 = arith.constant 0 : i32
    return %arg1, %c0_i32, %c0_i32_0 : i32, i32, i32
  }
  func.func @transform_6(%arg0: i32, %arg1: i32) -> (i32, i32, i32) {
    %c0_i32 = arith.constant 0 : i32
    %c0_i32_0 = arith.constant 0 : i32
    %c0_i32_1 = arith.constant 0 : i32
    return %arg1, %c0_i32, %c0_i32_0 : i32, i32, i32
  }
  func.func @transform_7(%arg0: i32, %arg1: i32) -> (i32, i32, i32) {
    %c0_i32 = arith.constant 0 : i32
    %c0_i32_0 = arith.constant 0 : i32
    %c0_i32_1 = arith.constant 0 : i32
    return %arg1, %c0_i32, %c0_i32_0 : i32, i32, i32
  }
  func.func @transform_8(%arg0: i32, %arg1: i32) -> (i32, i32, i32) {
    %c0_i32 = arith.constant 0 : i32
    %c0_i32_0 = arith.constant 0 : i32
    %c0_i32_1 = arith.constant 0 : i32
    return %arg1, %c0_i32, %c0_i32_0 : i32, i32, i32
  }
  func.func @transform_9(%arg0: i32, %arg1: i32) -> (i32, i32, i32) {
    %c0_i32 = arith.constant 0 : i32
    %c0_i32_0 = arith.constant 0 : i32
    %c0_i32_1 = arith.constant 0 : i32
    return %arg1, %c0_i32, %c0_i32_0 : i32, i32, i32
  }
  func.func @transform_10(%arg0: i32, %arg1: i32) -> (i32, i32, i32) {
    %c0_i32 = arith.constant 0 : i32
    %c0_i32_0 = arith.constant 0 : i32
    %c0_i32_1 = arith.constant 0 : i32
    return %arg1, %c0_i32, %c0_i32_0 : i32, i32, i32
  }
  func.func @transform_11(%arg0: i32, %arg1: i32) -> (i32, i32, i32) {
    %c0_i32 = arith.constant 0 : i32
    %c0_i32_0 = arith.constant 0 : i32
    %c0_i32_1 = arith.constant 0 : i32
    return %arg1, %c0_i32, %c0_i32_0 : i32, i32, i32
  }
  func.func @transform_12(%arg0: i32, %arg1: i32) -> (i32, i32, i32) {
    %c0_i32 = arith.constant 0 : i32
    %c0_i32_0 = arith.constant 0 : i32
    %c0_i32_1 = arith.constant 0 : i32
    return %arg1, %c0_i32, %c0_i32_0 : i32, i32, i32
  }
  func.func @transform_13(%arg0: i32, %arg1: i32) -> (i32, i32, i32) {
    %c0_i32 = arith.constant 0 : i32
    %c0_i32_0 = arith.constant 0 : i32
    %c0_i32_1 = arith.constant 0 : i32
    return %arg0, %c0_i32, %c0_i32_0 : i32, i32, i32
  }
}

</mosaic_0001>

<bundles_post_ra>
// kernel: transformer_forward.1
= control target key start
LH: loop header
LB: loop body
LE: loop exit
PB: predicated region body
PF: predicated region fallthrough
CT: control target
= control target key end

     0   :  { %s5132_s25 = smov 0   ;;  %s5134_s26 = smov 0   ;;  %s7397_s0 = inlined_call_operand.vmem [shape: f32[2,128,32], index: 0, kind: input, shape index: {}]   ;;  %s7398_s1 = inlined_call_operand.vmem [shape: f32[2,1,32], index: 1, kind: input, shape index: {}]   ;;  %s7399_s2 = inlined_call_operand.vmem [shape: f32[2,1,32], index: 2, kind: input, shape index: {}]   ;;  %s7400_s3 = inlined_call_operand.vmem [shape: bf16[2,32,96], index: 3, kind: input, shape index: {}]   ;;  %s7401_s4 = inlined_call_operand.vmem [shape: f32[2,1,96], index: 4, kind: input, shape index: {}]   ;;  %s7402_s5 = inlined_call_operand.vmem [shape: bf16[2,32,32], index: 5, kind: input, shape index: {}]   ;;  %s7403_s6 = inlined_call_operand.vmem [shape: f32[2,1,32], index: 6, kind: input, shape index: {}]   ;;  %s7404_s7 = inlined_call_operand.vmem [shape: f32[2,1,32], index: 7, kind: input, shape index: {}]   ;;  %s7405_s8 = inlined_call_operand.vmem [shape: f32[2,1,32], index: 8, kind: input, shape index: {}]   ;;  %s7406_s9 = inlined_call_operand.vmem [shape: bf16[2,32,128], index: 9, kind: input, shape index: {}]   ;;  %s7407_s10 = inlined_call_operand.vmem [shape: f32[2,1,128], index: 10, kind: input, shape index: {}]   ;;  %s7408_s11 = inlined_call_operand.vmem [shape: bf16[2,128,32], index: 11, kind: input, shape index: {}]   ;;  %s7409_s12 = inlined_call_operand.vmem [shape: f32[2,1,32], index: 12, kind: input, shape index: {}]   ;;  %s7410_s13 = inlined_call_operand.vmem [shape: f32[2,128,32], index: 13, kind: output, shape index: {}]  }
   0x1   :  { %7425 = sst [smem:[#allocation16_spill]] %s7397_s0  ;;  %s5136_s27 = smov 0  }
   0x2   :  { %7426 = sst [smem:[#allocation17_spill]] %s7399_s2  ;;  %s5138_s28 = smov 0  }
   0x3   :  { %7427 = sst [smem:[#allocation18_spill]] %s7400_s3  ;;  %s5140_s29 = smov 0  }
   0x4   :  { %7428 = sst [smem:[#allocation19_spill]] %s7402_s5 }
   0x5 LB: > { %7429 = sst [smem:[#allocation3_spill]] %s5028_s25  ;;  %s32_s30 = sadd.s32 1, %s5036_s27  ;;  %s5044_s29 = sphi %s5140_s29, %s23_s29   ;;  %s5040_s28 = sphi %s5138_s28, %s7474_s28   ;;  %s5036_s27 = sphi %s5136_s27, %s7473_s27   ;;  %s5032_s26 = sphi %s5134_s26, %s7472_s26   ;;  %s5028_s25 = sphi %s5132_s25, %s7471_s25  }
   0x6   : > { %7430 = sst [smem:[#allocation4_spill]] %s5036_s27  ;;  %s35_s14 = sadd.s32 1, %s5040_s28 }
   0x7   : > { %7431 = sst [smem:[#allocation5_spill]] %s5040_s28  ;;  %p33_p0 = scmp.ge.s32.totalorder %s32_s30, 2 }
   0x8   : > { %7432 = sst [smem:[#allocation6_spill]] %s5044_s29  ;;  %p4326_p1 = scmp.ge.s32.totalorder %s5044_s29, 1 }
   0x9   : > { %p503_p2 = scmp.lt.s32.totalorder %s5044_s29, 5  ;;  %s7476_s30 = smov (%p33_p0, %s32_s30), 0 }
   0xa   : > { %7433 = sst [smem:[#allocation7_spill]] %s7476_s30  ;;  %s7478_s14 = smov (!%p33_p0, %s35_s14), %s5040_s28 }
   0xb   : > { %p504_p3 = pnand %p4326_p1, %p503_p2  ;;  %p37_p4 = scmp.ge.s32.totalorder %s7478_s14, 2 }
   0xd   : > { %s7480_s14 = smov (%p37_p4, %s7478_s14), 0  ;;  %507 = sbr.rel (%p504_p3) target bundleno = 3277 (0xccd), region = 72 }
   0xe   : > { %7434 = sst [smem:[#allocation8_spill]] %s7480_s14 }
  0x12   : > { %p591_p5 = scmp.lt.s32.totalorder %s5032_s26, 1  ;;  %p596_p6 = scmp.lt.s32.totalorder %s5028_s25, 1 }
  0x13   : > { %s7435_s0 = sld [smem:[#allocation16_spill]] }
  0x14   : > { %s7482_s26 = smov (!%p591_p5, %s5032_s26), 1  ;;  %s7438_s3 = sld [smem:[#allocation18_spill]] }
  0x15   : > { %s5166_s15 = scalar_select %p596_p6, %s5028_s25, 1 }
  0x16   : > { %s4502_s16 = sshll.u32 %s7482_s26, 7  ;;  %s7439_s5 = sld [smem:[#allocation19_spill]] }
  0x17   : > { %s4503_s30 = sshll.u32 %s5166_s15, 4  ;;  %s631_s17 = scalar_lea.vmem %s7407_s10, %s5166_s15 }
  0x18   : > { %s5211_s26 = scalar_lea.vmem %s7406_s9, %s4503_s30  ;;  %s639_s23 = scalar_lea.vmem %s7409_s12, %s5166_s15 }
  0x19   : > { %s5171_s19 = scalar_lea.vmem %s7435_s0, %s4502_s16  ;;  %s5230_s2 = scalar_lea.vmem %s7410_s13, %s4502_s16 }
  0x1a   : > { %7436 = sst [smem:[#allocation9_spill]] %s5171_s19  ;;  %s5185_s29 = scalar_lea.vmem %s7438_s3, %s4503_s30 }
  0x1b   : > { %s623_s3 = scalar_lea.vmem %s7405_s8, %s5166_s15 }
  0x1c   : > { %s5194_s19 = scalar_lea.vmem %s7439_s5, %s4503_s30  ;;  %s4506_s5 = sshll.u32 %s5166_s15, 6 }
  0x1d   : > { %s5225_s22 = scalar_lea.vmem %s7408_s11, %s4506_s5  ;;  %s7440_s30 = sld [smem:[#allocation3_spill]] }
  0x23   : > { %p4339_p7 = scmp.ne.s32.totalorder %s7440_s30, 0 }
  0x24   : > { %s7441_s25 = sld [smem:[#allocation9_spill]] (!%p4339_p7) }
  0x25   : > { %649 = sbr.rel (%p4339_p7) target bundleno = 59 (0x3b), region = 76 }
  0x2a   : > { %v650_v0 = vld [vmem:[%s7441_s25] sm:$0xff]  ;;  %vm666_vm0 = vcmask 261120   ;;  %v651_v1 = vld [vmem:[%s7441_s25 + $0x8] sm:$0xff]  ;;  %v652_v2 = vld [vmem:[%s7441_s25 + $0x10] sm:$0xff] }
  0x2b   : > { %667 = vst.msk [vmem:[%s5230_s2] sm:$0xff] %vm666_vm0, %v650_v0  ;;  %v653_v3 = vld [vmem:[%s7441_s25 + $0x18] sm:$0xff]  ;;  %v654_v4 = vld [vmem:[%s7441_s25 + $0x20] sm:$0xff]  ;;  %v655_v5 = vld [vmem:[%s7441_s25 + $0x28] sm:$0xff] }
  0x2c   : > { %668 = vst.msk [vmem:[%s5230_s2 + $0x8] sm:$0xff] %vm666_vm0, %v651_v1  ;;  %v656_v6 = vld [vmem:[%s7441_s25 + $0x30] sm:$0xff]  ;;  %v657_v7 = vld [vmem:[%s7441_s25 + $0x38] sm:$0xff]  ;;  %v658_v8 = vld [vmem:[%s7441_s25 + $0x40] sm:$0xff] }
  0x2d   : > { %669 = vst.msk [vmem:[%s5230_s2 + $0x10] sm:$0xff] %vm666_vm0, %v652_v2  ;;  %v659_v9 = vld [vmem:[%s7441_s25 + $0x48] sm:$0xff]  ;;  %v660_v10 = vld [vmem:[%s7441_s25 + $0x50] sm:$0xff]  ;;  %v661_v11 = vld [vmem:[%s7441_s25 + $0x58] sm:$0xff] }
  0x2e   : > { %670 = vst.msk [vmem:[%s5230_s2 + $0x18] sm:$0xff] %vm666_vm0, %v653_v3  ;;  %v662_v12 = vld [vmem:[%s7441_s25 + $0x60] sm:$0xff]  ;;  %v663_v13 = vld [vmem:[%s7441_s25 + $0x68] sm:$0xff]  ;;  %v664_v14 = vld [vmem:[%s7441_s25 + $0x70] sm:$0xff] }
  0x2f   : > { %671 = vst.msk [vmem:[%s5230_s2 + $0x20] sm:$0xff] %vm666_vm0, %v654_v4  ;;  %v665_v15 = vld [vmem:[%s7441_s25 + $0x78] sm:$0xff] }
  0x30   : > { %672 = vst.msk [vmem:[%s5230_s2 + $0x28] sm:$0xff] %vm666_vm0, %v655_v5 }
  0x31   : > { %673 = vst.msk [vmem:[%s5230_s2 + $0x30] sm:$0xff] %vm666_vm0, %v656_v6 }
  0x32   : > { %674 = vst.msk [vmem:[%s5230_s2 + $0x38] sm:$0xff] %vm666_vm0, %v657_v7 }
  0x33   : > { %675 = vst.msk [vmem:[%s5230_s2 + $0x40] sm:$0xff] %vm666_vm0, %v658_v8 }
  0x34   : > { %676 = vst.msk [vmem:[%s5230_s2 + $0x48] sm:$0xff] %vm666_vm0, %v659_v9 }
  0x35   : > { %677 = vst.msk [vmem:[%s5230_s2 + $0x50] sm:$0xff] %vm666_vm0, %v660_v10 }
  0x36   : > { %678 = vst.msk [vmem:[%s5230_s2 + $0x58] sm:$0xff] %vm666_vm0, %v661_v11 }
  0x37   : > { %679 = vst.msk [vmem:[%s5230_s2 + $0x60] sm:$0xff] %vm666_vm0, %v662_v12 }
  0x38   : > { %680 = vst.msk [vmem:[%s5230_s2 + $0x68] sm:$0xff] %vm666_vm0, %v663_v13 }
  0x39   : > { %681 = vst.msk [vmem:[%s5230_s2 + $0x70] sm:$0xff] %vm666_vm0, %v664_v14 }
  0x3a   : > { %682 = vst.msk [vmem:[%s5230_s2 + $0x78] sm:$0xff] %vm666_vm0, %v665_v15 }
  0x3b PF: > { %v685_v16 = vld [vmem:[%s5230_s2 + $0x10] sm:$0xff]  ;;  %vm705_vm1 = vcmask 261120   ;;  %v683_v17 = vld [vmem:[%s5230_s2] sm:$0xff]  ;;  %v686_v21 = vld [vmem:[%s5230_s2 + $0x18] sm:$0xff]  ;;  %v5046_v30 = vmov 32.0   ;;  %s7445_s16 = scalar_lea.vmem %s7398_s1, %s5166_s15  ;;  %s7446_s20 = sld [smem:[#allocation17_spill]] }
  0x3c   : > { %v712_v18 = vsel %vm705_vm1, %v685_v16, 0.0  ;;  %v706_v19 = vsel %vm705_vm1, %v683_v17, 0.0  ;;  %v687_v20 = vld [vmem:[%s5230_s2 + $0x20] sm:$0xff]  ;;  %v684_v23 = vld [vmem:[%s5230_s2 + $0x8] sm:$0xff]  ;;  %v715_v25 = vsel %vm705_vm1, %v686_v21, 0.0  ;;  %v689_v28 = vld [vmem:[%s5230_s2 + $0x30] sm:$0xff]  ;;  %4604 = vrcp.f32 %v5046_v30  ;;  %s7452_s27 = scalar_lea.vmem %s7401_s4, %s5166_s15 }
  0x3d   : > { %713 = vadd.xlane.f32.xlu1 %v712_v18  ;;  %707 = vadd.xlane.f32.xlu0 %v706_v19  ;;  %v718_v22 = vsel %vm705_vm1, %v687_v20, 0.0  ;;  %v688_v24 = vld [vmem:[%s5230_s2 + $0x28] sm:$0xff]  ;;  %v709_v26 = vsel %vm705_vm1, %v684_v23, 0.0  ;;  %v724_v29 = vsel %vm705_vm1, %v689_v28, 0.0  ;;  %v5308_v50 = vld [vmem:[%s5230_s2 + $0x38] sm:$0xff]  ;;  %v5330_v63 = vld [vmem:[%s5230_s2 + $0x40] sm:$0xff] }
  0x3e   : > { %719 = vadd.xlane.f32.xlu2 %v718_v22  ;;  %v721_v27 = vsel %vm705_vm1, %v688_v24, 0.0  ;;  %v727_v56 = vsel %vm705_vm1, %v5308_v50, 0.0  ;;  %v730_v3 = vsel %vm705_vm1, %v5330_v63, 0.0  ;;  %v5344_v8 = vld [vmem:[%s5230_s2 + $0x58] sm:$0xff]  ;;  %v5347_v9 = vld [vmem:[%s5230_s2 + $0x48] sm:$0xff]  ;;  %v5359_v15 = vld [vmem:[%s5230_s2 + $0x60] sm:$0xff] }
  0x3f   : > { %v739_v11 = vsel %vm705_vm1, %v5344_v8, 0.0  ;;  %v733_v13 = vsel %vm705_vm1, %v5347_v9, 0.0  ;;  %s5047_s28 = smov 96   ;;  %s5048_s30 = smov 88  }
  0x40   : > { %v5375_v22 = vld [vmem:[%s5230_s2 + $0x70] sm:$0xff]  ;;  %s5049_s25 = smov 64   ;;  %s5050_s5 = smov 120  }
  0x41   : > { %s7447_s21 = scalar_lea.vmem %s7446_s20, %s5166_s15  ;;  %s5053_s0 = smov 112  }
  0x42   : > { %v4605_v31 = vpop.eup %4604  ;;  %s5054_s18 = smov 104   ;;  %s5055_s20 = smov 56  }
  0x43   : > { %v755_v32 = vmul.f32 32.0, %v4605_v31  ;;  %vm759_vm2 = vweird.f32 %v4605_v31  ;;  %s5058_s14 = smov 48   ;;  %s5059_s24 = smov 8  }
  0x45   : > { %716 = vadd.xlane.f32.xlu1 %v715_v25  ;;  %710 = vadd.xlane.f32.xlu0 %v709_v26  ;;  %v756_v33 = vsub.f32 1.0, %v755_v32  ;;  %v4509_v25 = vld [vmem:[%s5185_s29 + $0x8] sm:$0xff] }
  0x46   : > { %722 = vadd.xlane.f32.xlu2 %v721_v27  ;;  %1161 = vmatpush.bf16.msra.mxu0 %v4509_v25 }
  0x47   : > { %v757_v34 = vmul.f32 %v4605_v31, %v756_v33 }
  0x49   : > { %v758_v35 = vadd.f32 %v4605_v31, %v757_v34 }
  0x4b   : > { %v5295_v36 = vsel %vm759_vm2, %v4605_v31, %v758_v35 }
  0x4c   : > { %7442 = vst [vmem:[#allocation10_spill] sm:$0xff] %v5295_v36 }
  0x4e   : > { %725 = vadd.xlane.f32.xlu2 %v724_v29 }
  0xb0   : > { %v714_v37 = vpop.xlane.xlu1 %713  ;;  %v708_v38 = vpop.xlane.xlu0 %707 }
  0xb1   : > { %v761_v39 = vmul.f32 %v5295_v36, %v708_v38  ;;  %v720_v40 = vpop.xlane.xlu2 %719  ;;  %v763_v49 = vmul.f32 %v5295_v36, %v714_v37 }
  0xb2   : > { %v765_v48 = vmul.f32 %v5295_v36, %v720_v40 }
  0xb3   : > { %v5298_v41 = vsub.f32 %v683_v17, %v761_v39  ;;  %v5322_v58 = vsub.f32 %v685_v16, %v763_v49  ;;  %v5362_v16 = vld [vmem:[%s5230_s2 + $0x50] sm:$0xff]  ;;  %v742_v17 = vsel %vm705_vm1, %v5359_v15, 0.0 }
  0xb4   : > { %v5314_v54 = vsub.f32 %v687_v20, %v765_v48  ;;  %v736_v19 = vsel %vm705_vm1, %v5362_v16, 0.0  ;;  %v5370_v20 = vld [vmem:[%s5230_s2 + $0x68] sm:$0xff] }
  0xb5   : > { %v793_v42 = vmul.f32 %v5298_v41, %v5298_v41  ;;  %v795_v0 = vmul.f32 %v5322_v58, %v5322_v58 }
  0xb6   : > { %v797_v62 = vmul.f32 %v5314_v54, %v5314_v54 }
  0xb7   : > { %v809_v43 = vsel %vm705_vm1, %v793_v42, 0.0  ;;  %v815_v4 = vsel %vm705_vm1, %v795_v0, 0.0 }
  0xb8   : > { %v717_v44 = vpop.xlane.xlu1 %716  ;;  %810 = vadd.xlane.f32.xlu0 %v809_v43  ;;  %v711_v45 = vpop.xlane.xlu0 %710  ;;  %v821_v2 = vsel %vm705_vm1, %v797_v62, 0.0 }
  0xb9   : > { %v764_v46 = vmul.f32 %v5295_v36, %v717_v44  ;;  %v762_v47 = vmul.f32 %v5295_v36, %v711_v45  ;;  %v723_v53 = vpop.xlane.xlu2 %722 }
  0xba   : > { %v766_v61 = vmul.f32 %v5295_v36, %v723_v53 }
  0xbb   : > { %v5310_v51 = vsub.f32 %v686_v21, %v764_v46  ;;  %v5312_v52 = vsub.f32 %v684_v23, %v762_v47  ;;  %v745_v21 = vsel %vm705_vm1, %v5370_v20, 0.0  ;;  %v748_v23 = vsel %vm705_vm1, %v5375_v22, 0.0 }
  0xbc   : > { %v5334_v1 = vsub.f32 %v688_v24, %v766_v61 }
  0xbd   : > { %v796_v55 = vmul.f32 %v5310_v51, %v5310_v51  ;;  %v794_v57 = vmul.f32 %v5312_v52, %v5312_v52 }
  0xbe   : > { %v798_v7 = vmul.f32 %v5334_v1, %v5334_v1 }
  0xbf   : > { %v818_v59 = vsel %vm705_vm1, %v796_v55, 0.0  ;;  %v812_v60 = vsel %vm705_vm1, %v794_v57, 0.0 }
  0xc0   : > { %819 = vadd.xlane.f32.xlu2 %v818_v59  ;;  %728 = vadd.xlane.f32.xlu0 %v727_v56  ;;  %v824_v12 = vsel %vm705_vm1, %v798_v7, 0.0 }
  0xc1   : > { %813 = vadd.xlane.f32.xlu1 %v812_v60  ;;  %v726_v5 = vpop.xlane.xlu2 %725 }
  0xc2   : > { %v767_v6 = vmul.f32 %v5295_v36, %v726_v5 }
  0xc4   : > { %v5349_v10 = vsub.f32 %v689_v28, %v767_v6  ;;  %v4508_v28 = vld [vmem:[%s5185_s29] sm:$0xff]  ;;  %s5051_s29 = smov 80  }
  0xc5   : > { %1162 = vmatpush.bf16.msra.mxu0 %v4508_v28 }
  0xc6   : > { %v799_v14 = vmul.f32 %v5349_v10, %v5349_v10 }
  0xc8   : > { %822 = vadd.xlane.f32.xlu2 %v821_v2  ;;  %731 = vadd.xlane.f32.xlu0 %v730_v3  ;;  %v827_v18 = vsel %vm705_vm1, %v799_v14, 0.0 }
  0xc9   : > { %816 = vadd.xlane.f32.xlu1 %v815_v4 }
  0xd0   : > { %740 = vadd.xlane.f32.xlu2 %v739_v11  ;;  %825 = vadd.xlane.f32.xlu0 %v824_v12 }
  0xd1   : > { %734 = vadd.xlane.f32.xlu1 %v733_v13 }
  0xd8   : > { %743 = vadd.xlane.f32.xlu2 %v742_v17  ;;  %828 = vadd.xlane.f32.xlu0 %v827_v18 }
  0xd9   : > { %737 = vadd.xlane.f32.xlu1 %v736_v19 }
  0xe0   : > { %746 = vadd.xlane.f32.xlu0 %v745_v21 }
  0xe8   : > { %749 = vadd.xlane.f32.xlu0 %v748_v23 }
 0x12b   : > { %v811_v24 = vpop.xlane.xlu0 %810 }
 0x12c   : > { %v857_v26 = vmul.f32 %v811_v24, %v5295_v36 }
 0x12e   : > { %v873_v27 = vadd.f32 1e-05, %v857_v26 }
 0x130   : > { %4606 = vrsqrt.f32 %v873_v27  ;;  %vm895_vm4 = vweird.f32 %v873_v27 }
 0x133   : > { %v820_v29 = vpop.xlane.xlu2 %819  ;;  %v729_v30 = vpop.xlane.xlu0 %728 }
 0x134   : > { %v860_v31 = vmul.f32 %v820_v29, %v5295_v36  ;;  %v814_v32 = vpop.xlane.xlu1 %813  ;;  %v768_v33 = vmul.f32 %v5295_v36, %v729_v30  ;;  %v5445_v30 = vld [vmem:[%s7445_s16] ss:$0 sm:$0xff]  ;;  %s5052_s16 = smov 72  }
 0x135   : > { %v858_v34 = vmul.f32 %v814_v32, %v5295_v36 }
 0x136   : > { %v4607_v35 = vpop.eup %4606  ;;  %v5385_v37 = vadd.f32 1e-05, %v860_v31  ;;  %v5388_v38 = vsub.f32 %v5308_v50, %v768_v33 }
 0x137   : > { %v890_v39 = vmul.f32 %v4607_v35, %v873_v27  ;;  %v874_v40 = vadd.f32 1e-05, %v858_v34  ;;  %vm896_vm3 = vweird.f32 %v4607_v35  ;;  %v5434_v27 = vld [vmem:[%s5230_s2 + $0x78] sm:$0xff] }
 0x138   : > { %4608 = vrsqrt.f32 %v5385_v37  ;;  %v800_v42 = vmul.f32 %v5388_v38, %v5388_v38  ;;  %vm5411_vm5 = vmor %vm895_vm4, %vm896_vm3  ;;  %vm925_vm9 = vweird.f32 %v5385_v37 }
 0x139   : > { %v891_v43 = vmul.f32 %v4607_v35, %v890_v39  ;;  %4610 = vrsqrt.f32 %v874_v40  ;;  %vm905_vm7 = vweird.f32 %v874_v40 }
 0x13a   : > { %v830_v44 = vsel %vm705_vm1, %v800_v42, 0.0 }
 0x13b   : > { %v892_v45 = vmul.f32 0.5, %v891_v43  ;;  %v823_v46 = vpop.xlane.xlu2 %822  ;;  %831 = vadd.xlane.f32.xlu1 %v830_v44  ;;  %v732_v47 = vpop.xlane.xlu0 %731 }
 0x13c   : > { %v817_v48 = vpop.xlane.xlu1 %816  ;;  %v769_v49 = vmul.f32 %v5295_v36, %v732_v47  ;;  %v861_v59 = vmul.f32 %v823_v46, %v5295_v36 }
 0x13d   : > { %v893_v50 = vsub.f32 1.5, %v892_v45  ;;  %v859_v53 = vmul.f32 %v817_v48, %v5295_v36  ;;  %v5466_v48 = vld [vmem:[%s7447_s21] ss:$0 sm:$0xff]  ;;  %s5057_s21 = smov 40  }
 0x13e   : > { %v5396_v55 = vpop.eup %4608  ;;  %v5399_v56 = vsub.f32 %v5330_v63, %v769_v49  ;;  %v5409_v63 = vadd.f32 1e-05, %v861_v59 }
 0x13f   : > { %v4611_v57 = vpop.eup %4610  ;;  %v5402_v60 = vadd.f32 1e-05, %v859_v53  ;;  %v894_v62 = vmul.f32 %v4607_v35, %v893_v50  ;;  %v920_v0 = vmul.f32 %v5396_v55, %v5385_v37  ;;  %vm926_vm10 = vweird.f32 %v5396_v55 }
 0x140   : > { %v900_v61 = vmul.f32 %v4611_v57, %v874_v40  ;;  %v801_v3 = vmul.f32 %v5399_v56, %v5399_v56  ;;  %vm906_vm6 = vweird.f32 %v4611_v57  ;;  %vm5490_vm13 = vmor %vm925_vm9, %vm926_vm10  ;;  %vm935_vm2 = vweird.f32 %v5409_v63 }
 0x141   : > { %4612 = vrsqrt.f32 %v5402_v60  ;;  %v898_v17 = vsel %vm5411_vm5, %v4607_v35, %v894_v62  ;;  %v921_v18 = vmul.f32 %v5396_v55, %v920_v0  ;;  %vm907_vm8 = vmor %vm905_vm7, %vm906_vm6  ;;  %vm915_vm12 = vweird.f32 %v5402_v60 }
 0x142   : > { %v901_v2 = vmul.f32 %v4611_v57, %v900_v61  ;;  %v833_v13 = vsel %vm705_vm1, %v801_v3, 0.0  ;;  %4614 = vrsqrt.f32 %v5409_v63 }
 0x143   : > { %v741_v4 = vpop.xlane.xlu2 %740  ;;  %v826_v5 = vpop.xlane.xlu0 %825  ;;  %834 = vadd.xlane.f32.xlu1 %v833_v13  ;;  %v922_v31 = vmul.f32 0.5, %v921_v18 }
 0x144   : > { %v902_v7 = vmul.f32 0.5, %v901_v2  ;;  %v772_v11 = vmul.f32 %v5295_v36, %v741_v4  ;;  %v735_v12 = vpop.xlane.xlu1 %734  ;;  %v862_v14 = vmul.f32 %v826_v5, %v5295_v36 }
 0x145   : > { %v770_v19 = vmul.f32 %v5295_v36, %v735_v12  ;;  %v923_v50 = vsub.f32 1.5, %v922_v31 }
 0x146   : > { %v903_v21 = vsub.f32 1.5, %v902_v7  ;;  %v5423_v23 = vsub.f32 %v5344_v8, %v772_v11  ;;  %v5425_v24 = vadd.f32 1e-05, %v862_v14  ;;  %v1049_v8 = vmul.f32 %v898_v17, %v5298_v41 }
 0x147   : > { %v5427_v25 = vpop.eup %4612  ;;  %v5431_v26 = vsub.f32 %v5347_v9, %v770_v19  ;;  %v751_v41 = vsel %vm705_vm1, %v5434_v27, 0.0  ;;  %v924_v4 = vmul.f32 %v5396_v55, %v923_v50 }
 0x148   : > { %v904_v28 = vmul.f32 %v4611_v57, %v903_v21  ;;  %v910_v29 = vmul.f32 %v5427_v25, %v5402_v60  ;;  %4616 = vrsqrt.f32 %v5425_v24  ;;  %v804_v9 = vmul.f32 %v5423_v23, %v5423_v23  ;;  %v5468_v49 = vpop.eup %4614 }
 0x149   : > { %v802_v34 = vmul.f32 %v5431_v26, %v5431_v26  ;;  %v1068_v47 = vmul.f32 %v5445_v30, %v1049_v8  ;;  %vm916_vm11 = vweird.f32 %v5427_v25  ;;  %v930_v5 = vmul.f32 %v5468_v49, %v5409_v63 }
 0x14a   : > { %v908_v32 = vsel %vm907_vm8, %v4611_v57, %v904_v28  ;;  %v911_v33 = vmul.f32 %v5427_v25, %v910_v29  ;;  %v842_v39 = vsel %vm705_vm1, %v804_v9, 0.0  ;;  %vm917_vm14 = vmor %vm915_vm12, %vm916_vm11  ;;  %v928_v18 = vsel %vm5490_vm13, %v5396_v55, %v924_v4 }
 0x14b   : > { %v744_v35 = vpop.xlane.xlu2 %743  ;;  %v5455_v40 = vpop.xlane.xlu0 %828  ;;  %v1050_v42 = vmul.f32 %v908_v32, %v5312_v52  ;;  %843 = vadd.xlane.f32.xlu0 %v842_v39  ;;  %v836_v45 = vsel %vm705_vm1, %v802_v34, 0.0  ;;  %752 = vadd.xlane.f32.xlu1 %v751_v41  ;;  %v1087_v37 = vadd.f32 %v5466_v48, %v1068_v47  ;;  %v931_v19 = vmul.f32 %v5468_v49, %v930_v5 }
 0x14c   : > { %v912_v43 = vmul.f32 0.5, %v911_v33  ;;  %v773_v44 = vmul.f32 %v5295_v36, %v744_v35  ;;  %v738_v46 = vpop.xlane.xlu1 %737  ;;  %837 = vadd.xlane.f32.xlu2 %v836_v45  ;;  %v1052_v8 = vmul.f32 %v928_v18, %v5310_v51  ;;  %vm945_vm15 = vweird.f32 %v5425_v24 }
 0x14d   : > { %v771_v52 = vmul.f32 %v5295_v36, %v738_v46  ;;  %v1069_v53 = vmul.f32 %v5445_v30, %v1050_v42  ;;  %v932_v31 = vmul.f32 0.5, %v931_v19  ;;  %vm936_vm3 = vweird.f32 %v5468_v49 }
 0x14e   : > { %v5472_v57 = vpop.eup %4616  ;;  %v913_v59 = vsub.f32 1.5, %v912_v43  ;;  %v5477_v61 = vsub.f32 %v5359_v15, %v773_v44  ;;  %vm937_vm5 = vmor %vm935_vm2, %vm936_vm3 }
 0x14f   : > { %v940_v62 = vmul.f32 %v5472_v57, %v5425_v24  ;;  %v5483_v0 = vsub.f32 %v5362_v16, %v771_v52  ;;  %v1088_v3 = vadd.f32 %v5466_v48, %v1069_v53  ;;  %v933_v41 = vsub.f32 1.5, %v932_v31 }
 0x150   : > { %v914_v2 = vmul.f32 %v5427_v25, %v913_v59  ;;  %v805_v6 = vmul.f32 %v5477_v61, %v5477_v61  ;;  %vm946_vm0 = vweird.f32 %v5472_v57 }
 0x151   : > { %v803_v16 = vmul.f32 %v5483_v0, %v5483_v0  ;;  %v1103_v60 = vpack.c.bf16 %v1088_v3, %v1087_v37  ;;  %v941_v11 = vmul.f32 %v5472_v57, %v940_v62  ;;  %vm947_vm4 = vmor %vm945_vm15, %vm946_vm0  ;;  %v934_v42 = vmul.f32 %v5468_v49, %v933_v41 }
 0x152   : > { %v918_v7 = vsel %vm917_vm14, %v5427_v25, %v914_v2  ;;  %v845_v13 = vsel %vm705_vm1, %v805_v6, 0.0 }
 0x153   : > { %v839_v12 = vsel %vm705_vm1, %v803_v16, 0.0  ;;  %v747_v14 = vpop.xlane.xlu0 %746  ;;  %4348 = vmatmul.msk.bf16.vlgmr.msra.gmra.mxu0 %vm705_vm1, %v1103_v60  ;;  %846 = vadd.xlane.f32.xlu1 %v845_v13  ;;  %v1051_v25 = vmul.f32 %v918_v7, %v5322_v58  ;;  %v942_v28 = vmul.f32 0.5, %v941_v11  ;;  %v938_v63 = vsel %vm937_vm5, %v5468_v49, %v934_v42 }
 0x154   : > { %v774_v17 = vmul.f32 %v5295_v36, %v747_v14  ;;  %840 = vadd.xlane.f32.xlu2 %v839_v12  ;;  %v1053_v46 = vmul.f32 %v938_v63, %v5314_v54 }
 0x155   : > { %v1070_v55 = vmul.f32 %v5445_v30, %v1051_v25  ;;  %v943_v32 = vsub.f32 1.5, %v942_v28 }
 0x156   : > { %v5511_v21 = vsub.f32 %v5370_v20, %v774_v17  ;;  %v1071_v20 = vmul.f32 %v5445_v30, %v1052_v8  ;;  %v1072_v50 = vmul.f32 %v5445_v30, %v1053_v46 }
 0x157   : > { %v1089_v51 = vadd.f32 %v5466_v48, %v1070_v55  ;;  %v944_v35 = vmul.f32 %v5472_v57, %v943_v32 }
 0x158   : > { %v806_v29 = vmul.f32 %v5511_v21, %v5511_v21  ;;  %v1090_v39 = vadd.f32 %v5466_v48, %v1071_v20  ;;  %v1091_v53 = vadd.f32 %v5466_v48, %v1072_v50 }
 0x159   : > { %v948_v44 = vsel %vm947_vm4, %v5472_v57, %v944_v35  ;;  %v863_v57 = vmul.f32 %v5455_v40, %v5295_v36 }
 0x15a   : > { %v848_v9 = vsel %vm705_vm1, %v806_v29, 0.0  ;;  %v1104_v43 = vpack.c.bf16 %v1090_v39, %v1089_v51  ;;  %v1054_v45 = vmul.f32 %v948_v44, %v5334_v1 }
 0x15b   : > { %v750_v33 = vpop.xlane.xlu0 %749  ;;  %v879_v62 = vadd.f32 1e-05, %v863_v57 }
 0x15c   : > { %v775_v34 = vmul.f32 %v5295_v36, %v750_v33  ;;  %849 = vadd.xlane.f32.xlu2 %v848_v9  ;;  %v1073_v47 = vmul.f32 %v5445_v30, %v1054_v45 }
 0x15d   : > { %4618 = vrsqrt.f32 %v879_v62  ;;  %vm955_vm6 = vweird.f32 %v879_v62 }
 0x15e   : > { %v5524_v58 = vsub.f32 %v5375_v22, %v775_v34  ;;  %v1092_v52 = vadd.f32 %v5466_v48, %v1073_v47 }
 0x160   : > { %v807_v24 = vmul.f32 %v5524_v58, %v5524_v58  ;;  %v1105_v59 = vpack.c.bf16 %v1092_v52, %v1091_v53 }
 0x162   : > { %v851_v22 = vsel %vm705_vm1, %v807_v24, 0.0 }
 0x163   : > { %852 = vadd.xlane.f32.xlu0 %v851_v22  ;;  %4349 = vmatmul.msk.bf16.gmra.mxu0 %vm705_vm1, %v1104_v43  ;;  %v4619_v49 = vpop.eup %4618 }
 0x164   : > { %v950_v1 = vmul.f32 %v4619_v49, %v879_v62  ;;  %vm956_vm7 = vweird.f32 %v4619_v49 }
 0x165   : > { %vm5549_vm8 = vmor %vm955_vm6, %vm956_vm7 }
 0x166   : > { %v951_v54 = vmul.f32 %v4619_v49, %v950_v1 }
 0x168   : > { %v952_v4 = vmul.f32 0.5, %v951_v54 }
 0x16a   : > { %v953_v15 = vsub.f32 1.5, %v952_v4 }
 0x16c   : > { %v954_v40 = vmul.f32 %v4619_v49, %v953_v15 }
 0x16e   : > { %v958_v14 = vsel %vm5549_vm8, %v4619_v49, %v954_v40 }
 0x16f   : > { %v1055_v55 = vmul.f32 %v958_v14, %v5349_v10 }
 0x171   : > { %v1074_v24 = vmul.f32 %v5445_v30, %v1055_v55 }
 0x173   : > { %4350 = vmatmul.msk.bf16.gmra.mxu0 %vm705_vm1, %v1105_v59  ;;  %v1093_v46 = vadd.f32 %v5466_v48, %v1074_v24 }
 0x1ae   : > { %v832_v2 = vpop.xlane.xlu1 %831 }
 0x1af   : > { %v864_v37 = vmul.f32 %v832_v2, %v5295_v36 }
 0x1b1   : > { %v880_v3 = vadd.f32 1e-05, %v864_v37 }
 0x1b3   : > { %4620 = vrsqrt.f32 %v880_v3  ;;  %vm965_vm10 = vweird.f32 %v880_v3 }
 0x1b6   : > { %v835_v5 = vpop.xlane.xlu1 %834 }
 0x1b7   : > { %v865_v6 = vmul.f32 %v835_v5, %v5295_v36 }
 0x1b9   : > { %v4621_v16 = vpop.eup %4620  ;;  %v881_v7 = vadd.f32 1e-05, %v865_v6 }
 0x1ba   : > { %v960_v60 = vmul.f32 %v4621_v16, %v880_v3  ;;  %vm966_vm9 = vweird.f32 %v4621_v16 }
 0x1bb   : > { %4622 = vrsqrt.f32 %v881_v7  ;;  %vm967_vm11 = vmor %vm965_vm10, %vm966_vm9  ;;  %vm975_vm12 = vweird.f32 %v881_v7 }
 0x1bc   : > { %v961_v12 = vmul.f32 %v4621_v16, %v960_v60 }
 0x1be   : > { %v962_v13 = vmul.f32 0.5, %v961_v12  ;;  %v844_v17 = vpop.xlane.xlu0 %843  ;;  %v753_v25 = vpop.xlane.xlu1 %752 }
 0x1bf   : > { %v838_v19 = vpop.xlane.xlu2 %837  ;;  %v868_v28 = vmul.f32 %v844_v17, %v5295_v36  ;;  %v776_v8 = vmul.f32 %v5295_v36, %v753_v25 }
 0x1c0   : > { %v963_v18 = vsub.f32 1.5, %v962_v13  ;;  %v866_v29 = vmul.f32 %v838_v19, %v5295_v36 }
 0x1c1   : > { %v5558_v9 = vadd.f32 1e-05, %v868_v28  ;;  %v4623_v32 = vpop.eup %4622  ;;  %v5562_v34 = vsub.f32 %v5434_v27, %v776_v8 }
 0x1c2   : > { %v964_v31 = vmul.f32 %v4621_v16, %v963_v18  ;;  %v882_v33 = vadd.f32 1e-05, %v866_v29  ;;  %v970_v41 = vmul.f32 %v4623_v32, %v881_v7  ;;  %vm976_vm13 = vweird.f32 %v4623_v32 }
 0x1c3   : > { %4624 = vrsqrt.f32 %v5558_v9  ;;  %v808_v51 = vmul.f32 %v5562_v34, %v5562_v34  ;;  %vm977_vm14 = vmor %vm975_vm12, %vm976_vm13  ;;  %vm1005_vm3 = vweird.f32 %v5558_v9 }
 0x1c4   : > { %v968_v20 = vsel %vm967_vm11, %v4621_v16, %v964_v31  ;;  %4626 = vrsqrt.f32 %v882_v33  ;;  %v971_v35 = vmul.f32 %v4623_v32, %v970_v41  ;;  %vm985_vm0 = vweird.f32 %v882_v33 }
 0x1c5   : > { %v1056_v39 = vmul.f32 %v968_v20, %v5388_v38  ;;  %v854_v10 = vsel %vm705_vm1, %v808_v51, 0.0 }
 0x1c6   : > { %v972_v42 = vmul.f32 0.5, %v971_v35  ;;  %855 = vadd.xlane.f32.xlu1 %v854_v10  ;;  %v847_v27 = vpop.xlane.xlu1 %846 }
 0x1c7   : > { %v841_v43 = vpop.xlane.xlu2 %840  ;;  %v1075_v22 = vmul.f32 %v5445_v30, %v1056_v39  ;;  %v869_v52 = vmul.f32 %v847_v27, %v5295_v36 }
 0x1c8   : > { %v867_v44 = vmul.f32 %v841_v43, %v5295_v36  ;;  %v973_v45 = vsub.f32 1.5, %v972_v42 }
 0x1c9   : > { %v5572_v63 = vpop.eup %4624  ;;  %v1094_v47 = vadd.f32 %v5466_v48, %v1075_v22  ;;  %v5580_v1 = vadd.f32 1e-05, %v869_v52 }
 0x1ca   : > { %v4627_v38 = vpop.eup %4626  ;;  %v883_v50 = vadd.f32 1e-05, %v867_v44  ;;  %v974_v53 = vmul.f32 %v4623_v32, %v973_v45  ;;  %v1000_v57 = vmul.f32 %v5572_v63, %v5558_v9  ;;  %vm1006_vm4 = vweird.f32 %v5572_v63 }
 0x1cb   : > { %v980_v59 = vmul.f32 %v4627_v38, %v882_v33  ;;  %v1106_v62 = vpack.c.bf16 %v1094_v47, %v1093_v46  ;;  %vm986_vm15 = vweird.f32 %v4627_v38  ;;  %vm1007_vm7 = vmor %vm1005_vm3, %vm1006_vm4  ;;  %vm1015_vm11 = vweird.f32 %v5580_v1 }
 0x1cc   : > { %4628 = vrsqrt.f32 %v883_v50  ;;  %v978_v2 = vsel %vm977_vm14, %v4623_v32, %v974_v53  ;;  %v1001_v37 = vmul.f32 %v5572_v63, %v1000_v57  ;;  %vm987_vm2 = vmor %vm985_vm0, %vm986_vm15  ;;  %vm995_vm5 = vweird.f32 %v883_v50 }
 0x1cd   : > { %v981_v49 = vmul.f32 %v4627_v38, %v980_v59  ;;  %4351 = vmatmul.msk.bf16.gmra.mxu0 %vm705_vm1, %v1106_v62  ;;  %4630 = vrsqrt.f32 %v5580_v1  ;;  %v1057_v6 = vmul.f32 %v978_v2, %v5399_v56 }
 0x1ce   : > { %v1002_v40 = vmul.f32 0.5, %v1001_v37 }
 0x1cf   : > { %v982_v54 = vmul.f32 0.5, %v981_v49  ;;  %v850_v3 = vpop.xlane.xlu2 %849  ;;  %v1076_v14 = vmul.f32 %v5445_v30, %v1057_v6 }
 0x1d0   : > { %v870_v4 = vmul.f32 %v850_v3, %v5295_v36  ;;  %v1003_v17 = vsub.f32 1.5, %v1002_v40  ;;  %v5612_v49 = vpop.f32.mrf.mxu0 }
 0x1d1   : > { %v983_v15 = vsub.f32 1.5, %v982_v54  ;;  %v1095_v29 = vadd.f32 %v5466_v48, %v1076_v14 }
 0x1d2   : > { %v4629_v5 = vpop.eup %4628  ;;  %v886_v16 = vadd.f32 1e-05, %v870_v4 }
 0x1d3   : > { %v984_v60 = vmul.f32 %v4627_v38, %v983_v15  ;;  %v990_v7 = vmul.f32 %v4629_v5, %v883_v50  ;;  %v4631_v19 = vpop.eup %4630  ;;  %vm996_vm6 = vweird.f32 %v4629_v5 }
 0x1d4   : > { %4632 = vrsqrt.f32 %v886_v16  ;;  %v1010_v55 = vmul.f32 %v4631_v19, %v5580_v1  ;;  %vm997_vm8 = vmor %vm995_vm5, %vm996_vm6  ;;  %vm1025_vm9 = vweird.f32 %v886_v16  ;;  %vm1016_vm12 = vweird.f32 %v4631_v19 }
 0x1d5   : > { %v988_v11 = vsel %vm987_vm2, %v4627_v38, %v984_v60  ;;  %v991_v12 = vmul.f32 %v4629_v5, %v990_v7  ;;  %vm1017_vm14 = vmor %vm1015_vm11, %vm1016_vm12  ;;  %vm1276_vm6 = vcmask 64512   ;;  %vm2968_vm11 = vcmask 257216  }
 0x1d6   : > { %v1058_v13 = vmul.f32 %v988_v11, %v5431_v26  ;;  %v1004_v26 = vmul.f32 %v5572_v63, %v1003_v17  ;;  %v1011_v51 = vmul.f32 %v4631_v19, %v1010_v55  ;;  %v853_v2 = vpop.xlane.xlu0 %852 }
 0x1d7   : > { %v992_v18 = vmul.f32 0.5, %v991_v12 }
 0x1d8   : > { %v1077_v56 = vmul.f32 %v5445_v30, %v1058_v13  ;;  %v1008_v41 = vsel %vm1007_vm7, %v5572_v63, %v1004_v26  ;;  %v1012_v10 = vmul.f32 0.5, %v1011_v51  ;;  %v5614_v1 = vpop.f32.mrf.mxu0 }
 0x1d9   : > { %v993_v25 = vsub.f32 1.5, %v992_v18  ;;  %v1060_v24 = vmul.f32 %v1008_v41, %v5423_v23 }
 0x1da   : > { %v4633_v28 = vpop.eup %4632  ;;  %v1096_v8 = vadd.f32 %v5466_v48, %v1077_v56  ;;  %v1013_v22 = vsub.f32 1.5, %v1012_v10 }
 0x1db   : > { %v994_v31 = vmul.f32 %v4629_v5, %v993_v25  ;;  %v1020_v32 = vmul.f32 %v4633_v28, %v886_v16  ;;  %v1079_v27 = vmul.f32 %v5445_v30, %v1060_v24  ;;  %vm1026_vm10 = vweird.f32 %v4633_v28 }
 0x1dc   : > { %v1107_v9 = vpack.c.bf16 %v1096_v8, %v1095_v29  ;;  %vm1027_vm13 = vmor %vm1025_vm9, %vm1026_vm10  ;;  %v1014_v45 = vmul.f32 %v4631_v19, %v1013_v22  ;;  %vm2066_vm9 = vcmask 126016   ;;  %vm2517_vm10 = vcmask 191616  }
 0x1dd   : > { %v998_v33 = vsel %vm997_vm8, %v4629_v5, %v994_v31  ;;  %v1021_v20 = vmul.f32 %v4633_v28, %v1020_v32  ;;  %vm1615_vm8 = vcmask 60416  }
 0x1de   : > { %4352 = vmatmul.msk.bf16.gmra.mxu0 %vm705_vm1, %v1107_v9  ;;  %v1059_v35 = vmul.f32 %v998_v33, %v5483_v0  ;;  %v1098_v0 = vadd.f32 %v5466_v48, %v1079_v27  ;;  %v1018_v47 = vsel %vm1017_vm14, %v4631_v19, %v1014_v45 }
 0x1df   : > { %v1022_v39 = vmul.f32 0.5, %v1021_v20  ;;  %v1061_v50 = vmul.f32 %v1018_v47, %v5477_v61  ;;  %v871_v61 = vmul.f32 %v853_v2, %v5295_v36 }
 0x1e0   : > { %v1078_v42 = vmul.f32 %v5445_v30, %v1059_v35  ;;  %v5616_v54 = vpop.f32.mrf.mxu0 }
 0x1e1   : > { %v1023_v43 = vsub.f32 1.5, %v1022_v39  ;;  %v1080_v53 = vmul.f32 %v5445_v30, %v1061_v50 }
 0x1e2   : > { %v1097_v44 = vadd.f32 %v5466_v48, %v1078_v42 }
 0x1e3   : > { %v1024_v63 = vmul.f32 %v4633_v28, %v1023_v43  ;;  %v1099_v57 = vadd.f32 %v5466_v48, %v1080_v53 }
 0x1e4   : > { %v1108_v23 = vpack.c.bf16 %v1098_v0, %v1097_v44 }
 0x1e5   : > { %v1028_v46 = vsel %vm1027_vm13, %v4633_v28, %v1024_v63 }
 0x1e6   : > { %v1062_v38 = vmul.f32 %v1028_v46, %v5511_v21  ;;  %v887_v21 = vadd.f32 1e-05, %v871_v61 }
 0x1e8   : > { %v1081_v52 = vmul.f32 %v5445_v30, %v1062_v38  ;;  %4634 = vrsqrt.f32 %v887_v21  ;;  %v1171_v37 = vpop.f32.mrf.mxu0  ;;  %vm1035_vm15 = vweird.f32 %v887_v21 }
 0x1ea   : > { %v1100_v59 = vadd.f32 %v5466_v48, %v1081_v52 }
 0x1ec   : > { %v1109_v62 = vpack.c.bf16 %v1100_v59, %v1099_v57 }
 0x1ee   : > { %4353 = vmatmul.msk.bf16.gmra.mxu0 %vm705_vm1, %v1108_v23  ;;  %v4635_v3 = vpop.eup %4634 }
 0x1ef   : > { %v1030_v4 = vmul.f32 %v4635_v3, %v887_v21  ;;  %vm1036_vm0 = vweird.f32 %v4635_v3 }
 0x1f0   : > { %v1174_v15 = vpop.f32.mrf.mxu0  ;;  %vm1037_vm2 = vmor %vm1035_vm15, %vm1036_vm0 }
 0x1f1   : > { %v1031_v5 = vmul.f32 %v4635_v3, %v1030_v4 }
 0x1f3   : > { %v1032_v40 = vmul.f32 0.5, %v1031_v5 }
 0x1f5   : > { %v1033_v7 = vsub.f32 1.5, %v1032_v40 }
 0x1f7   : > { %v1034_v13 = vmul.f32 %v4635_v3, %v1033_v7 }
 0x1f8   : > { %v1176_v11 = vpop.f32.mrf.mxu0 }
 0x1f9   : > { %v1038_v18 = vsel %vm1037_vm2, %v4635_v3, %v1034_v13 }
 0x1fa   : > { %v1063_v28 = vmul.f32 %v1038_v18, %v5524_v58  ;;  %v5632_v58 = vld [vmem:[%s7452_s27] ss:$0 sm:$0xff]  ;;  %s5060_s27 = smov 24  }
 0x1fb   : > { %v1177_v39 = vadd.f32 %v5632_v58, %v1176_v11  ;;  %v1172_v50 = vadd.f32 %v5632_v58, %v1171_v37  ;;  %v1170_v59 = vadd.f32 %v5632_v58, %v5616_v54 }
 0x1fc   : > { %v1082_v31 = vmul.f32 %v5445_v30, %v1063_v28 }
 0x1fd   : > { %v1209_v43 = vpack.c.bf16 %v1177_v39, %v1177_v39  ;;  %v1207_v61 = vpack.c.bf16 %v1172_v50, %v1172_v50 }
 0x1fe   : > { %4354 = vmatmul.msk.bf16.gmra.mxu0 %vm705_vm1, %v1109_v62  ;;  %v1101_v9 = vadd.f32 %v5466_v48, %v1082_v31 }
 0x1ff   : > { %v1241_v63 = vunpack.c.l.b16 %v1209_v43  ;;  %v1239_v37 = vunpack.c.l.b16 %v1207_v61 }
 0x239   : > { %v856_v16 = vpop.xlane.xlu1 %855 }
 0x23a   : > { %v872_v6 = vmul.f32 %v856_v16, %v5295_v36 }
 0x23c   : > { %v888_v60 = vadd.f32 1e-05, %v872_v6 }
 0x23e   : > { %4636 = vrsqrt.f32 %v888_v60  ;;  %vm1045_vm3 = vweird.f32 %v888_v60 }
 0x244   : > { %v4637_v12 = vpop.eup %4636 }
 0x245   : > { %v1040_v14 = vmul.f32 %v4637_v12, %v888_v60  ;;  %vm1046_vm4 = vweird.f32 %v4637_v12 }
 0x246   : > { %vm1047_vm5 = vmor %vm1045_vm3, %vm1046_vm4 }
 0x247   : > { %v1041_v17 = vmul.f32 %v4637_v12, %v1040_v14 }
 0x249   : > { %v1042_v19 = vmul.f32 0.5, %v1041_v17 }
 0x24a   : > { %v1179_v56 = vpop.f32.mrf.mxu0 }
 0x24b   : > { %v1043_v25 = vsub.f32 1.5, %v1042_v19  ;;  %v1180_v57 = vadd.f32 %v5632_v58, %v1179_v56  ;;  %v1167_v56 = vadd.f32 %v5632_v58, %v5614_v1 }
 0x24d   : > { %v1044_v29 = vmul.f32 %v4637_v12, %v1043_v25  ;;  %v1210_v5 = vpack.c.bf16 %v1180_v57, %v1180_v57  ;;  %v1165_v25 = vadd.f32 %v5632_v58, %v5612_v49  ;;  %v1205_v28 = vpack.c.bf16 %v1167_v56, %v1167_v56 }
 0x24f   : > { %v1048_v8 = vsel %vm1047_vm5, %v4637_v12, %v1044_v29  ;;  %v1242_v6 = vunpack.c.l.b16 %v1210_v5  ;;  %v1204_v29 = vpack.c.bf16 %v1165_v25, %v1165_v25 }
 0x250   : > { %v1064_v26 = vmul.f32 %v1048_v8, %v5562_v34  ;;  %v1237_v8 = vunpack.c.l.b16 %v1205_v28 }
 0x252   : > { %v1181_v55 = vpop.f32.mrf.mxu0  ;;  %v1083_v32 = vmul.f32 %v5445_v30, %v1064_v26  ;;  %v1236_v26 = vunpack.c.l.b16 %v1204_v29 }
 0x253   : > { %v1182_v52 = vadd.f32 %v5632_v58, %v1181_v55 }
 0x254   : > { %v1102_v33 = vadd.f32 %v5466_v48, %v1083_v32  ;;  %v1175_v48 = vadd.f32 %v5632_v58, %v1174_v15  ;;  %v1206_v15 = vpack.c.bf16 %v1170_v59, %v1170_v59  ;;  %v5683_v31 = vpack.c.b16 %v1237_v8, %v1236_v26 }
 0x255   : > { %v1211_v21 = vpack.c.bf16 %v1182_v52, %v1182_v52 }
 0x256   : > { %v1110_v20 = vpack.c.bf16 %v1102_v33, %v1101_v9  ;;  %v1208_v44 = vpack.c.bf16 %v1175_v48, %v1175_v48  ;;  %v1238_v16 = vunpack.c.l.b16 %v1206_v15  ;;  %7454 = vst [vmem:[#allocation12_spill] sm:$0xff] %v5683_v31 }
 0x257   : > { %v1243_v54 = vunpack.c.l.b16 %v1211_v21 }
 0x258   : > { %4355 = vmatmul.msk.bf16.gmra.mxu0 %vm705_vm1, %v1110_v20  ;;  %v1240_v0 = vunpack.c.l.b16 %v1208_v44  ;;  %v5660_v40 = vpack.c.b16 %v1239_v37, %v1238_v16 }
 0x259   : > { %v5662_v7 = vpack.c.b16 %v1243_v54, %v1242_v6 }
 0x25a   : > { %v5643_v23 = vpack.c.b16 %v1241_v63, %v1240_v0  ;;  %7453 = vst [vmem:[#allocation11_spill] sm:$0xff] %v5660_v40 }
 0x25b   : > { %v1184_v41 = vpop.f32.mrf.mxu0 }
 0x25c   : > { %v1185_v34 = vadd.f32 %v5632_v58, %v1184_v41 }
 0x25e   : > { %v1212_v35 = vpack.c.bf16 %v1185_v34, %v1185_v34 }
 0x260   : > { %v1244_v10 = vunpack.c.l.b16 %v1212_v35 }
 0x263   : > { %v1186_v51 = vpop.f32.mrf.mxu0 }
 0x264   : > { %v1187_v30 = vadd.f32 %v5632_v58, %v1186_v51 }
 0x266   : > { %v1213_v24 = vpack.c.bf16 %v1187_v30, %v1187_v30 }
 0x268   : > { %v1245_v42 = vunpack.c.l.b16 %v1213_v24 }
 0x26a   : > { %v5638_v27 = vpack.c.b16 %v1245_v42, %v1244_v10 }
 0x26b   : > { %v1189_v22 = vpop.f32.mrf.mxu0 }
 0x26c   : > { %1268 = vrot.lane.b32.xlu2 %v5638_v27, %s5047_s28  ;;  %v1190_v45 = vadd.f32 %v5632_v58, %v1189_v22 }
 0x26e   : > { %v1214_v47 = vpack.c.bf16 %v1190_v45, %v1190_v45 }
 0x270   : > { %v1246_v62 = vunpack.c.l.b16 %v1214_v47 }
 0x273   : > { %v1191_v46 = vpop.f32.mrf.mxu0 }
 0x274   : > { %v1192_v38 = vadd.f32 %v5632_v58, %v1191_v46  ;;  %1264 = vrot.lane.b32.xlu2 %v5643_v23, %s5047_s28 }
 0x276   : > { %v1215_v53 = vpack.c.bf16 %v1192_v38, %v1192_v38 }
 0x278   : > { %v1247_v2 = vunpack.c.l.b16 %v1215_v53 }
 0x27a   : > { %v5653_v3 = vpack.c.b16 %v1247_v2, %v1246_v62 }
 0x27b   : > { %v1194_v4 = vpop.f32.mrf.mxu0 }
 0x27c   : > { %1656 = vrot.lane.b32.xlu2 %v5638_v27, %s5048_s30  ;;  %1270 = vrot.lane.b32.xlu1 %v5653_v3, %s5047_s28  ;;  %v1195_v60 = vadd.f32 %v5632_v58, %v1194_v4 }
 0x27e   : > { %v1216_v12 = vpack.c.bf16 %v1195_v60, %v1195_v60 }
 0x280   : > { %v1248_v17 = vunpack.c.l.b16 %v1216_v12 }
 0x283   : > { %v1196_v11 = vpop.f32.mrf.mxu0 }
 0x284   : > { %v1197_v13 = vadd.f32 %v5632_v58, %v1196_v11  ;;  %1654 = vrot.lane.b32.xlu2 %v5662_v7, %s5048_s30  ;;  %1262 = vrot.lane.b32.xlu1 %v5660_v40, %s5047_s28 }
 0x286   : > { %v1217_v14 = vpack.c.bf16 %v1197_v13, %v1197_v13 }
 0x288   : > { %v1249_v18 = vunpack.c.l.b16 %v1217_v14 }
 0x28a   : > { %v5669_v19 = vpack.c.b16 %v1249_v18, %v1248_v17 }
 0x28c   : > { %1272 = vrot.lane.b32.xlu0 %v5669_v19, %s5047_s28  ;;  %1658 = vrot.lane.b32.xlu1 %v5653_v3, %s5048_s30 }
 0x294   : > { %1266 = vrot.lane.b32.xlu0 %v5662_v7, %s5047_s28  ;;  %1532 = vrot.lane.b32.xlu1 %v5662_v7, %s5049_s25 }
 0x29c   : > { %1260 = vrot.lane.b32.xlu0 %v5683_v31, %s5047_s28  ;;  %1650 = vrot.lane.b32.xlu1 %v5660_v40, %s5048_s30 }
 0x2a4   : > { %1660 = vrot.lane.b32.xlu0 %v5669_v19, %s5048_s30  ;;  %1632 = vrot.lane.b32.xlu1 %v5683_v31, %s5050_s5 }
 0x2ac   : > { %1652 = vrot.lane.b32.xlu0 %v5643_v23, %s5048_s30  ;;  %1636 = vrot.lane.b32.xlu1 %v5643_v23, %s5050_s5 }
 0x2b4   : > { %1528 = vrot.lane.b32.xlu0 %v5660_v40, %s5049_s25  ;;  %2111 = vrot.lane.b32.xlu1 %v5669_v19, %s5051_s29 }
 0x2bc   : > { %1648 = vrot.lane.b32.xlu0 %v5683_v31, %s5048_s30  ;;  %2560 = vrot.lane.b32.xlu1 %v5653_v3, %s5052_s16 }
 0x2c4   : > { %1638 = vrot.lane.b32.xlu0 %v5662_v7, %s5050_s5  ;;  %2107 = vrot.lane.b32.xlu1 %v5638_v27, %s5051_s29 }
 0x2c6   : > { %v1269_v39 = vpop.permute.xlu2 %1268 }
 0x2c7   : > { %v1314_v2 = vsel %vm1276_vm6, %v1269_v39, 0 }
 0x2cc   : > { %2558 = vrot.lane.b32.xlu0 %v5638_v27, %s5052_s16  ;;  %2105 = vrot.lane.b32.xlu1 %v5662_v7, %s5051_s29 }
 0x2ce   : > { %v1265_v48 = vpop.permute.xlu2 %1264 }
 0x2cf   : > { %v1308_v54 = vsel %vm1276_vm6, %v1265_v48, 0 }
 0x2d4   : > { %2083 = vrot.lane.b32.xlu0 %v5683_v31, %s5053_s0  ;;  %1644 = vrot.lane.b32.xlu1 %v5669_v19, %s5050_s5 }
 0x2d5   : > { %v1199_v49 = vpop.f32.mrf.mxu0 }
 0x2d6   : > { %v1200_v1 = vadd.f32 %v5632_v58, %v1199_v49  ;;  %v5783_v43 = vpop.permute.xlu2 %1656 }
 0x2d8   : > { %v1218_v32 = vpack.c.bf16 %v1200_v1, %v1200_v1 }
 0x2da   : > { %v1250_v20 = vunpack.c.l.b16 %v1218_v32 }
 0x2dc   : > { %2085 = vrot.lane.b32.xlu0 %v5660_v40, %s5053_s0  ;;  %2556 = vrot.lane.b32.xlu1 %v5662_v7, %s5052_s16 }
 0x2dd   : > { %v1201_v55 = vpop.f32.mrf.mxu0 }
 0x2de   : > { %v1202_v9 = vadd.f32 %v5632_v58, %v1201_v55  ;;  %v5793_v44 = vpop.permute.xlu2 %1654 }
 0x2df   : > { %v1698_v39 = vsel %vm1276_vm6, %v5793_v44, 0 }
 0x2e0   : > { %v1219_v33 = vpack.c.bf16 %v1202_v9, %v1202_v9 }
 0x2e2   : > { %v1251_v41 = vunpack.c.l.b16 %v1219_v33 }
 0x2e4   : > { %2538 = vrot.lane.b32.xlu0 %v5643_v23, %s5054_s18  ;;  %2552 = vrot.lane.b32.xlu1 %v5660_v40, %s5052_s16  ;;  %v5727_v34 = vpack.c.b16 %v1251_v41, %v1250_v20 }
 0x2e6   : > { %1274 = vrot.lane.b32.xlu2 %v5727_v34, %s5047_s28  ;;  %s5061_s28 = smov 16  }
 0x2ec   : > { %2544 = vrot.lane.b32.xlu0 %v5653_v3, %s5054_s18  ;;  %2536 = vrot.lane.b32.xlu1 %v5660_v40, %s5054_s18 }
 0x2ee   : > { %1538 = vrot.lane.b32.xlu2 %v5669_v19, %s5049_s25  ;;  %v1271_v52 = vpop.permute.xlu1 %1270 }
 0x2ef   : > { %v1317_v59 = vsel %vm1276_vm6, %v1271_v52, 0 }
 0x2f4   : > { %1925 = vrot.lane.b32.xlu0 %v5669_v19, %s5055_s20  ;;  %2089 = vrot.lane.b32.xlu1 %v5662_v7, %s5053_s0 }
 0x2f6   : > { %1536 = vrot.lane.b32.xlu2 %v5653_v3, %s5049_s25  ;;  %v1263_v21 = vpop.permute.xlu1 %1262 }
 0x2f7   : > { %v1305_v11 = vsel %vm1276_vm6, %v1263_v21, 0 }
 0x2fc   : > { %1923 = vrot.lane.b32.xlu0 %v5653_v3, %s5055_s20  ;;  %2093 = vrot.lane.b32.xlu1 %v5653_v3, %s5053_s0 }
 0x2fe   : > { %v1273_v58 = vpop.permute.xlu0 %1272  ;;  %1534 = vrot.lane.b32.xlu2 %v5638_v27, %s5049_s25  ;;  %v1659_v16 = vpop.permute.xlu1 %1658 }
 0x2ff   : > { %v1320_v38 = vsel %vm1276_vm6, %v1273_v58, 0  ;;  %v1704_v41 = vsel %vm1276_vm6, %v1659_v16, 0 }
 0x304   : > { %2095 = vrot.lane.b32.xlu0 %v5669_v19, %s5053_s0  ;;  %1919 = vrot.lane.b32.xlu1 %v5662_v7, %s5055_s20 }
 0x306   : > { %v1267_v51 = vpop.permute.xlu0 %1266  ;;  %1530 = vrot.lane.b32.xlu2 %v5643_v23, %s5049_s25  ;;  %v1533_v12 = vpop.permute.xlu1 %1532 }
 0x307   : > { %v1311_v15 = vsel %vm1276_vm6, %v1267_v51, 0 }
 0x30c   : > { %1921 = vrot.lane.b32.xlu0 %v5638_v27, %s5055_s20 }
 0x30e   : > { %v5757_v35 = vpop.permute.xlu0 %1260  ;;  %1526 = vrot.lane.b32.xlu2 %v5683_v31, %s5049_s25  ;;  %v1651_v56 = vpop.permute.xlu1 %1650 }
 0x30f   : > { %v1302_v17 = vsel %vm1276_vm6, %v5757_v35, 0  ;;  %v1701_v35 = vsel %vm1276_vm6, %v5783_v43, 0  ;;  %v1692_v52 = vsel %vm1276_vm6, %v1651_v56, 0 }
 0x314   : > { %1917 = vrot.lane.b32.xlu0 %v5643_v23, %s5055_s20 }
 0x316   : > { %v5763_v30 = vpop.permute.xlu0 %1660  ;;  %1634 = vrot.lane.b32.xlu2 %v5660_v40, %s5050_s5  ;;  %v1633_v29 = vpop.permute.xlu1 %1632 }
 0x317   : > { %v1707_v9 = vsel %vm1276_vm6, %v5763_v30, 0 }
 0x31c   : > { %1662 = vrot.lane.b32.xlu0 %v5727_v34, %s5048_s30 }
 0x31e   : > { %v5769_v24 = vpop.permute.xlu0 %1652  ;;  %1640 = vrot.lane.b32.xlu2 %v5638_v27, %s5050_s5  ;;  %v5861_v55 = vpop.permute.xlu1 %1636 }
 0x31f   : > { %v1695_v43 = vsel %vm1276_vm6, %v5769_v24, 0 }
 0x324   : > { %1540 = vrot.lane.b32.xlu0 %v5727_v34, %s5049_s25  ;;  %s7463_s25 = scalar_lea.vmem %s7403_s6, %s5166_s15 }
 0x326   : > { %v5775_v10 = vpop.permute.xlu0 %1528  ;;  %2562 = vrot.lane.b32.xlu2 %v5669_v19, %s5052_s16  ;;  %v2112_v20 = vpop.permute.xlu1 %2111 }
 0x327   : > { %v2158_v44 = vsel %vm1276_vm6, %v2112_v20, 0  ;;  %v699_v20 = vlaneseq }
 0x32c   : > { %2113 = vrot.lane.b32.xlu0 %v5727_v34, %s5051_s29 }
 0x32e   : > { %v5781_v42 = vpop.permute.xlu0 %1648  ;;  %2109 = vrot.lane.b32.xlu2 %v5653_v3, %s5051_s29  ;;  %v2561_v51 = vpop.permute.xlu1 %2560 }
 0x334   : > { %2564 = vrot.lane.b32.xlu0 %v5727_v34, %s5052_s16 }
 0x336   : > { %v5789_v22 = vpop.permute.xlu0 %1638  ;;  %1642 = vrot.lane.b32.xlu2 %v5653_v3, %s5050_s5 }
 0x33c   : > { %1646 = vrot.lane.b32.xlu0 %v5727_v34, %s5050_s5 }
 0x33e   : > { %v5797_v63 = vpop.permute.xlu0 %2558  ;;  %2103 = vrot.lane.b32.xlu2 %v5643_v23, %s5051_s29 }
 0x340   : > { %v1275_v0 = vpop.permute.xlu2 %1274 }
 0x341   : > { %v1323_v45 = vsel %vm1276_vm6, %v1275_v0, 0  ;;  %v2108_v0 = vpop.permute.xlu1 %2107 }
 0x342   : > { %1325 = vmatpush.bf16.xpose.msra.mxu1 %v1323_v45 }
 0x346   : > { %v5802_v46 = vpop.permute.xlu0 %2083  ;;  %2554 = vrot.lane.b32.xlu2 %v5643_v23, %s5052_s16 }
 0x348   : > { %v1539_v47 = vpop.permute.xlu2 %1538 }
 0x34a   : > { %1326 = vmatpush.bf16.xpose.msra.mxu1 %v1320_v38 }
 0x34e   : > { %v5807_v50 = vpop.permute.xlu0 %2085  ;;  %2101 = vrot.lane.b32.xlu2 %v5660_v40, %s5051_s29 }
 0x350   : > { %v1537_v53 = vpop.permute.xlu2 %1536 }
 0x352   : > { %1327 = vmatpush.bf16.xpose.msra.mxu1 %v1317_v59 }
 0x356   : > { %v5812_v57 = vpop.permute.xlu0 %2538  ;;  %2099 = vrot.lane.b32.xlu2 %v5683_v31, %s5051_s29  ;;  %s7465_s29 = scalar_lea.vmem %s7404_s7, %s5166_s15 }
 0x358   : > { %v1535_v62 = vpop.permute.xlu2 %1534 }
 0x35a   : > { %1328 = vmatpush.bf16.xpose.msra.mxu1 %v1314_v2  ;;  %v1689_v2 = vsel %vm1276_vm6, %v5781_v42, 0 }
 0x35e   : > { %v5817_v61 = vpop.permute.xlu0 %2544  ;;  %2550 = vrot.lane.b32.xlu2 %v5683_v31, %s5052_s16 }
 0x360   : > { %v1531_v4 = vpop.permute.xlu2 %1530 }
 0x362   : > { %1329 = vmatpush.bf16.xpose.msra.mxu1 %v1311_v15  ;;  %v2152_v15 = vsel %vm1276_vm6, %v2108_v0, 0 }
 0x366   : > { %v5822_v5 = vpop.permute.xlu0 %1925  ;;  %2534 = vrot.lane.b32.xlu2 %v5683_v31, %s5054_s18 }
 0x368   : > { %v1527_v37 = vpop.permute.xlu2 %1526 }
 0x36a   : > { %1330 = vmatpush.bf16.xpose.msra.mxu1 %v1308_v54 }
 0x36e   : > { %v5827_v6 = vpop.permute.xlu0 %1923  ;;  %2087 = vrot.lane.b32.xlu2 %v5643_v23, %s5053_s0 }
 0x370   : > { %v5831_v60 = vpop.permute.xlu2 %1634 }
 0x372   : > { %1331 = vmatpush.bf16.xpose.msra.mxu1 %v1305_v11  ;;  %v2606_v11 = vsel %vm1276_vm6, %v2561_v51, 0 }
 0x376   : > { %v5834_v13 = vpop.permute.xlu0 %2095  ;;  %2540 = vrot.lane.b32.xlu2 %v5662_v7, %s5054_s18 }
 0x378   : > { %v5838_v14 = vpop.permute.xlu2 %1640 }
 0x37a   : > { %1332 = vmatpush.bf16.xpose.msra.mxu1 %v1302_v17 }
 0x37e   : > { %v5842_v18 = vpop.permute.xlu0 %1921  ;;  %2091 = vrot.lane.b32.xlu2 %v5638_v27, %s5053_s0 }
 0x380   : > { %v5846_v25 = vpop.permute.xlu2 %2562 }
 0x381   : > { %4356 = vmatmul.msk.bf16.vlgmr.msra.gmra.mxu1 %vm1276_vm6, %v5683_v31  ;;  %v2609_v54 = vsel %vm1276_vm6, %v5846_v25, 0  ;;  %v2603_v25 = vsel %vm1276_vm6, %v5797_v63, 0 }
 0x386   : > { %v5850_v28 = vpop.permute.xlu0 %1917  ;;  %2542 = vrot.lane.b32.xlu2 %v5638_v27, %s5054_s18 }
 0x388   : > { %v2110_v8 = vpop.permute.xlu2 %2109 }
 0x389   : > { %v2155_v59 = vsel %vm1276_vm6, %v2110_v8, 0 }
 0x38e   : > { %v1663_v26 = vpop.permute.xlu0 %1662  ;;  %2546 = vrot.lane.b32.xlu2 %v5669_v19, %s5054_s18 }
 0x38f   : > { %v1710_v49 = vsel %vm1276_vm6, %v1663_v26, 0 }
 0x390   : > { %1712 = vmatpush.bf16.xpose.msra.mxu3 %v1710_v49  ;;  %v5857_v1 = vpop.permute.xlu2 %1642 }
 0x391   : > { %4357 = vmatmul.msk.bf16.gmra.mxu1 %vm1276_vm6, %v5660_v40 }
 0x396   : > { %v1541_v32 = vpop.permute.xlu0 %1540  ;;  %1927 = vrot.lane.b32.xlu2 %v5727_v34, %s5055_s20 }
 0x397   : > { %1550 = vmatpush.bf16.msra.mxu2 %v1541_v32 }
 0x398   : > { %1713 = vmatpush.bf16.xpose.msra.mxu3 %v1707_v9  ;;  %v2104_v33 = vpop.permute.xlu2 %2103 }
 0x399   : > { %v2146_v56 = vsel %vm1276_vm6, %v2104_v33, 0 }
 0x39b   : > { %1551 = vmatpush.bf16.msra.mxu2 %v1539_v47 }
 0x39e   : > { %v2114_v48 = vpop.permute.xlu0 %2113 }
 0x39f   : > { %1552 = vmatpush.bf16.msra.mxu2 %v1537_v53  ;;  %v2161_v47 = vsel %vm1276_vm6, %v2114_v48, 0 }
 0x3a0   : > { %1714 = vmatpush.bf16.xpose.msra.mxu3 %v1704_v41  ;;  %v5868_v58 = vpop.permute.xlu2 %2554  ;;  %v700_v41 = vand.u32 127, %v699_v20 }
 0x3a1   : > { %4358 = vmatmul.msk.bf16.gmra.mxu1 %vm1276_vm6, %v5643_v23  ;;  %v2597_v63 = vsel %vm1276_vm6, %v5868_v58, 0 }
 0x3a2   : > { %vm701_vm7 = vcmp.ge.s32.totalorder %v700_v41, 8 }
 0x3a3   : > { %1553 = vmatpush.bf16.msra.mxu2 %v1535_v62 }
 0x3a6   : > { %v2565_v24 = vpop.permute.xlu0 %2564 }
 0x3a7   : > { %1554 = vmatpush.bf16.msra.mxu2 %v1533_v12  ;;  %v2612_v21 = vsel %vm1276_vm6, %v2565_v24, 0 }
 0x3a8   : > { %1715 = vmatpush.bf16.xpose.msra.mxu3 %v1701_v35  ;;  %v2102_v30 = vpop.permute.xlu2 %2101 }
 0x3a9   : > { %v2143_v26 = vsel %vm1276_vm6, %v2102_v30, 0 }
 0x3ab   : > { %1555 = vmatpush.bf16.msra.mxu2 %v1531_v4 }
 0x3af   : > { %1556 = vmatpush.bf16.msra.mxu2 %v5775_v10  ;;  %v2106_v10 = vpop.permute.xlu1 %2105 }
 0x3b0   : > { %1716 = vmatpush.bf16.xpose.msra.mxu3 %v1698_v39  ;;  %v2100_v45 = vpop.permute.xlu2 %2099  ;;  %v2149_v42 = vsel %vm1276_vm6, %v2106_v10, 0 }
 0x3b1   : > { %4359 = vmatmul.msk.bf16.gmra.mxu1 %vm1276_vm6, %v5662_v7 }
 0x3b3   : > { %1557 = vmatpush.bf16.msra.mxu2 %v1527_v37 }
 0x3b7   : > { %2163 = vmatpush.bf16.xpose.msrb.mxu2 %v2161_v47  ;;  %v5891_v62 = vpop.permute.xlu1 %1644 }
 0x3b8   : > { %1717 = vmatpush.bf16.xpose.msra.mxu3 %v1695_v43  ;;  %v5882_v38 = vpop.permute.xlu2 %2550 }
 0x3b9   : > { %v2591_v39 = vsel %vm1276_vm6, %v5882_v38, 0  ;;  %v1647_v38 = vpop.permute.xlu0 %1646 }
 0x3bf   : > { %2164 = vmatpush.bf16.xpose.msrb.mxu2 %v2158_v44  ;;  %v2557_v37 = vpop.permute.xlu1 %2556 }
 0x3c0   : > { %1718 = vmatpush.bf16.xpose.msra.mxu3 %v1692_v52  ;;  %v5886_v53 = vpop.permute.xlu2 %2534  ;;  %v2600_v49 = vsel %vm1276_vm6, %v2557_v37, 0 }
 0x3c1   : > { %4360 = vmatmul.msk.bf16.gmra.mxu1 %vm1276_vm6, %v5638_v27 }
 0x3c7   : > { %2165 = vmatpush.bf16.xpose.msrb.mxu2 %v2155_v59  ;;  %v2553_v12 = vpop.permute.xlu1 %2552 }
 0x3c8   : > { %1719 = vmatpush.bf16.xpose.msra.mxu3 %v1689_v2  ;;  %v5896_v4 = vpop.permute.xlu2 %2087  ;;  %v2594_v35 = vsel %vm1276_vm6, %v2553_v12, 0 }
 0x3cf   : > { %2166 = vmatpush.bf16.xpose.msrb.mxu2 %v2152_v15  ;;  %4364 = vmatmul.msk.bf16.vlgmr.msra.gmra.mxu3 %vm1276_vm6, %v1633_v29  ;;  %v2537_v8 = vpop.permute.xlu1 %2536 }
 0x3d0   : > { %2614 = vmatpush.bf16.xpose.msrb.mxu3 %v2612_v21  ;;  %v5902_v16 = vpop.permute.xlu2 %2540 }
 0x3d1   : > { %4361 = vmatmul.msk.bf16.gmra.mxu1 %vm1276_vm6, %v5653_v3 }
 0x3d7   : > { %2167 = vmatpush.bf16.xpose.msrb.mxu2 %v2149_v42  ;;  %v5924_v9 = vpop.permute.xlu1 %2089 }
 0x3d8   : > { %2615 = vmatpush.bf16.xpose.msrb.mxu3 %v2609_v54  ;;  %v5908_v17 = vpop.permute.xlu2 %2091 }
 0x3df   : > { %2168 = vmatpush.bf16.xpose.msrb.mxu2 %v2146_v56  ;;  %4365 = vmatmul.msk.bf16.gmra.mxu3 %vm1276_vm6, %v5831_v60  ;;  %v2140_v60 = vsel %vm1276_vm6, %v2100_v45, 0  ;;  %v5933_v51 = vpop.permute.xlu1 %2093 }
 0x3e0   : > { %2616 = vmatpush.bf16.xpose.msrb.mxu3 %v2606_v11  ;;  %v5915_v29 = vpop.permute.xlu2 %2542 }
 0x3e1   : > { %4362 = vmatmul.msk.bf16.gmra.mxu1 %vm1276_vm6, %v5669_v19 }
 0x3e7   : > { %2169 = vmatpush.bf16.xpose.msrb.mxu2 %v2143_v26  ;;  %v1920_v48 = vpop.permute.xlu1 %1919 }
 0x3e8   : > { %2617 = vmatpush.bf16.xpose.msrb.mxu3 %v2603_v25  ;;  %v5921_v32 = vpop.permute.xlu2 %2546 }
 0x3ef   : > { %2170 = vmatpush.bf16.xpose.msrb.mxu2 %v2140_v60  ;;  %4366 = vmatmul.msk.bf16.gmra.mxu3 %vm1276_vm6, %v5861_v55  ;;  %v5056_v55 = vmov 0.0  }
 0x3f0   : > { %2618 = vmatpush.bf16.xpose.msrb.mxu3 %v2600_v49  ;;  %v1928_v33 = vpop.permute.xlu2 %1927  ;;  %v5937_v58 = vsel %vm701_vm7, -1e+09, %v5056_v55 }
 0x3f1   : > { %4363 = vmatmul.msk.bf16.gmra.mxu1 %vm1276_vm6, %v5727_v34  ;;  %1937 = vmatpush.bf16.msrb.mxu0 %v1928_v33 }
 0x3f5   : > { %1938 = vmatpush.bf16.msrb.mxu0 %v5822_v5 }
 0x3f8   : > { %2619 = vmatpush.bf16.xpose.msrb.mxu3 %v2597_v63 }
 0x3f9   : > { %1939 = vmatpush.bf16.msrb.mxu0 %v5827_v6 }
 0x3fd   : > { %1940 = vmatpush.bf16.msrb.mxu0 %v5842_v18 }
 0x3fe   : > { %v1334_v30 = vpop.f32.mrf.mxu1 }
 0x3ff   : > { %4367 = vmatmul.msk.bf16.gmra.mxu3 %vm1276_vm6, %v5789_v22  ;;  %v5943_v5 = vadd.f32 %v1334_v30, %v5937_v58 }
 0x400   : > { %2620 = vmatpush.bf16.xpose.msrb.mxu3 %v2594_v35 }
 0x401   : > { %1374 = vmax.xlane.f32.xlu2 %v5943_v5  ;;  %1941 = vmatpush.bf16.msrb.mxu0 %v1920_v48 }
 0x405   : > { %1942 = vmatpush.bf16.msrb.mxu0 %v5850_v28 }
 0x406   : > { %v1336_v6 = vpop.f32.mrf.mxu1 }
 0x407   : > { %v5950_v18 = vadd.f32 %v1336_v6, %v5937_v58 }
 0x408   : > { %2621 = vmatpush.bf16.xpose.msrb.mxu3 %v2591_v39 }
 0x409   : > { %1376 = vmax.xlane.f32.xlu1 %v5950_v18 }
 0x40e   : > { %v1339_v22 = vpop.f32.mrf.mxu1 }
 0x40f   : > { %4368 = vmatmul.msk.bf16.gmra.mxu3 %vm1276_vm6, %v5838_v14  ;;  %v5971_v24 = vadd.f32 %v1339_v22, %v5937_v58 }
 0x416   : > { %v1341_v0 = vpop.f32.mrf.mxu1 }
 0x417   : > { %v5988_v42 = vadd.f32 %v1341_v0, %v5937_v58 }
 0x41e   : > { %v1344_v45 = vpop.f32.mrf.mxu1 }
 0x41f   : > { %4369 = vmatmul.msk.bf16.gmra.mxu3 %vm1276_vm6, %v5857_v1  ;;  %v6000_v25 = vadd.f32 %v1344_v45, %v5937_v58 }
 0x426   : > { %v1346_v47 = vpop.f32.mrf.mxu1 }
 0x427   : > { %v5983_v37 = vadd.f32 %v1346_v47, %v5937_v58 }
 0x42e   : > { %v1349_v43 = vpop.f32.mrf.mxu1 }
 0x42f   : > { %4370 = vmatmul.msk.bf16.gmra.mxu3 %vm1276_vm6, %v5891_v62  ;;  %v6008_v60 = vadd.f32 %v1349_v43, %v5937_v58 }
 0x436   : > { %v1351_v28 = vpop.f32.mrf.mxu1 }
 0x437   : > { %v6026_v55 = vadd.f32 %v1351_v28, %v5937_v58 }
 0x43e   : > { %v1354_v10 = vpop.f32.mrf.mxu1 }
 0x43f   : > { %4371 = vmatmul.msk.bf16.gmra.mxu3 %vm1276_vm6, %v1647_v38 }
 0x446   : > { %v5960_v44 = vpop.f32.mrf.mxu1 }
 0x44e   : > { %v5962_v52 = vpop.f32.mrf.mxu1 }
 0x44f   : > { %4380 = vmatmul.msk.bf16.vlgmr.msrb.gmra.mxu3 %vm1276_vm6, %v5886_v53 }
 0x452   : > { %v1721_v14 = vpop.f32.mrf.mxu3 }
 0x453   : > { %v5967_v1 = vadd.f32 %v1721_v14, %v5937_v58 }
 0x455   : > { %1761 = vmax.xlane.f32.xlu0 %v5967_v1 }
 0x456   : > { %v1361_v59 = vpop.f32.mrf.mxu1 }
 0x457   : > { %v6040_v39 = vadd.f32 %v1361_v59, %v5937_v58  ;;  %v6072_v59 = vadd.f32 %v5962_v52, %v5937_v58 }
 0x45a   : > { %v1723_v62 = vpop.f32.mrf.mxu3 }
 0x45b   : > { %v5974_v2 = vadd.f32 %v1723_v62, %v5937_v58 }
 0x45d   : > { %1763 = vmax.xlane.f32.xlu1 %v5974_v2  ;;  %1378 = vmax.xlane.f32.xlu0 %v5971_v24 }
 0x45e   : > { %v1364_v53 = vpop.f32.mrf.mxu1 }
 0x45f   : > { %4381 = vmatmul.msk.bf16.gmra.mxu3 %vm1276_vm6, %v2537_v8  ;;  %v6046_v48 = vadd.f32 %v1364_v53, %v5937_v58 }
 0x462   : > { %v1726_v21 = vpop.f32.mrf.mxu3 }
 0x463   : > { %v5980_v15 = vadd.f32 %v1726_v21, %v5937_v58 }
 0x465   : > { %1765 = vmax.xlane.f32.xlu2 %v5980_v15  ;;  %1384 = vmax.xlane.f32.xlu1 %v5983_v37 }
 0x466   : > { %v5993_v12 = vpop.f32.mrf.mxu1 }
 0x467   : > { %v6085_v52 = vadd.f32 %v5993_v12, %v5937_v58 }
 0x46a   : > { %v1728_v54 = vpop.f32.mrf.mxu3 }
 0x46b   : > { %v5991_v11 = vadd.f32 %v1728_v54, %v5937_v58 }
 0x46d   : > { %1380 = vmax.xlane.f32.xlu2 %v5988_v42  ;;  %1767 = vmax.xlane.f32.xlu0 %v5991_v11 }
 0x46e   : > { %v1369_v26 = vpop.f32.mrf.mxu1 }
 0x46f   : > { %4382 = vmatmul.msk.bf16.gmra.mxu3 %vm1276_vm6, %v5812_v57  ;;  %v6053_v0 = vadd.f32 %v1369_v26, %v5937_v58 }
 0x472   : > { %v1731_v56 = vpop.f32.mrf.mxu3 }
 0x473   : > { %v6003_v8 = vadd.f32 %v1731_v56, %v5937_v58 }
 0x474   : > { %v1375_v6 = vpop.xlane.xlu2 %1374 }
 0x475   : > { %1769 = vmax.xlane.f32.xlu2 %v6003_v8  ;;  %1382 = vmax.xlane.f32.xlu0 %v6000_v25 }
 0x476   : > { %v1371_v57 = vpop.f32.mrf.mxu1 }
 0x477   : > { %v6021_v41 = vadd.f32 %v1371_v57, %v5937_v58 }
 0x47a   : > { %v1733_v49 = vpop.f32.mrf.mxu3 }
 0x47b   : > { %v6011_v63 = vadd.f32 %v1733_v49, %v5937_v58 }
 0x47c   : > { %v1377_v43 = vpop.xlane.xlu1 %1376 }
 0x47d   : > { %1771 = vmax.xlane.f32.xlu1 %v6011_v63  ;;  %1386 = vmax.xlane.f32.xlu0 %v6008_v60  ;;  %v1407_v38 = vsub.f32 %v5950_v18, %v1377_v43 }
 0x47f   : > { %4383 = vmatmul.msk.bf16.gmra.mxu3 %vm1276_vm6, %v5902_v16  ;;  %v6036_v16 = vadd.f32 %v1354_v10, %v5937_v58  ;;  %v1424_v10 = vmul.f32 1.442695, %v1407_v38 }
 0x482   : > { %v1736_v33 = vpop.f32.mrf.mxu3 }
 0x483   : > { %v6018_v20 = vadd.f32 %v1736_v33, %v5937_v58 }
 0x485   : > { %1773 = vmax.xlane.f32.xlu2 %v6018_v20  ;;  %1404 = vmax.xlane.f32.xlu1 %v6021_v41 }
 0x48a   : > { %v1738_v35 = vpop.f32.mrf.mxu3 }
 0x48b   : > { %v6029_v30 = vadd.f32 %v1738_v35, %v5937_v58 }
 0x48d   : > { %1388 = vmax.xlane.f32.xlu2 %v6026_v55  ;;  %1775 = vmax.xlane.f32.xlu0 %v6029_v30 }
 0x48f   : > { %4384 = vmatmul.msk.bf16.gmra.mxu3 %vm1276_vm6, %v5915_v29  ;;  %v1406_v29 = vsub.f32 %v5943_v5, %v1375_v6  ;;  %v6064_v5 = vadd.f32 %v5960_v44, %v5937_v58 }
 0x491   : > { %v1422_v22 = vmul.f32 1.442695, %v1406_v29 }
 0x493   : > { %4638 = vpow2.f32 %v1422_v22 }
 0x495   : > { %1390 = vmax.xlane.f32.xlu0 %v6036_v16 }
 0x49d   : > { %1396 = vmax.xlane.f32.xlu0 %v6040_v39 }
 0x49f   : > { %4385 = vmatmul.msk.bf16.gmra.mxu3 %vm1276_vm6, %v5817_v61  ;;  %v6058_v61 = vpop.eup %4638 }
 0x4a5   : > { %1915 = vrot.lane.b32.xlu2 %v5660_v40, %s5055_s20  ;;  %1398 = vmax.xlane.f32.xlu0 %v6046_v48 }
 0x4ad   : > { %1402 = vmax.xlane.f32.xlu0 %v6053_v0 }
 0x4af   : > { %4386 = vmatmul.msk.bf16.gmra.mxu3 %vm1276_vm6, %v5921_v32 }
 0x4b5   : > { %1454 = vadd.xlane.f32.xlu0 %v6058_v61 }
 0x4c8   : > { %v1762_v45 = vpop.xlane.xlu0 %1761 }
 0x4c9   : > { %v1793_v47 = vsub.f32 %v5967_v1, %v1762_v45 }
 0x4cb   : > { %v1809_v28 = vmul.f32 1.442695, %v1793_v47 }
 0x4cd   : > { %4640 = vpow2.f32 %v1809_v28 }
 0x4ce   : > { %1392 = vmax.xlane.f32.xlu2 %v6064_v5  ;;  %4642 = vpow2.f32 %v1424_v10 }
 0x4d0   : > { %v1379_v32 = vpop.xlane.xlu0 %1378  ;;  %v1764_v1 = vpop.xlane.xlu1 %1763 }
 0x4d1   : > { %v1408_v44 = vsub.f32 %v5971_v24, %v1379_v32  ;;  %v1794_v18 = vsub.f32 %v5974_v2, %v1764_v1 }
 0x4d3   : > { %v6068_v14 = vpop.eup %4640  ;;  %v1426_v53 = vmul.f32 1.442695, %v1408_v44  ;;  %v1811_v54 = vmul.f32 1.442695, %v1794_v18 }
 0x4d4   : > { %1841 = vadd.xlane.f32.xlu1 %v6068_v14  ;;  %v6080_v21 = vpop.eup %4642 }
 0x4d5   : > { %4644 = vpow2.f32 %v1426_v53 }
 0x4d6   : > { %1394 = vmax.xlane.f32.xlu2 %v6072_v59  ;;  %4646 = vpow2.f32 %v1811_v54 }
 0x4d8   : > { %v6078_v62 = vpop.xlane.xlu2 %1765  ;;  %v1385_v6 = vpop.xlane.xlu1 %1384 }
 0x4db   : > { %v6089_v26 = vpop.eup %4644 }
 0x4dc   : > { %1456 = vadd.xlane.f32.xlu1 %v6080_v21  ;;  %v6092_v57 = vpop.eup %4646 }
 0x4de   : > { %1400 = vmax.xlane.f32.xlu2 %v6085_v52 }
 0x4e0   : > { %v1381_v24 = vpop.xlane.xlu2 %1380  ;;  %v1768_v56 = vpop.xlane.xlu0 %1767 }
 0x4e1   : > { %v1409_v2 = vsub.f32 %v5988_v42, %v1381_v24  ;;  %v1411_v42 = vsub.f32 %v5983_v37, %v1385_v6 }
 0x4e3   : > { %v1428_v49 = vmul.f32 1.442695, %v1409_v2  ;;  %v1432_v45 = vmul.f32 1.442695, %v1411_v42 }
 0x4e4   : > { %1458 = vadd.xlane.f32.xlu1 %v6089_v26 }
 0x4e5   : > { %4648 = vpow2.f32 %v1428_v49 }
 0x4e6   : > { %1843 = vadd.xlane.f32.xlu2 %v6092_v57 }
 0x4e8   : > { %v1383_v12 = vpop.xlane.xlu0 %1382  ;;  %v1770_v22 = vpop.xlane.xlu2 %1769 }
 0x4e9   : > { %v1410_v33 = vsub.f32 %v6000_v25, %v1383_v12  ;;  %v1741_v25 = vpop.f32.mrf.mxu3 }
 0x4eb   : > { %v6096_v35 = vpop.eup %4648  ;;  %v1430_v29 = vmul.f32 1.442695, %v1410_v33 }
 0x4ec   : > { %1460 = vadd.xlane.f32.xlu0 %v6096_v35 }
 0x4ed   : > { %4650 = vpow2.f32 %v1430_v29 }
 0x4ee   : > { %4652 = vpow2.f32 %v1432_v45 }
 0x4f0   : > { %v1387_v47 = vpop.xlane.xlu0 %1386 }
 0x4f1   : > { %v1412_v28 = vsub.f32 %v6008_v60, %v1387_v47  ;;  %v6111_v44 = vpop.f32.mrf.mxu3 }
 0x4f3   : > { %v6100_v43 = vpop.eup %4650  ;;  %v1434_v10 = vmul.f32 1.442695, %v1412_v28 }
 0x4f4   : > { %1462 = vadd.xlane.f32.xlu0 %v6100_v43  ;;  %v6106_v32 = vpop.eup %4652 }
 0x4f5   : > { %4654 = vpow2.f32 %v1434_v10 }
 0x4f8   : > { %v6104_v38 = vpop.xlane.xlu2 %1773 }
 0x4f9   : > { %v1746_v12 = vpop.f32.mrf.mxu3 }
 0x4fb   : > { %v6114_v54 = vpop.eup %4654 }
 0x4fc   : > { %1464 = vadd.xlane.f32.xlu0 %v6106_v32 }
 0x500   : > { %v1389_v37 = vpop.xlane.xlu2 %1388  ;;  %v6109_v1 = vpop.xlane.xlu0 %1775 }
 0x501   : > { %v1413_v18 = vsub.f32 %v6026_v55, %v1389_v37  ;;  %v1748_v45 = vpop.f32.mrf.mxu3  ;;  %v6132_v37 = vadd.f32 %v1741_v25, %v5937_v58 }
 0x503   : > { %v1436_v53 = vmul.f32 1.442695, %v1413_v18 }
 0x504   : > { %1466 = vadd.xlane.f32.xlu0 %v6114_v54 }
 0x505   : > { %4656 = vpow2.f32 %v1436_v53  ;;  %v6141_v53 = vadd.f32 %v1746_v12, %v5937_v58 }
 0x508   : > { %v1916_v60 = vpop.permute.xlu2 %1915  ;;  %v1391_v24 = vpop.xlane.xlu0 %1390 }
 0x509   : > { %v1414_v2 = vsub.f32 %v6036_v16, %v1391_v24  ;;  %1943 = vmatpush.bf16.msrb.mxu0 %v1916_v60  ;;  %v1796_v16 = vsub.f32 %v5991_v11, %v1768_v56  ;;  %v6129_v28 = vpop.f32.mrf.mxu3  ;;  %v1797_v11 = vsub.f32 %v6003_v8, %v1770_v22  ;;  %v1772_v56 = vpop.xlane.xlu1 %1771 }
 0x50b   : > { %v6118_v49 = vpop.eup %4656  ;;  %v1438_v33 = vmul.f32 1.442695, %v1414_v2  ;;  %v1815_v10 = vmul.f32 1.442695, %v1796_v16  ;;  %v1817_v24 = vmul.f32 1.442695, %v1797_v11  ;;  %v6148_v2 = vadd.f32 %v1748_v45, %v5937_v58 }
 0x50c   : > { %1468 = vadd.xlane.f32.xlu0 %v6118_v49  ;;  %v1799_v45 = vsub.f32 %v6018_v20, %v6104_v38 }
 0x50d   : > { %4658 = vpow2.f32 %v1438_v33 }
 0x510   : > { %v1397_v6 = vpop.xlane.xlu0 %1396 }
 0x511   : > { %v1417_v55 = vsub.f32 %v6040_v39, %v1397_v6  ;;  %v6135_v39 = vpop.f32.mrf.mxu3  ;;  %v1798_v6 = vsub.f32 %v6011_v63, %v1772_v56  ;;  %v6152_v12 = vpop.xlane.xlu1 %1404  ;;  %v1821_v56 = vmul.f32 1.442695, %v1799_v45 }
 0x513   : > { %v6122_v29 = vpop.eup %4658  ;;  %v1444_v42 = vmul.f32 1.442695, %v1417_v55 }
 0x514   : > { %1470 = vadd.xlane.f32.xlu2 %v6122_v29 }
 0x515   : > { %4660 = vpow2.f32 %v1444_v42  ;;  %v1819_v42 = vmul.f32 1.442695, %v1798_v6 }
 0x516   : > { %4662 = vpow2.f32 %v1815_v10 }
 0x517   : > { %4664 = vpow2.f32 %v1817_v24 }
 0x518   : > { %v1399_v25 = vpop.xlane.xlu0 %1398  ;;  %4666 = vpow2.f32 %v1819_v42 }
 0x519   : > { %v6143_v60 = vpop.f32.mrf.mxu3  ;;  %v1418_v10 = vsub.f32 %v6046_v48, %v1399_v25 }
 0x51b   : > { %v6125_v47 = vpop.eup %4660  ;;  %v1446_v6 = vmul.f32 1.442695, %v1418_v10 }
 0x51c   : > { %1476 = vadd.xlane.f32.xlu1 %v6125_v47  ;;  %v6137_v18 = vpop.eup %4662 }
 0x51d   : > { %v6157_v22 = vpop.eup %4664 }
 0x51e   : > { %v6168_v40 = vpop.eup %4666 }
 0x520   : > { %v6154_v55 = vpop.xlane.xlu0 %1402 }
 0x521   : > { %v1758_v33 = vpop.f32.mrf.mxu3 }
 0x524   : > { %1777 = vmax.xlane.f32.xlu1 %v6132_v37 }
 0x529   : > { %v6163_v63 = vpop.f32.mrf.mxu3 }
 0x52c   : > { %1847 = vadd.xlane.f32.xlu1 %v6137_v18 }
 0x531   : > { %v2625_v42 = vpop.f32.mrf.mxu3 }
 0x534   : > { %1781 = vmax.xlane.f32.xlu1 %v6141_v53 }
 0x53c   : > { %1783 = vmax.xlane.f32.xlu1 %v6148_v2 }
 0x541   : > { %v1393_v16 = vpop.xlane.xlu2 %1392 }
 0x542   : > { %v1415_v8 = vsub.f32 %v6064_v5, %v1393_v16  ;;  %v1455_v5 = vpop.xlane.xlu0 %1454 }
 0x544   : > { %v1440_v11 = vmul.f32 1.442695, %v1415_v8  ;;  %1849 = vadd.xlane.f32.xlu1 %v6157_v22 }
 0x546   : > { %4668 = vpow2.f32 %v1440_v11 }
 0x547   : > { %v6165_v24 = vpop.xlane.xlu1 %1841  ;;  %4670 = vpow2.f32 %v1821_v56 }
 0x548   : > { %4672 = vpow2.f32 %v1446_v6 }
 0x549   : > { %v1395_v36 = vpop.xlane.xlu2 %1394  ;;  %4674 = vrcp.f32 %v1455_v5 }
 0x54a   : > { %v1416_v16 = vsub.f32 %v6072_v59, %v1395_v36 }
 0x54c   : > { %v6170_v20 = vpop.eup %4668  ;;  %v1442_v48 = vmul.f32 1.442695, %v1416_v16  ;;  %1851 = vadd.xlane.f32.xlu1 %v6168_v40 }
 0x54d   : > { %1472 = vadd.xlane.f32.xlu2 %v6170_v20  ;;  %v6174_v25 = vpop.eup %4670 }
 0x54e   : > { %4676 = vpow2.f32 %v1442_v48  ;;  %v6176_v36 = vpop.eup %4672  ;;  %v6187_v48 = vadd.f32 %v1758_v33, %v5937_v58 }
 0x54f   : > { %v1457_v38 = vpop.xlane.xlu1 %1456  ;;  %v4675_v45 = vpop.eup %4674 }
 0x550   : > { %4678 = vrcp.f32 %v1457_v38  ;;  %v1502_v6 = vmul.f32 %v4675_v45, %v6058_v61  ;;  %v6196_v61 = vadd.f32 %v2625_v42, %v5937_v58  ;;  %v1421_v42 = vsub.f32 %v6021_v41, %v6152_v12 }
 0x551   : > { %v1401_v8 = vpop.xlane.xlu2 %1400 }
 0x552   : > { %v1419_v59 = vsub.f32 %v6085_v52, %v1401_v8  ;;  %v6189_v52 = vpop.f32.mrf.mxu3  ;;  %7455 = vst [vmem:[#allocation13_spill] sm:$0xff] %v6196_v61 }
 0x554   : > { %v6179_v10 = vpop.eup %4676  ;;  %v1448_v11 = vmul.f32 1.442695, %v1419_v59  ;;  %1853 = vadd.xlane.f32.xlu1 %v6174_v25 }
 0x555   : > { %1474 = vadd.xlane.f32.xlu0 %v6179_v10  ;;  %1478 = vadd.xlane.f32.xlu2 %v6176_v36 }
 0x556   : > { %v4679_v56 = vpop.eup %4678  ;;  %4680 = vpow2.f32 %v1448_v11 }
 0x557   : > { %v1503_v5 = vmul.f32 %v4679_v56, %v6080_v21  ;;  %v1459_v38 = vpop.xlane.xlu1 %1458 }
 0x558   : > { %4682 = vrcp.f32 %v1459_v38 }
 0x559   : > { %v1518_v16 = vpack.c.bf16 %v1503_v5, %v1502_v6 }
 0x55a   : > { %v2630_v33 = vpop.f32.mrf.mxu3 }
 0x55b   : > { %1558 = vmatmul.bf16.vlgmr.msra.gmra.mxu2 %v1518_v16  ;;  %v6202_v16 = vadd.f32 %v2630_v33, %v5937_v58 }
 0x55c   : > { %v6191_v8 = vpop.eup %4680  ;;  %1791 = vmax.xlane.f32.xlu1 %v6187_v48 }
 0x55d   : > { %1480 = vadd.xlane.f32.xlu0 %v6191_v8  ;;  %7456 = vst [vmem:[#allocation14_spill] sm:$0xff] %v6202_v16 }
 0x55e   : > { %v4683_v21 = vpop.eup %4682 }
 0x55f   : > { %v1461_v59 = vpop.xlane.xlu0 %1460  ;;  %v1504_v11 = vmul.f32 %v4683_v21, %v6089_v26  ;;  %v1452_v26 = vmul.f32 1.442695, %v1421_v42 }
 0x560   : > { %4684 = vrcp.f32 %v1461_v59 }
 0x562   : > { %v2633_v38 = vpop.f32.mrf.mxu3 }
 0x564   : > { %2665 = vmax.xlane.f32.xlu1 %v6196_v61 }
 0x566   : > { %v4685_v45 = vpop.eup %4684 }
 0x567   : > { %v1505_v56 = vmul.f32 %v4685_v45, %v6096_v35  ;;  %v1463_v6 = vpop.xlane.xlu0 %1462  ;;  %v6212_v35 = vadd.f32 %v2633_v38, %v5937_v58  ;;  %v1795_v38 = vsub.f32 %v5980_v15, %v6078_v62 }
 0x568   : > { %4686 = vrcp.f32 %v1463_v6 }
 0x569   : > { %v1519_v5 = vpack.c.bf16 %v1505_v56, %v1504_v11  ;;  %7457 = vst [vmem:[#allocation15_spill] sm:$0xff] %v6212_v35 }
 0x56b   : > { %1563 = vmatmul.bf16.gmra.mxu2 %v1519_v5 }
 0x56c   : > { %2669 = vmax.xlane.f32.xlu1 %v6202_v16 }
 0x56d   : > { %1913 = vrot.lane.b32.xlu2 %v5683_v31, %s5055_s20 }
 0x56e   : > { %v4687_v21 = vpop.eup %4686 }
 0x56f   : > { %v1465_v59 = vpop.xlane.xlu0 %1464  ;;  %v1506_v12 = vmul.f32 %v4687_v21, %v6100_v43  ;;  %v1420_v21 = vsub.f32 %v6053_v0, %v6154_v55  ;;  %v6238_v0 = vadd.f32 %v6135_v39, %v5937_v58 }
 0x570   : > { %4688 = vrcp.f32 %v1465_v59 }
 0x571   : > { %2097 = vrot.lane.b32.xlu0 %v5727_v34, %s5053_s0  ;;  %4690 = vpow2.f32 %v1452_v26 }
 0x574   : > { %2671 = vmax.xlane.f32.xlu1 %v6212_v35 }
 0x576   : > { %v4689_v33 = vpop.eup %4688 }
 0x577   : > { %v1467_v41 = vpop.xlane.xlu0 %1466  ;;  %v1507_v45 = vmul.f32 %v4689_v33, %v6106_v32  ;;  %v6217_v56 = vpop.eup %4690  ;;  %v1813_v32 = vmul.f32 1.442695, %v1795_v38 }
 0x578   : > { %4692 = vrcp.f32 %v1467_v41  ;;  %v1450_v41 = vmul.f32 1.442695, %v1420_v21 }
 0x579   : > { %v1520_v11 = vpack.c.bf16 %v1507_v45, %v1506_v12  ;;  %v1844_v45 = vpop.xlane.xlu2 %1843 }
 0x57b   : > { %1568 = vmatmul.bf16.gmra.mxu2 %v1520_v11 }
 0x57c   : > { %1484 = vadd.xlane.f32.xlu1 %v6217_v56 }
 0x57e   : > { %v4693_v5 = vpop.eup %4692 }
 0x57f   : > { %v1469_v6 = vpop.xlane.xlu0 %1468  ;;  %v1508_v59 = vmul.f32 %v4693_v5, %v6114_v54 }
 0x580   : > { %4694 = vrcp.f32 %v1469_v6 }
 0x581   : > { %4696 = vpow2.f32 %v1813_v32 }
 0x582   : > { %4698 = vpow2.f32 %v1450_v41 }
 0x586   : > { %v4695_v42 = vpop.eup %4694 }
 0x587   : > { %v1509_v43 = vmul.f32 %v4695_v42, %v6118_v49  ;;  %v6226_v12 = vpop.eup %4696  ;;  %v6247_v49 = vadd.f32 %v6143_v60, %v5937_v58  ;;  %v1471_v11 = vpop.xlane.xlu2 %1470 }
 0x588   : > { %v6233_v62 = vpop.eup %4698  ;;  %4700 = vrcp.f32 %v1471_v11 }
 0x589   : > { %v1521_v26 = vpack.c.bf16 %v1509_v43, %v1508_v59  ;;  %v6265_v59 = vpop.f32.mrf.mxu3 }
 0x58b   : > { %1573 = vmatmul.bf16.gmra.mxu2 %v1521_v26 }
 0x58e   : > { %v4701_v42 = vpop.eup %4700 }
 0x58f   : > { %v1477_v33 = vpop.xlane.xlu1 %1476  ;;  %v1510_v26 = vmul.f32 %v4701_v42, %v6122_v29 }
 0x591   : > { %v2638_v31 = vpop.f32.mrf.mxu3 }
 0x592   : > { %v6274_v42 = vadd.f32 %v2638_v31, %v5937_v58 }
 0x595   : > { %2829 = vrot.lane.b32.xlu1 %v5727_v34, %s5057_s21 }
 0x596   : > { %1845 = vadd.xlane.f32.xlu2 %v6226_v12 }
 0x597   : > { %v6231_v15 = vpop.xlane.xlu1 %1777 }
 0x59b   : > { %1482 = vadd.xlane.f32.xlu0 %v6233_v62 }
 0x59d   : > { %2825 = vrot.lane.b32.xlu1 %v5653_v3, %s5057_s21 }
 0x59e   : > { %1787 = vmax.xlane.f32.xlu2 %v6238_v0 }
 0x59f   : > { %v6243_v54 = vpop.xlane.xlu1 %1847 }
 0x5a5   : > { %2823 = vrot.lane.b32.xlu1 %v5638_v27, %s5057_s21 }
 0x5a6   : > { %1789 = vmax.xlane.f32.xlu2 %v6247_v49 }
 0x5a7   : > { %v6252_v55 = vpop.xlane.xlu1 %1781 }
 0x5ad   : > { %2370 = vrot.lane.b32.xlu1 %v5662_v7, %s5058_s14 }
 0x5af   : > { %v6256_v39 = vpop.xlane.xlu1 %1783  ;;  %2548 = vrot.lane.b32.xlu0 %v5727_v34, %s5054_s18 }
 0x5b7   : > { %v6260_v60 = vpop.xlane.xlu1 %1849 }
 0x5bf   : > { %v6262_v5 = vpop.xlane.xlu1 %1851 }
 0x5c0   : > { %v1473_v6 = vpop.xlane.xlu2 %1472 }
 0x5c1   : > { %4702 = vrcp.f32 %v1473_v6 }
 0x5c2   : > { %4704 = vrcp.f32 %v1844_v45 }
 0x5c3   : > { %4706 = vrcp.f32 %v6165_v24 }
 0x5c7   : > { %v4703_v38 = vpop.eup %4702  ;;  %v6269_v6 = vpop.xlane.xlu1 %1853 }
 0x5c8   : > { %v1479_v43 = vpop.xlane.xlu2 %1478  ;;  %v1511_v32 = vmul.f32 %v4703_v38, %v6170_v20  ;;  %v1475_v21 = vpop.xlane.xlu0 %1474 }
 0x5c9   : > { %v4705_v35 = vpop.eup %4704  ;;  %4708 = vrcp.f32 %v1475_v21 }
 0x5ca   : > { %v1522_v41 = vpack.c.bf16 %v1511_v32, %v1510_v26  ;;  %v4707_v11 = vpop.eup %4706  ;;  %v1890_v45 = vmul.f32 %v4705_v35, %v6092_v57  ;;  %4710 = vrcp.f32 %v1477_v33  ;;  %v6279_v26 = vadd.f32 %v6111_v44, %v5937_v58 }
 0x5cb   : > { %v1889_v24 = vmul.f32 %v4707_v11, %v6068_v14  ;;  %v6290_v44 = vadd.f32 %v6129_v28, %v5937_v58 }
 0x5cc   : > { %1578 = vmatmul.bf16.gmra.mxu2 %v1522_v41 }
 0x5cd   : > { %v1905_v61 = vpack.c.bf16 %v1890_v45, %v1889_v24  ;;  %v1803_v24 = vsub.f32 %v6141_v53, %v6252_v55 }
 0x5cf   : > { %v4709_v29 = vpop.eup %4708  ;;  %v6281_v57 = vpop.xlane.xlu1 %1791 }
 0x5d0   : > { %v1914_v16 = vpop.permute.xlu2 %1913  ;;  %v4711_v20 = vpop.eup %4710  ;;  %v1512_v38 = vmul.f32 %v4709_v29, %v6179_v10  ;;  %v1829_v29 = vmul.f32 1.442695, %v1803_v24 }
 0x5d1   : > { %1944 = vmatpush.bf16.msrb.mxu0 %v1914_v16  ;;  %v1513_v14 = vmul.f32 %v4711_v20, %v6125_v47  ;;  %v1481_v16 = vpop.xlane.xlu0 %1480 }
 0x5d2   : > { %4712 = vrcp.f32 %v1481_v16 }
 0x5d3   : > { %v1523_v31 = vpack.c.bf16 %v1513_v14, %v1512_v38  ;;  %4714 = vrcp.f32 %v1479_v43 }
 0x5d4   : > { %1945 = vmatmul.bf16.vlgmr.msrb.gmra.mxu0 %v1905_v61  ;;  %v1800_v61 = vsub.f32 %v6029_v30, %v6109_v1  ;;  %v1801_v30 = vsub.f32 %v6132_v37, %v6231_v15 }
 0x5d6   : > { %v1823_v10 = vmul.f32 1.442695, %v1800_v61  ;;  %v1825_v21 = vmul.f32 1.442695, %v1801_v30 }
 0x5d7   : > { %2675 = vmax.xlane.f32.xlu1 %v6274_v42  ;;  %v6292_v32 = vpop.xlane.xlu1 %2665 }
 0x5d8   : > { %4716 = vpow2.f32 %v1823_v10  ;;  %v4713_v1 = vpop.eup %4712 }
 0x5d9   : > { %1779 = vmax.xlane.f32.xlu0 %v6279_v26  ;;  %v4715_v47 = vpop.eup %4714  ;;  %v1515_v11 = vmul.f32 %v4713_v1, %v6191_v8  ;;  %4718 = vpow2.f32 %v1825_v21 }
 0x5da   : > { %v1514_v43 = vmul.f32 %v4715_v47, %v6176_v36  ;;  %4720 = vpow2.f32 %v1829_v29 }
 0x5db   : > { %4722 = vrcp.f32 %v6243_v54 }
 0x5dc   : > { %1583 = vmatmul.bf16.gmra.mxu2 %v1523_v31  ;;  %v1524_v37 = vpack.c.bf16 %v1515_v11, %v1514_v43 }
 0x5de   : > { %v1559_v35 = vpop.f32.mrf.mxu2  ;;  %v6299_v45 = vpop.eup %4716 }
 0x5df   : > { %v1599_v33 = vpack.c.bf16 %v1559_v35, %v1559_v35  ;;  %v6306_v15 = vpop.xlane.xlu1 %2669  ;;  %v6308_v38 = vpop.eup %4718 }
 0x5e0   : > { %v6316_v14 = vpop.eup %4720 }
 0x5e1   : > { %1616 = vst.msk [vmem:[#allocation2] sm:$0xf] %vm1615_vm8, %v1599_v33  ;;  %1785 = vmax.xlane.f32.xlu0 %v6290_v44  ;;  %v4723_v47 = vpop.eup %4722 }
 0x5e2   : > { %v1892_v24 = vmul.f32 %v4723_v47, %v6137_v18 }
 0x5e3   : > { %v6321_v10 = vpop.permute.xlu0 %2097 }
 0x5e6   : > { %v1561_v41 = vpop.f32.mrf.mxu2 }
 0x5e7   : > { %v1600_v28 = vpack.c.bf16 %v1561_v41, %v1561_v41  ;;  %v6314_v36 = vpop.xlane.xlu1 %2671 }
 0x5e9   : > { %1617 = vst.msk [vmem:[#allocation2 + $0x4] sm:$0xf] %vm1615_vm8, %v1600_v28  ;;  %1855 = vadd.xlane.f32.xlu0 %v6299_v45 }
 0x5ec   : > { %1588 = vmatmul.bf16.gmra.mxu2 %v1524_v37 }
 0x5ee   : > { %v1564_v20 = vpop.f32.mrf.mxu2 }
 0x5ef   : > { %v1601_v8 = vpack.c.bf16 %v1564_v20, %v1564_v20  ;;  %v1485_v61 = vpop.xlane.xlu1 %1484 }
 0x5f0   : > { %2819 = vrot.lane.b32.xlu1 %v5643_v23, %s5057_s21 }
 0x5f1   : > { %1618 = vst.msk [vmem:[#allocation2 + $0x8] sm:$0xf] %vm1615_vm8, %v1601_v8  ;;  %1857 = vadd.xlane.f32.xlu0 %v6308_v38 }
 0x5f6   : > { %v1566_v53 = vpop.f32.mrf.mxu2 }
 0x5f7   : > { %v1602_v55 = vpack.c.bf16 %v1566_v53, %v1566_v53 }
 0x5f9   : > { %1619 = vst.msk [vmem:[#allocation2 + $0xc] sm:$0xf] %vm1615_vm8, %v1602_v55  ;;  %1861 = vadd.xlane.f32.xlu0 %v6316_v14 }
 0x5fe   : > { %v1569_v16 = vpop.f32.mrf.mxu2 }
 0x5ff   : > { %v1603_v31 = vpack.c.bf16 %v1569_v16, %v1569_v16 }
 0x601   : > { %1620 = vst.msk [vmem:[#allocation2 + $0x10] sm:$0xf] %vm1615_vm8, %v1603_v31 }
 0x606   : > { %v1571_v35 = vpop.f32.mrf.mxu2 }
 0x607   : > { %v2830_v33 = vpop.permute.xlu1 %2829  ;;  %v1604_v30 = vpack.c.bf16 %v1571_v35, %v1571_v35 }
 0x608   : > { %2839 = vmatpush.bf16.msra.mxu0 %v2830_v33 }
 0x609   : > { %v1846_v1 = vpop.xlane.xlu2 %1845  ;;  %1621 = vst.msk [vmem:[#allocation2 + $0x14] sm:$0xf] %vm1615_vm8, %v1604_v30 }
 0x60a   : > { %4724 = vrcp.f32 %v1846_v1 }
 0x60b   : > { %4726 = vrcp.f32 %v1485_v61 }
 0x60e   : > { %v1483_v21 = vpop.xlane.xlu0 %1482  ;;  %v1574_v41 = vpop.f32.mrf.mxu2 }
 0x60f   : > { %4728 = vrcp.f32 %v1483_v21  ;;  %v1605_v28 = vpack.c.bf16 %v1574_v41, %v1574_v41  ;;  %v6356_v41 = vadd.f32 %v6163_v63, %v5937_v58 }
 0x610   : > { %v4725_v11 = vpop.eup %4724  ;;  %4730 = vrcp.f32 %v6262_v5 }
 0x611   : > { %v1891_v43 = vmul.f32 %v4725_v11, %v6226_v12  ;;  %1622 = vst.msk [vmem:[#allocation2 + $0x18] sm:$0xf] %vm1615_vm8, %v1605_v28  ;;  %v4727_v54 = vpop.eup %4726  ;;  %4732 = vrcp.f32 %v6260_v60 }
 0x612   : > { %v1517_v8 = vmul.f32 %v4727_v54, %v6217_v56 }
 0x613   : > { %v1906_v37 = vpack.c.bf16 %v1892_v24, %v1891_v43 }
 0x615   : > { %v4729_v29 = vpop.eup %4728  ;;  %1950 = vmatmul.bf16.gmra.mxu0 %v1906_v37  ;;  %v6368_v37 = vadd.f32 %v6265_v59, %v5937_v58  ;;  %v6380_v59 = vadd.f32 %v6189_v52, %v5937_v58 }
 0x616   : > { %v1516_v20 = vmul.f32 %v4729_v29, %v6233_v62  ;;  %v1576_v53 = vpop.f32.mrf.mxu2  ;;  %v4731_v18 = vpop.eup %4730 }
 0x617   : > { %v1606_v55 = vpack.c.bf16 %v1576_v53, %v1576_v53  ;;  %v4733_v12 = vpop.eup %4732  ;;  %v1894_v16 = vmul.f32 %v4731_v18, %v6168_v40 }
 0x618   : > { %v1525_v61 = vpack.c.bf16 %v1517_v8, %v1516_v20  ;;  %v1893_v35 = vmul.f32 %v4733_v12, %v6157_v22  ;;  %v1788_v22 = vpop.xlane.xlu2 %1787 }
 0x619   : > { %1623 = vst.msk [vmem:[#allocation2 + $0x1c] sm:$0xf] %vm1615_vm8, %v1606_v55 }
 0x61a   : > { %1593 = vmatmul.bf16.gmra.mxu2 %v1525_v61  ;;  %v1907_v62 = vpack.c.bf16 %v1894_v16, %v1893_v35 }
 0x620   : > { %v1790_v11 = vpop.xlane.xlu2 %1789 }
 0x621   : > { %v2549_v31 = vpop.permute.xlu0 %2548 }
 0x622   : > { %4387 = vmatmul.msk.bf16.gmra.mxu3 %vm1276_vm6, %v2549_v31 }
 0x625   : > { %1955 = vmatmul.bf16.gmra.mxu0 %v1907_v62 }
 0x62a   : > { %4372 = vmatmul.msk.bf16.vlgmr.msrb.gmra.mxu2 %vm1276_vm6, %v5802_v46 }
 0x63a   : > { %4373 = vmatmul.msk.bf16.gmra.mxu2 %vm1276_vm6, %v5807_v50 }
 0x64a   : > { %4374 = vmatmul.msk.bf16.gmra.mxu2 %vm1276_vm6, %v5896_v4  ;;  %v1804_v4 = vsub.f32 %v6148_v2, %v6256_v39 }
 0x64c   : > { %v1780_v56 = vpop.xlane.xlu0 %1779 }
 0x64d   : > { %v1802_v60 = vsub.f32 %v6279_v26, %v1780_v56 }
 0x64f   : > { %v1827_v40 = vmul.f32 1.442695, %v1802_v60  ;;  %v1579_v5 = vpop.f32.mrf.mxu2 }
 0x650   : > { %v1607_v33 = vpack.c.bf16 %v1579_v5, %v1579_v5 }
 0x651   : > { %4734 = vpow2.f32 %v1827_v40 }
 0x652   : > { %1624 = vst.msk [vmem:[#allocation2 + $0x20] sm:$0xf] %vm1615_vm8, %v1607_v33 }
 0x654   : > { %v1786_v30 = vpop.xlane.xlu0 %1785 }
 0x655   : > { %v1805_v1 = vsub.f32 %v6290_v44, %v1786_v30  ;;  %v1831_v44 = vmul.f32 1.442695, %v1804_v4 }
 0x657   : > { %v6345_v46 = vpop.eup %4734  ;;  %v1833_v47 = vmul.f32 1.442695, %v1805_v1  ;;  %v1581_v50 = vpop.f32.mrf.mxu2 }
 0x658   : > { %v1608_v21 = vpack.c.bf16 %v1581_v50, %v1581_v50  ;;  %1859 = vadd.xlane.f32.xlu2 %v6345_v46 }
 0x659   : > { %4736 = vpow2.f32 %v1833_v47 }
 0x65a   : > { %1625 = vst.msk [vmem:[#allocation2 + $0x24] sm:$0xf] %vm1615_vm8, %v1608_v21  ;;  %4375 = vmatmul.msk.bf16.gmra.mxu2 %vm1276_vm6, %v5924_v9  ;;  %4738 = vrcp.f32 %v6269_v6  ;;  %v1807_v9 = vsub.f32 %v6247_v49, %v1790_v11  ;;  %v1806_v49 = vsub.f32 %v6238_v0, %v1788_v22 }
 0x65c   : > { %v1856_v26 = vpop.xlane.xlu0 %1855  ;;  %v1837_v54 = vmul.f32 1.442695, %v1807_v9 }
 0x65d   : > { %4740 = vrcp.f32 %v1856_v26 }
 0x65e   : > { %4742 = vpow2.f32 %v1831_v44 }
 0x65f   : > { %v6358_v28 = vpop.eup %4736  ;;  %v1584_v43 = vpop.f32.mrf.mxu2  ;;  %4744 = vpow2.f32 %v1837_v54 }
 0x660   : > { %v1609_v2 = vpack.c.bf16 %v1584_v43, %v1584_v43  ;;  %2663 = vmax.xlane.f32.xlu2 %v6356_v41  ;;  %1865 = vadd.xlane.f32.xlu0 %v6358_v28  ;;  %v4739_v39 = vpop.eup %4738  ;;  %v2826_v54 = vpop.permute.xlu1 %2825 }
 0x661   : > { %v1895_v24 = vmul.f32 %v4739_v39, %v6174_v25  ;;  %v1835_v25 = vmul.f32 1.442695, %v1806_v49 }
 0x662   : > { %1626 = vst.msk [vmem:[#allocation2 + $0x28] sm:$0xf] %vm1615_vm8, %v1609_v2 }
 0x663   : > { %v4741_v6 = vpop.eup %4740  ;;  %4746 = vpow2.f32 %v1835_v25 }
 0x664   : > { %v1896_v63 = vmul.f32 %v4741_v6, %v6299_v45  ;;  %v6370_v20 = vpop.eup %4742  ;;  %v1858_v60 = vpop.xlane.xlu0 %1857 }
 0x665   : > { %v6382_v45 = vpop.eup %4744 }
 0x666   : > { %v1908_v29 = vpack.c.bf16 %v1896_v63, %v1895_v24 }
 0x667   : > { %v1586_v8 = vpop.f32.mrf.mxu2 }
 0x668   : > { %v1610_v53 = vpack.c.bf16 %v1586_v8, %v1586_v8  ;;  %1863 = vadd.xlane.f32.xlu2 %v6370_v20  ;;  %2673 = vmax.xlane.f32.xlu0 %v6368_v37 }
 0x669   : > { %1960 = vmatmul.bf16.gmra.mxu0 %v1908_v29  ;;  %v6387_v0 = vpop.eup %4746 }
 0x66a   : > { %1627 = vst.msk [vmem:[#allocation2 + $0x2c] sm:$0xf] %vm1615_vm8, %v1610_v53  ;;  %4376 = vmatmul.msk.bf16.gmra.mxu2 %vm1276_vm6, %v5908_v17 }
 0x66c   : > { %v1862_v50 = vpop.xlane.xlu0 %1861 }
 0x66f   : > { %v1589_v55 = vpop.f32.mrf.mxu2 }
 0x670   : > { %v1611_v61 = vpack.c.bf16 %v1589_v55, %v1589_v55  ;;  %2667 = vmax.xlane.f32.xlu2 %v6380_v59  ;;  %1869 = vadd.xlane.f32.xlu0 %v6382_v45 }
 0x672   : > { %1628 = vst.msk [vmem:[#allocation2 + $0x30] sm:$0xf] %vm1615_vm8, %v1611_v61 }
 0x677   : > { %v1591_v18 = vpop.f32.mrf.mxu2 }
 0x678   : > { %v1612_v17 = vpack.c.bf16 %v1591_v18, %v1591_v18  ;;  %1867 = vadd.xlane.f32.xlu2 %v6387_v0 }
 0x67a   : > { %1629 = vst.msk [vmem:[#allocation2 + $0x34] sm:$0xf] %vm1615_vm8, %v1612_v17  ;;  %4377 = vmatmul.msk.bf16.gmra.mxu2 %vm1276_vm6, %v5933_v51 }
 0x684   : > { %2827 = vrot.lane.b32.xlu0 %v5669_v19, %s5057_s21 }
 0x68a   : > { %4378 = vmatmul.msk.bf16.gmra.mxu2 %vm1276_vm6, %v5834_v13 }
 0x68c   : > { %2821 = vrot.lane.b32.xlu0 %v5662_v7, %s5057_s21  ;;  %v1808_v7 = vsub.f32 %v6187_v48, %v6281_v57  ;;  %v2640_v48 = vpop.f32.mrf.mxu3 }
 0x68d   : > { %v6432_v22 = vadd.f32 %v2640_v48, %v5937_v58 }
 0x690   : > { %2378 = vrot.lane.b32.xlu2 %v5727_v34, %s5058_s14 }
 0x698   : > { %2376 = vrot.lane.b32.xlu2 %v5669_v19, %s5058_s14  ;;  %v1839_v19 = vmul.f32 1.442695, %v1808_v7  ;;  %v7459_v7 = vld [vmem:[#allocation11_spill] sm:$0xff] }
 0x69a   : > { %4379 = vmatmul.msk.bf16.gmra.mxu2 %vm1276_vm6, %v6321_v10  ;;  %4748 = vpow2.f32 %v1839_v19  ;;  %v7458_v10 = vld [vmem:[#allocation13_spill] sm:$0xff] }
 0x69b   : > { %v2696_v16 = vsub.f32 %v7458_v10, %v6292_v32  ;;  %v2643_v32 = vpop.f32.mrf.mxu3 }
 0x69c   : > { %v6426_v5 = vadd.f32 %v2643_v32, %v5937_v58 }
 0x69d   : > { %v1594_v52 = vpop.f32.mrf.mxu2  ;;  %v2713_v31 = vmul.f32 1.442695, %v2696_v16 }
 0x69e   : > { %v1613_v51 = vpack.c.bf16 %v1594_v52, %v1594_v52 }
 0x69f   : > { %4750 = vpow2.f32 %v2713_v31 }
 0x6a0   : > { %1630 = vst.msk [vmem:[#allocation2 + $0x38] sm:$0xf] %vm1615_vm8, %v1613_v51  ;;  %2374 = vrot.lane.b32.xlu2 %v5653_v3, %s5058_s14  ;;  %v6415_v35 = vpop.eup %4748  ;;  %4752 = vrcp.f32 %v1858_v60  ;;  %v7460_v60 = vld [vmem:[#allocation12_spill] sm:$0xff] }
 0x6a3   : > { %v2645_v1 = vpop.f32.mrf.mxu3 }
 0x6a4   : > { %v6438_v44 = vadd.f32 %v2645_v1, %v5937_v58 }
 0x6a5   : > { %v1596_v13 = vpop.f32.mrf.mxu2  ;;  %v6418_v62 = vpop.eup %4750 }
 0x6a6   : > { %v1614_v12 = vpack.c.bf16 %v1596_v13, %v1596_v13  ;;  %v4753_v30 = vpop.eup %4752 }
 0x6a7   : > { %v1897_v4 = vmul.f32 %v4753_v30, %v6308_v38 }
 0x6a8   : > { %1631 = vst.msk [vmem:[#allocation2 + $0x3c] sm:$0xf] %vm1615_vm8, %v1614_v12  ;;  %2372 = vrot.lane.b32.xlu2 %v5638_v27, %s5058_s14 }
 0x6ad   : > { %v2172_v34 = vpop.f32.mrf.mxu2 }
 0x6ae   : > { %v6457_v55 = vadd.f32 %v2172_v34, %v5937_v58 }
 0x6b5   : > { %v2174_v3 = vpop.f32.mrf.mxu2 }
 0x6b6   : > { %1871 = vadd.xlane.f32.xlu0 %v6415_v35  ;;  %v6422_v27 = vadd.f32 %v2174_v3, %v5937_v58 }
 0x6bd   : > { %v2177_v57 = vpop.f32.mrf.mxu2 }
 0x6be   : > { %2745 = vadd.xlane.f32.xlu0 %v6418_v62  ;;  %v6463_v52 = vadd.f32 %v2177_v57, %v5937_v58 }
 0x6c5   : > { %v2179_v56 = vpop.f32.mrf.mxu2 }
 0x6c6   : > { %2214 = vmax.xlane.f32.xlu0 %v6422_v27  ;;  %v6443_v24 = vadd.f32 %v2179_v56, %v5937_v58 }
 0x6cb   : > { %v1860_v40 = vpop.xlane.xlu2 %1859 }
 0x6cc   : > { %4754 = vrcp.f32 %v1860_v40 }
 0x6cd   : > { %v6428_v33 = vpop.f32.mrf.mxu2 }
 0x6ce   : > { %2679 = vmax.xlane.f32.xlu0 %v6426_v5 }
 0x6d1   : > { %2677 = vmax.xlane.f32.xlu2 %v6432_v22 }
 0x6d2   : > { %v4755_v47 = vpop.eup %4754 }
 0x6d3   : > { %v2664_v21 = vpop.xlane.xlu2 %2663  ;;  %v1898_v26 = vmul.f32 %v4755_v47, %v6345_v46  ;;  %v1866_v9 = vpop.xlane.xlu0 %1865 }
 0x6d4   : > { %v2695_v11 = vsub.f32 %v6356_v41, %v2664_v21 }
 0x6d5   : > { %v2184_v43 = vpop.f32.mrf.mxu2  ;;  %v1909_v2 = vpack.c.bf16 %v1898_v26, %v1897_v4 }
 0x6d6   : > { %v2711_v39 = vmul.f32 1.442695, %v2695_v11  ;;  %2681 = vmax.xlane.f32.xlu0 %v6438_v44  ;;  %v6474_v16 = vadd.f32 %v2184_v43, %v5937_v58 }
 0x6d7   : > { %1965 = vmatmul.bf16.gmra.mxu0 %v1909_v2  ;;  %v6502_v2 = vadd.f32 %v6428_v33, %v5937_v58 }
 0x6d8   : > { %4756 = vpow2.f32 %v2711_v39 }
 0x6d9   : > { %4758 = vrcp.f32 %v1862_v50 }
 0x6db   : > { %v1864_v6 = vpop.xlane.xlu2 %1863  ;;  %v6453_v49 = vpop.xlane.xlu0 %2673 }
 0x6dc   : > { %4760 = vrcp.f32 %v1864_v6 }
 0x6dd   : > { %v6445_v38 = vpop.f32.mrf.mxu2 }
 0x6de   : > { %v6447_v46 = vpop.eup %4756  ;;  %2218 = vmax.xlane.f32.xlu0 %v6443_v24  ;;  %v6497_v4 = vadd.f32 %v6445_v38, %v5937_v58 }
 0x6df   : > { %2743 = vadd.xlane.f32.xlu1 %v6447_v46  ;;  %v4759_v41 = vpop.eup %4758 }
 0x6e0   : > { %v1899_v8 = vmul.f32 %v4759_v41, %v6316_v14 }
 0x6e2   : > { %v4761_v63 = vpop.eup %4760 }
 0x6e3   : > { %v2668_v29 = vpop.xlane.xlu2 %2667  ;;  %v1900_v53 = vmul.f32 %v4761_v63, %v6370_v20  ;;  %v2824_v20 = vpop.permute.xlu1 %2823 }
 0x6e4   : > { %v2697_v25 = vsub.f32 %v6380_v59, %v2668_v29  ;;  %v1870_v13 = vpop.xlane.xlu0 %1869 }
 0x6e5   : > { %v2189_v61 = vpop.f32.mrf.mxu2  ;;  %v1910_v18 = vpack.c.bf16 %v1900_v53, %v1899_v8  ;;  %v7461_v8 = vld [vmem:[#allocation14_spill] sm:$0xff] }
 0x6e6   : > { %v2715_v17 = vmul.f32 1.442695, %v2697_v25 }
 0x6e7   : > { %2212 = vmax.xlane.f32.xlu1 %v6457_v55  ;;  %1970 = vmatmul.bf16.gmra.mxu0 %v1910_v18 }
 0x6e8   : > { %4762 = vpow2.f32 %v2715_v17  ;;  %v2648_v17 = vpop.f32.mrf.mxu3 }
 0x6e9   : > { %2368 = vrot.lane.b32.xlu2 %v5643_v23, %s5058_s14  ;;  %4764 = vrcp.f32 %v1866_v9 }
 0x6eb   : > { %v1868_v14 = vpop.xlane.xlu2 %1867  ;;  %v2371_v57 = vpop.permute.xlu1 %2370 }
 0x6ec   : > { %4766 = vrcp.f32 %v1868_v14 }
 0x6ed   : > { %v2192_v59 = vpop.f32.mrf.mxu2  ;;  %4768 = vrcp.f32 %v1870_v13 }
 0x6ee   : > { %v6465_v51 = vpop.eup %4762  ;;  %v6512_v63 = vadd.f32 %v2192_v59, %v5937_v58 }
 0x6ef   : > { %2216 = vmax.xlane.f32.xlu1 %v6463_v52  ;;  %2747 = vadd.xlane.f32.xlu0 %v6465_v51  ;;  %v4765_v12 = vpop.eup %4764 }
 0x6f0   : > { %v1901_v34 = vmul.f32 %v4765_v12, %v6358_v28  ;;  %v6480_v28 = vadd.f32 %v2189_v61, %v5937_v58 }
 0x6f1   : > { %2366 = vrot.lane.b32.xlu2 %v7459_v7, %s5058_s14 }
 0x6f2   : > { %v4767_v23 = vpop.eup %4766 }
 0x6f3   : > { %v2379_v19 = vpop.permute.xlu2 %2378  ;;  %v1902_v10 = vmul.f32 %v4767_v23, %v6387_v0  ;;  %v6484_v32 = vpop.xlane.xlu1 %2675 }
 0x6f4   : > { %2388 = vmatpush.bf16.msrb.mxu1 %v2379_v19  ;;  %v4769_v11 = vpop.eup %4768 }
 0x6f5   : > { %v2194_v31 = vpop.f32.mrf.mxu2  ;;  %v1911_v3 = vpack.c.bf16 %v1902_v10, %v1901_v34  ;;  %v1903_v6 = vmul.f32 %v4769_v11, %v6382_v45  ;;  %v2698_v45 = vsub.f32 %v7461_v8, %v6306_v15 }
 0x6f6   : > { %v2828_v48 = vpop.permute.xlu0 %2827  ;;  %v6505_v39 = vadd.f32 %v2194_v31, %v5937_v58 }
 0x6f7   : > { %2222 = vmax.xlane.f32.xlu0 %v6474_v16  ;;  %1975 = vmatmul.bf16.gmra.mxu0 %v1911_v3 }
 0x6f8   : > { %2840 = vmatpush.bf16.msra.mxu0 %v2828_v48 }
 0x6f9   : > { %2817 = vrot.lane.b32.xlu2 %v7459_v7, %s5057_s21 }
 0x6fb   : > { %v2377_v56 = vpop.permute.xlu2 %2376  ;;  %v2820_v50 = vpop.permute.xlu1 %2819 }
 0x6fc   : > { %2841 = vmatpush.bf16.msra.mxu0 %v2826_v54  ;;  %2389 = vmatpush.bf16.msrb.mxu1 %v2377_v56 }
 0x6fd   : > { %v6482_v0 = vpop.f32.mrf.mxu2 }
 0x6fe   : > { %v2822_v40 = vpop.permute.xlu0 %2821 }
 0x6ff   : > { %2226 = vmax.xlane.f32.xlu0 %v6480_v28 }
 0x700   : > { %2842 = vmatpush.bf16.msra.mxu0 %v2824_v20  ;;  %v6531_v20 = vadd.f32 %v2648_v17, %v5937_v58 }
 0x701   : > { %2815 = vrot.lane.b32.xlu2 %v7460_v60, %s5057_s21 }
 0x703   : > { %v2375_v30 = vpop.permute.xlu2 %2374 }
 0x704   : > { %2843 = vmatpush.bf16.msra.mxu0 %v2822_v40  ;;  %2390 = vmatpush.bf16.msrb.mxu1 %v2375_v30 }
 0x705   : > { %v2199_v1 = vpop.f32.mrf.mxu2 }
 0x706   : > { %v6490_v47 = vadd.f32 %v2199_v1, %v5937_v58 }
 0x708   : > { %2844 = vmatpush.bf16.msra.mxu0 %v2820_v50  ;;  %2364 = vrot.lane.b32.xlu1 %v7460_v60, %s5058_s14  ;;  %v2650_v50 = vpop.f32.mrf.mxu3 }
 0x709   : > { %2234 = vmax.xlane.f32.xlu0 %v6490_v47 }
 0x70b   : > { %v2373_v21 = vpop.permute.xlu2 %2372 }
 0x70c   : > { %2391 = vmatpush.bf16.msrb.mxu1 %v2373_v21 }
 0x70d   : > { %v2202_v13 = vpop.f32.mrf.mxu2 }
 0x70e   : > { %v6535_v23 = vadd.f32 %v2202_v13, %v5937_v58 }
 0x710   : > { %2392 = vmatpush.bf16.msrb.mxu1 %v2371_v57 }
 0x729   : > { %v1872_v26 = vpop.xlane.xlu0 %1871 }
 0x72a   : > { %4770 = vrcp.f32 %v1872_v26  ;;  %2224 = vmax.xlane.f32.xlu2 %v6497_v4 }
 0x730   : > { %v4771_v43 = vpop.eup %4770 }
 0x731   : > { %v2746_v9 = vpop.xlane.xlu0 %2745  ;;  %v1904_v38 = vmul.f32 %v4771_v43, %v6415_v35  ;;  %v2717_v35 = vmul.f32 1.442695, %v2698_v45 }
 0x732   : > { %2230 = vmax.xlane.f32.xlu2 %v6505_v39  ;;  %2220 = vmax.xlane.f32.xlu1 %v6502_v2 }
 0x733   : > { %v1912_v41 = vpack.c.bf16 %v1904_v38, %v1903_v6  ;;  %v7462_v6 = vld [vmem:[#allocation15_spill] sm:$0xff] }
 0x734   : > { %v2699_v38 = vsub.f32 %v7462_v6, %v6314_v36  ;;  %v2204_v36 = vpop.f32.mrf.mxu2 }
 0x735   : > { %1980 = vmatmul.bf16.gmra.mxu0 %v1912_v41 }
 0x736   : > { %v2719_v41 = vmul.f32 1.442695, %v2699_v38 }
 0x739   : > { %v2215_v54 = vpop.xlane.xlu0 %2214 }
 0x73a   : > { %v2245_v33 = vsub.f32 %v6422_v27, %v2215_v54  ;;  %2228 = vmax.xlane.f32.xlu1 %v6512_v63 }
 0x73c   : > { %v2262_v29 = vmul.f32 1.442695, %v2245_v33  ;;  %v6566_v33 = vadd.f32 %v2650_v50, %v5937_v58 }
 0x73e   : > { %4772 = vpow2.f32 %v2262_v29 }
 0x73f   : > { %4774 = vpow2.f32 %v2717_v35 }
 0x741   : > { %v6523_v61 = vpop.xlane.xlu0 %2679 }
 0x744   : > { %v6518_v53 = vpop.eup %4772  ;;  %v6520_v25 = vpop.xlane.xlu2 %2677 }
 0x745   : > { %2294 = vadd.xlane.f32.xlu1 %v6518_v53  ;;  %v6525_v18 = vpop.eup %4774 }
 0x749   : > { %v6528_v14 = vpop.xlane.xlu0 %2681 }
 0x74c   : > { %v2369_v27 = vpop.permute.xlu2 %2368 }
 0x74d   : > { %2393 = vmatpush.bf16.msrb.mxu1 %v2369_v27  ;;  %2749 = vadd.xlane.f32.xlu1 %v6525_v18 }
 0x751   : > { %v2219_v12 = vpop.xlane.xlu0 %2218 }
 0x752   : > { %v2744_v15 = vpop.xlane.xlu1 %2743  ;;  %v2247_v21 = vsub.f32 %v6443_v24, %v2219_v12  ;;  %v2700_v24 = vsub.f32 %v6368_v37, %v6453_v49  ;;  %v2701_v37 = vsub.f32 %v6274_v42, %v6484_v32  ;;  %v2207_v42 = vpop.f32.mrf.mxu2 }
 0x753   : > { %4776 = vrcp.f32 %v2744_v15  ;;  %v2702_v15 = vsub.f32 %v6432_v22, %v6520_v25 }
 0x754   : > { %v2367_v59 = vpop.permute.xlu2 %2366  ;;  %4778 = vrcp.f32 %v2746_v9  ;;  %v2723_v35 = vmul.f32 1.442695, %v2701_v37 }
 0x755   : > { %2394 = vmatpush.bf16.msrb.mxu1 %v2367_v59  ;;  %2683 = vmax.xlane.f32.xlu1 %v6531_v20  ;;  %v2725_v32 = vmul.f32 1.442695, %v2702_v15  ;;  %v6588_v59 = vadd.f32 %v2204_v36, %v5937_v58 }
 0x759   : > { %v4777_v31 = vpop.eup %4776 }
 0x75a   : > { %v2213_v7 = vpop.xlane.xlu1 %2212  ;;  %v4779_v3 = vpop.eup %4778  ;;  %v2791_v48 = vmul.f32 %v4777_v31, %v6447_v46  ;;  %v2266_v46 = vmul.f32 1.442695, %v2247_v21 }
 0x75b   : > { %v2244_v19 = vsub.f32 %v6457_v55, %v2213_v7  ;;  %v2792_v40 = vmul.f32 %v4779_v3, %v6418_v62  ;;  %v6551_v62 = vadd.f32 %v6482_v0, %v5937_v58  ;;  %v2721_v0 = vmul.f32 1.442695, %v2700_v24  ;;  %v2209_v12 = vpop.f32.mrf.mxu2 }
 0x75c   : > { %v2818_v34 = vpop.permute.xlu2 %2817  ;;  %v6597_v22 = vadd.f32 %v2209_v12, %v5937_v58 }
 0x75d   : > { %v2260_v10 = vmul.f32 1.442695, %v2244_v19  ;;  %2845 = vmatpush.bf16.msra.mxu0 %v2818_v34  ;;  %2236 = vmax.xlane.f32.xlu1 %v6535_v23  ;;  %v2807_v26 = vpack.c.bf16 %v2792_v40, %v2791_v48 }
 0x75f   : > { %4780 = vpow2.f32 %v2260_v10 }
 0x762   : > { %v2217_v57 = vpop.xlane.xlu1 %2216  ;;  %v6540_v56 = vpop.xlane.xlu0 %2747 }
 0x763   : > { %v2246_v60 = vsub.f32 %v6463_v52, %v2217_v57 }
 0x764   : > { %v2816_v30 = vpop.permute.xlu2 %2815 }
 0x765   : > { %v6544_v1 = vpop.eup %4780  ;;  %v2264_v55 = vmul.f32 1.442695, %v2246_v60  ;;  %2846 = vmatpush.bf16.msra.mxu0 %v2816_v30 }
 0x766   : > { %2292 = vadd.xlane.f32.xlu2 %v6544_v1 }
 0x767   : > { %4782 = vpow2.f32 %v2264_v55 }
 0x768   : > { %2847 = vmatmul.bf16.vlgmr.msra.gmra.mxu0 %v2807_v26  ;;  %4784 = vpow2.f32 %v2266_v46  ;;  %v2704_v46 = vsub.f32 %v6438_v44, %v6528_v14 }
 0x76a   : > { %v2223_v11 = vpop.xlane.xlu0 %2222 }
 0x76b   : > { %v2249_v43 = vsub.f32 %v6474_v16, %v2223_v11  ;;  %v6561_v16 = vpop.f32.mrf.mxu3 }
 0x76d   : > { %v6553_v52 = vpop.eup %4782  ;;  %v2270_v9 = vmul.f32 1.442695, %v2249_v43  ;;  %v6622_v43 = vadd.f32 %v6561_v16, %v5937_v58 }
 0x76e   : > { %2232 = vmax.xlane.f32.xlu2 %v6551_v62  ;;  %2296 = vadd.xlane.f32.xlu0 %v6553_v52  ;;  %v6563_v54 = vpop.eup %4784 }
 0x76f   : > { %4786 = vpow2.f32 %v2270_v9  ;;  %v2729_v9 = vmul.f32 1.442695, %v2704_v46 }
 0x770   : > { %4788 = vpow2.f32 %v2719_v41 }
 0x771   : > { %4790 = vpow2.f32 %v2721_v0  ;;  %v6639_v0 = vadd.f32 %v2207_v42, %v5937_v58 }
 0x772   : > { %4792 = vpow2.f32 %v2723_v35  ;;  %v2227_v21 = vpop.xlane.xlu0 %2226  ;;  %v2703_v35 = vsub.f32 %v6426_v5, %v6523_v61 }
 0x773   : > { %v2655_v49 = vpop.f32.mrf.mxu3  ;;  %4794 = vpow2.f32 %v2725_v32 }
 0x774   : > { %v6580_v17 = vadd.f32 %v2655_v49, %v5937_v58  ;;  %v2727_v42 = vmul.f32 1.442695, %v2703_v35 }
 0x775   : > { %v6568_v29 = vpop.eup %4786 }
 0x776   : > { %2685 = vmax.xlane.f32.xlu2 %v6566_v33  ;;  %2298 = vadd.xlane.f32.xlu0 %v6563_v54  ;;  %v6575_v45 = vpop.eup %4788 }
 0x777   : > { %2302 = vadd.xlane.f32.xlu1 %v6568_v29  ;;  %v6577_v27 = vpop.eup %4790 }
 0x778   : > { %v6590_v13 = vpop.eup %4792 }
 0x779   : > { %v6594_v7 = vpop.eup %4794 }
 0x77a   : > { %v2365_v8 = vpop.permute.xlu1 %2364 }
 0x77b   : > { %2395 = vmatpush.bf16.msrb.mxu1 %v2365_v8  ;;  %v2658_v40 = vpop.f32.mrf.mxu3 }
 0x77e   : > { %2751 = vadd.xlane.f32.xlu2 %v6575_v45  ;;  %2753 = vadd.xlane.f32.xlu0 %v6577_v27 }
 0x77f   : > { %2689 = vmax.xlane.f32.xlu1 %v6580_v17 }
 0x783   : > { %v2660_v12 = vpop.f32.mrf.mxu3 }
 0x786   : > { %2238 = vmax.xlane.f32.xlu2 %v6588_v59 }
 0x787   : > { %2755 = vadd.xlane.f32.xlu1 %v6590_v13 }
 0x78e   : > { %2757 = vadd.xlane.f32.xlu2 %v6594_v7 }
 0x78f   : > { %2242 = vmax.xlane.f32.xlu1 %v6597_v22 }
 0x79d   : > { %v2225_v25 = vpop.xlane.xlu2 %2224 }
 0x79e   : > { %v2250_v19 = vsub.f32 %v6497_v4, %v2225_v25  ;;  %v6609_v4 = vadd.f32 %v2658_v40, %v5937_v58  ;;  %v2235_v25 = vpop.xlane.xlu0 %2234 }
 0x7a0   : > { %v2272_v34 = vmul.f32 1.442695, %v2250_v19 }
 0x7a2   : > { %4796 = vpow2.f32 %v2272_v34 }
 0x7a5   : > { %v2221_v10 = vpop.xlane.xlu1 %2220  ;;  %v2231_v3 = vpop.xlane.xlu2 %2230 }
 0x7a6   : > { %v2248_v31 = vsub.f32 %v6502_v2, %v2221_v10  ;;  %v2253_v60 = vsub.f32 %v6505_v39, %v2231_v3  ;;  %v2251_v39 = vsub.f32 %v6480_v28, %v2227_v21  ;;  %v6632_v28 = vpop.f32.mrf.mxu0 }
 0x7a8   : > { %v6603_v48 = vpop.eup %4796  ;;  %v2268_v57 = vmul.f32 1.442695, %v2248_v31  ;;  %v2278_v30 = vmul.f32 1.442695, %v2253_v60  ;;  %v2274_v11 = vmul.f32 1.442695, %v2251_v39 }
 0x7a9   : > { %2304 = vadd.xlane.f32.xlu2 %v6603_v48 }
 0x7aa   : > { %4798 = vpow2.f32 %v2268_v57 }
 0x7ab   : > { %4800 = vpow2.f32 %v2278_v30 }
 0x7ad   : > { %v2229_v55 = vpop.xlane.xlu1 %2228 }
 0x7ae   : > { %v2252_v50 = vsub.f32 %v6512_v63, %v2229_v55  ;;  %v6645_v8 = vpop.f32.mrf.mxu0 }
 0x7b0   : > { %v6611_v26 = vpop.eup %4798  ;;  %v2276_v2 = vmul.f32 1.442695, %v2252_v50 }
 0x7b1   : > { %2691 = vmax.xlane.f32.xlu2 %v6609_v4  ;;  %2300 = vadd.xlane.f32.xlu0 %v6611_v26  ;;  %v6618_v63 = vpop.eup %4800 }
 0x7b2   : > { %4802 = vpow2.f32 %v2276_v2 }
 0x7b3   : > { %4804 = vpow2.f32 %v2274_v11 }
 0x7b4   : > { %4806 = vpow2.f32 %v2729_v9 }
 0x7b5   : > { %4808 = vrcp.f32 %v6540_v56 }
 0x7b8   : > { %v6624_v6 = vpop.eup %4802  ;;  %v2295_v38 = vpop.xlane.xlu1 %2294 }
 0x7b9   : > { %2310 = vadd.xlane.f32.xlu2 %v6618_v63  ;;  %2687 = vmax.xlane.f32.xlu0 %v6622_v43  ;;  %v6630_v44 = vpop.eup %4804 }
 0x7ba   : > { %2308 = vadd.xlane.f32.xlu1 %v6624_v6  ;;  %v6634_v24 = vpop.eup %4806 }
 0x7bb   : > { %v4809_v16 = vpop.eup %4808 }
 0x7bc   : > { %v2793_v56 = vmul.f32 %v4809_v16, %v6465_v51  ;;  %v6650_v51 = vadd.f32 %v2660_v12, %v5937_v58 }
 0x7c0   : > { %v2750_v14 = vpop.xlane.xlu1 %2749 }
 0x7c1   : > { %4810 = vrcp.f32 %v2750_v14  ;;  %2306 = vadd.xlane.f32.xlu0 %v6630_v44 }
 0x7c2   : > { %2761 = vadd.xlane.f32.xlu1 %v6634_v24 }
 0x7c7   : > { %v4811_v41 = vpop.eup %4810 }
 0x7c8   : > { %v2684_v36 = vpop.xlane.xlu1 %2683  ;;  %v2794_v37 = vmul.f32 %v4811_v41, %v6525_v18  ;;  %v2255_v18 = vsub.f32 %v6490_v47, %v2235_v25 }
 0x7c9   : > { %v2705_v49 = vsub.f32 %v6531_v20, %v2684_v36  ;;  %2240 = vmax.xlane.f32.xlu0 %v6639_v0  ;;  %v6654_v20 = vpop.f32.mrf.mxu0 }
 0x7ca   : > { %v2808_v15 = vpack.c.bf16 %v2794_v37, %v2793_v56  ;;  %v2282_v5 = vmul.f32 1.442695, %v2255_v18 }
 0x7cb   : > { %v2731_v32 = vmul.f32 1.442695, %v2705_v49 }
 0x7cc   : > { %2852 = vmatmul.bf16.gmra.mxu0 %v2808_v15 }
 0x7cd   : > { %4812 = vpow2.f32 %v2731_v32 }
 0x7ce   : > { %4814 = vpow2.f32 %v2727_v42 }
 0x7cf   : > { %4816 = vrcp.f32 %v2295_v38 }
 0x7d0   : > { %v2237_v61 = vpop.xlane.xlu1 %2236  ;;  %4818 = vpow2.f32 %v2282_v5 }
 0x7d1   : > { %2693 = vmax.xlane.f32.xlu0 %v6650_v51  ;;  %v2256_v58 = vsub.f32 %v6535_v23, %v2237_v61  ;;  %v6663_v47 = vpop.f32.mrf.mxu0 }
 0x7d3   : > { %v6656_v19 = vpop.eup %4812  ;;  %v2284_v3 = vmul.f32 1.442695, %v2256_v58 }
 0x7d4   : > { %2763 = vadd.xlane.f32.xlu1 %v6656_v19  ;;  %v6659_v34 = vpop.eup %4814 }
 0x7d5   : > { %v4817_v31 = vpop.eup %4816 }
 0x7d6   : > { %v6665_v57 = vpop.eup %4818  ;;  %v2341_v50 = vmul.f32 %v4817_v31, %v6518_v53 }
 0x7d9   : > { %v2293_v10 = vpop.xlane.xlu2 %2292  ;;  %2759 = vadd.xlane.f32.xlu0 %v6659_v34  ;;  %v6671_v39 = vpop.f32.mrf.mxu0 }
 0x7da   : > { %4820 = vrcp.f32 %v2293_v10 }
 0x7db   : > { %4822 = vpow2.f32 %v2284_v3 }
 0x7e0   : > { %v4821_v60 = vpop.eup %4820 }
 0x7e1   : > { %v2233_v40 = vpop.xlane.xlu2 %2232  ;;  %2314 = vadd.xlane.f32.xlu0 %v6665_v57  ;;  %v2297_v30 = vpop.xlane.xlu0 %2296  ;;  %v2340_v55 = vmul.f32 %v4821_v60, %v6544_v1 }
 0x7e2   : > { %v2254_v21 = vsub.f32 %v6551_v62, %v2233_v40  ;;  %v6673_v46 = vpop.eup %4822  ;;  %v6680_v41 = vpop.f32.mrf.mxu0 }
 0x7e3   : > { %v2356_v23 = vpack.c.bf16 %v2341_v50, %v2340_v55 }
 0x7e4   : > { %v2280_v2 = vmul.f32 1.442695, %v2254_v21 }
 0x7e5   : > { %2396 = vmatmul.bf16.vlgmr.msrb.gmra.mxu1 %v2356_v23 }
 0x7e6   : > { %4824 = vpow2.f32 %v2280_v2 }
 0x7e7   : > { %4826 = vrcp.f32 %v2297_v30 }
 0x7e9   : > { %v2686_v11 = vpop.xlane.xlu2 %2685  ;;  %2316 = vadd.xlane.f32.xlu0 %v6673_v46  ;;  %v2299_v9 = vpop.xlane.xlu0 %2298 }
 0x7ea   : > { %v2706_v1 = vsub.f32 %v6566_v33, %v2686_v11  ;;  %v2303_v38 = vpop.xlane.xlu1 %2302  ;;  %4828 = vrcp.f32 %v2299_v9  ;;  %v6688_v18 = vpop.f32.mrf.mxu0 }
 0x7ec   : > { %v6677_v53 = vpop.eup %4824  ;;  %v2733_v62 = vmul.f32 1.442695, %v2706_v1 }
 0x7ed   : > { %2312 = vadd.xlane.f32.xlu2 %v6677_v53  ;;  %v4827_v14 = vpop.eup %4826 }
 0x7ee   : > { %4830 = vpow2.f32 %v2733_v62  ;;  %v2342_v37 = vmul.f32 %v4827_v14, %v6553_v52 }
 0x7f0   : > { %v4829_v16 = vpop.eup %4828 }
 0x7f1   : > { %v2752_v36 = vpop.xlane.xlu2 %2751  ;;  %v2754_v56 = vpop.xlane.xlu0 %2753  ;;  %v2343_v49 = vmul.f32 %v4829_v16, %v6563_v54 }
 0x7f2   : > { %4832 = vrcp.f32 %v2752_v36  ;;  %v2690_v33 = vpop.xlane.xlu1 %2689  ;;  %v6696_v60 = vpop.f32.mrf.mxu0 }
 0x7f3   : > { %v2708_v35 = vsub.f32 %v6580_v17, %v2690_v33  ;;  %4834 = vrcp.f32 %v2754_v56  ;;  %v2357_v15 = vpack.c.bf16 %v2343_v49, %v2342_v37 }
 0x7f4   : > { %v6685_v32 = vpop.eup %4830 }
 0x7f5   : > { %v2737_v12 = vmul.f32 1.442695, %v2708_v35  ;;  %2765 = vadd.xlane.f32.xlu2 %v6685_v32  ;;  %2401 = vmatmul.bf16.gmra.mxu1 %v2357_v15 }
 0x7f7   : > { %4836 = vpow2.f32 %v2737_v12 }
 0x7f8   : > { %v4833_v42 = vpop.eup %4832 }
 0x7f9   : > { %v4835_v25 = vpop.eup %4834  ;;  %v2239_v52 = vpop.xlane.xlu2 %2238  ;;  %v2795_v54 = vmul.f32 %v4833_v42, %v6575_v45 }
 0x7fa   : > { %v2257_v5 = vsub.f32 %v6588_v59, %v2239_v52  ;;  %v2796_v17 = vmul.f32 %v4835_v25, %v6577_v27  ;;  %v2756_v31 = vpop.xlane.xlu1 %2755  ;;  %v6703_v55 = vpop.f32.mrf.mxu0 }
 0x7fc   : > { %v2286_v61 = vmul.f32 1.442695, %v2257_v5  ;;  %v2809_v10 = vpack.c.bf16 %v2796_v17, %v2795_v54 }
 0x7fd   : > { %v6693_v58 = vpop.eup %4836 }
 0x7fe   : > { %4838 = vpow2.f32 %v2286_v61  ;;  %2769 = vadd.xlane.f32.xlu0 %v6693_v58  ;;  %2857 = vmatmul.bf16.gmra.mxu0 %v2809_v10 }
 0x7ff   : > { %4840 = vrcp.f32 %v2756_v31 }
 0x801   : > { %v2758_v3 = vpop.xlane.xlu2 %2757 }
 0x802   : > { %4842 = vrcp.f32 %v2758_v3  ;;  %v6705_v21 = vpop.f32.mrf.mxu0  ;;  %v2243_v49 = vpop.xlane.xlu1 %2242 }
 0x803   : > { %4844 = vrcp.f32 %v2303_v38 }
 0x804   : > { %v6698_v40 = vpop.eup %4838 }
 0x805   : > { %2318 = vadd.xlane.f32.xlu1 %v6698_v40  ;;  %v4841_v45 = vpop.eup %4840 }
 0x806   : > { %v2797_v59 = vmul.f32 %v4841_v45, %v6590_v13 }
 0x808   : > { %v4843_v27 = vpop.eup %4842 }
 0x809   : > { %v2798_v30 = vmul.f32 %v4843_v27, %v6594_v7  ;;  %v4845_v14 = vpop.eup %4844 }
 0x80a   : > { %v6707_v2 = vpop.f32.mrf.mxu0  ;;  %v2345_v56 = vmul.f32 %v4845_v14, %v6568_v29 }
 0x80b   : > { %v2810_v50 = vpack.c.bf16 %v2798_v30, %v2797_v59 }
 0x80e   : > { %2862 = vmatmul.bf16.gmra.mxu0 %v2810_v50 }
 0x812   : > { %v6710_v13 = vpop.f32.mrf.mxu0 }
 0x81a   : > { %v6719_v15 = vpop.f32.mrf.mxu0 }
 0x81c   : > { %v2305_v23 = vpop.xlane.xlu2 %2304 }
 0x822   : > { %v6726_v5 = vpop.f32.mrf.mxu0 }
 0x824   : > { %v2692_v11 = vpop.xlane.xlu2 %2691  ;;  %v2301_v9 = vpop.xlane.xlu0 %2300 }
 0x825   : > { %v2709_v1 = vsub.f32 %v6609_v4, %v2692_v11  ;;  %4846 = vrcp.f32 %v2301_v9  ;;  %v2259_v4 = vsub.f32 %v6597_v22, %v2243_v49 }
 0x827   : > { %v2739_v62 = vmul.f32 1.442695, %v2709_v1 }
 0x829   : > { %4848 = vpow2.f32 %v2739_v62 }
 0x82a   : > { %v6735_v27 = vpop.f32.mrf.mxu0 }
 0x82b   : > { %v4847_v7 = vpop.eup %4846 }
 0x82c   : > { %v2688_v16 = vpop.xlane.xlu0 %2687  ;;  %v2344_v36 = vmul.f32 %v4847_v7, %v6611_v26  ;;  %v2290_v26 = vmul.f32 1.442695, %v2259_v4  ;;  %v2311_v25 = vpop.xlane.xlu2 %2310 }
 0x82d   : > { %v2707_v37 = vsub.f32 %v6622_v43, %v2688_v16  ;;  %v2309_v17 = vpop.xlane.xlu1 %2308  ;;  %v4519_v16 = vld [vmem:[%s5194_s19 + $0x8] sm:$0xff] }
 0x82e   : > { %v2358_v38 = vpack.c.bf16 %v2345_v56, %v2344_v36  ;;  %3091 = vmatpush.bf16.msra.mxu2 %v4519_v16 }
 0x82f   : > { %v6715_v33 = vpop.eup %4848  ;;  %v2735_v35 = vmul.f32 1.442695, %v2707_v37 }
 0x830   : > { %2771 = vadd.xlane.f32.xlu0 %v6715_v33  ;;  %2406 = vmatmul.bf16.gmra.mxu1 %v2358_v38 }
 0x831   : > { %4850 = vpow2.f32 %v2735_v35 }
 0x832   : > { %4852 = vrcp.f32 %v2305_v23 }
 0x834   : > { %v2307_v12 = vpop.xlane.xlu0 %2306 }
 0x835   : > { %4854 = vrcp.f32 %v2307_v12  ;;  %v2762_v23 = vpop.xlane.xlu1 %2761 }
 0x836   : > { %4856 = vpow2.f32 %v2290_v26 }
 0x837   : > { %v6721_v29 = vpop.eup %4850  ;;  %4858 = vrcp.f32 %v2311_v25 }
 0x838   : > { %2767 = vadd.xlane.f32.xlu2 %v6721_v29  ;;  %v4853_v43 = vpop.eup %4852  ;;  %4860 = vrcp.f32 %v2309_v17 }
 0x839   : > { %v2346_v54 = vmul.f32 %v4853_v43, %v6603_v48  ;;  %v1987_v48 = vpack.c.bf16 %v6645_v8, %v6645_v8 }
 0x83b   : > { %v4855_v42 = vpop.eup %4854 }
 0x83c   : > { %v2241_v52 = vpop.xlane.xlu0 %2240  ;;  %v2347_v22 = vmul.f32 %v4855_v42, %v6630_v44  ;;  %v6729_v31 = vpop.eup %4856 }
 0x83d   : > { %v2258_v61 = vsub.f32 %v6639_v0, %v2241_v52  ;;  %v4859_v45 = vpop.eup %4858 }
 0x83e   : > { %v2359_v10 = vpack.c.bf16 %v2347_v22, %v2346_v54  ;;  %v4861_v59 = vpop.eup %4860  ;;  %v2349_v11 = vmul.f32 %v4859_v45, %v6618_v63  ;;  %v1986_v63 = vpack.c.bf16 %v6632_v28, %v6632_v28  ;;  %v1989_v28 = vpack.c.bf16 %v6663_v47, %v6663_v47 }
 0x83f   : > { %v2288_v3 = vmul.f32 1.442695, %v2258_v61  ;;  %v2348_v8 = vmul.f32 %v4861_v59, %v6624_v6 }
 0x840   : > { %2322 = vadd.xlane.f32.xlu2 %v6729_v31  ;;  %2411 = vmatmul.bf16.gmra.mxu1 %v2359_v10 }
 0x841   : > { %4862 = vpow2.f32 %v2288_v3  ;;  %v2360_v1 = vpack.c.bf16 %v2349_v11, %v2348_v8 }
 0x844   : > { %2020 = vrot.lane.b32.xlu0 %v1987_v48, %s5059_s24  ;;  %v2694_v44 = vpop.xlane.xlu0 %2693  ;;  %v1988_v48 = vpack.c.bf16 %v6654_v20, %v6654_v20 }
 0x845   : > { %v2710_v0 = vsub.f32 %v6650_v51, %v2694_v44  ;;  %v6745_v51 = vpop.f32.mrf.mxu0 }
 0x847   : > { %v6738_v30 = vpop.eup %4862  ;;  %v2741_v50 = vmul.f32 1.442695, %v2710_v0 }
 0x848   : > { %2320 = vadd.xlane.f32.xlu1 %v6738_v30 }
 0x849   : > { %4864 = vpow2.f32 %v2741_v50 }
 0x84a   : > { %4866 = vrcp.f32 %v2762_v23  ;;  %v1991_v23 = vpack.c.bf16 %v6680_v41, %v6680_v41 }
 0x84c   : > { %v2760_v9 = vpop.xlane.xlu0 %2759 }
 0x84d   : > { %4868 = vrcp.f32 %v2760_v9  ;;  %v2848_v37 = vpop.f32.mrf.mxu0 }
 0x84e   : > { %v2888_v38 = vpack.c.bf16 %v2848_v37, %v2848_v37 }
 0x84f   : > { %v6743_v62 = vpop.eup %4864 }
 0x850   : > { %2416 = vmatmul.bf16.gmra.mxu1 %v2360_v1  ;;  %2773 = vadd.xlane.f32.xlu1 %v6743_v62  ;;  %v4867_v14 = vpop.eup %4866 }
 0x851   : > { %v2800_v6 = vmul.f32 %v4867_v14, %v6634_v24  ;;  %v2764_v24 = vpop.xlane.xlu1 %2763 }
 0x853   : > { %v4869_v7 = vpop.eup %4868 }
 0x854   : > { %v2799_v36 = vmul.f32 %v4869_v7, %v6659_v34  ;;  %v2315_v49 = vpop.xlane.xlu0 %2314 }
 0x855   : > { %4870 = vrcp.f32 %v2315_v49  ;;  %v2850_v4 = vpop.f32.mrf.mxu0 }
 0x856   : > { %v2811_v56 = vpack.c.bf16 %v2800_v6, %v2799_v36  ;;  %v2889_v0 = vpack.c.bf16 %v2850_v4, %v2850_v4  ;;  %v1990_v36 = vpack.c.bf16 %v6671_v39, %v6671_v39  ;;  %v1995_v39 = vpack.c.bf16 %v6705_v21, %v6705_v21 }
 0x858   : > { %2018 = vrot.lane.b32.xlu2 %v1986_v63, %s5059_s24  ;;  %2867 = vmatmul.bf16.gmra.mxu0 %v2811_v56  ;;  %v1993_v56 = vpack.c.bf16 %v6696_v60, %v6696_v60 }
 0x85b   : > { %v4871_v12 = vpop.eup %4870 }
 0x85c   : > { %v2351_v52 = vmul.f32 %v4871_v12, %v6665_v57  ;;  %v2317_v50 = vpop.xlane.xlu0 %2316 }
 0x85d   : > { %v2853_v54 = vpop.f32.mrf.mxu0 }
 0x85e   : > { %v2890_v10 = vpack.c.bf16 %v2853_v54, %v2853_v54 }
 0x860   : > { %v2313_v35 = vpop.xlane.xlu2 %2312  ;;  %2920 = vrot.lane.b32.xlu2 %v2888_v38, %s5060_s27 }
 0x861   : > { %4872 = vrcp.f32 %v2313_v35 }
 0x862   : > { %v2397_v34 = vpop.f32.mrf.mxu1  ;;  %4874 = vrcp.f32 %v2764_v24 }
 0x863   : > { %v2437_v43 = vpack.c.bf16 %v2397_v34, %v2397_v34 }
 0x865   : > { %v2855_v59 = vpop.f32.mrf.mxu0 }
 0x866   : > { %v2891_v6 = vpack.c.bf16 %v2855_v59, %v2855_v59 }
 0x867   : > { %v4873_v26 = vpop.eup %4872 }
 0x868   : > { %v2766_v42 = vpop.xlane.xlu2 %2765  ;;  %2024 = vrot.lane.b32.xlu2 %v1989_v28, %s5059_s24  ;;  %v2350_v25 = vmul.f32 %v4873_v26, %v6677_v53  ;;  %v4875_v47 = vpop.eup %4874 }
 0x869   : > { %4876 = vrcp.f32 %v2766_v42  ;;  %2469 = vrot.lane.b32.xlu1 %v2437_v43, %s5061_s28  ;;  %v2801_v57 = vmul.f32 %v4875_v47, %v6656_v19 }
 0x86a   : > { %v2399_v22 = vpop.f32.mrf.mxu1  ;;  %v2361_v17 = vpack.c.bf16 %v2351_v52, %v2350_v25  ;;  %4878 = vrcp.f32 %v2317_v50 }
 0x86b   : > { %v2438_v61 = vpack.c.bf16 %v2399_v22, %v2399_v22 }
 0x86c   : > { %2421 = vmatmul.bf16.gmra.mxu1 %v2361_v17 }
 0x86d   : > { %2471 = vrot.lane.b32.xlu0 %v2438_v61, %s5061_s28 }
 0x86f   : > { %v4877_v3 = vpop.eup %4876 }
 0x870   : > { %2924 = vrot.lane.b32.xlu2 %v2890_v10, %s5060_s27  ;;  %v2802_v53 = vmul.f32 %v4877_v3, %v6685_v32  ;;  %v4879_v9 = vpop.eup %4878 }
 0x871   : > { %2022 = vrot.lane.b32.xlu1 %v1988_v48, %s5059_s24  ;;  %v2352_v41 = vmul.f32 %v4879_v9, %v6673_v46  ;;  %v2770_v49 = vpop.xlane.xlu0 %2769 }
 0x872   : > { %v2402_v44 = vpop.f32.mrf.mxu1  ;;  %v2812_v45 = vpack.c.bf16 %v2802_v53, %v2801_v57 }
 0x873   : > { %v2439_v32 = vpack.c.bf16 %v2402_v44, %v2402_v44 }
 0x874   : > { %2872 = vmatmul.bf16.gmra.mxu0 %v2812_v45 }
 0x875   : > { %2922 = vrot.lane.b32.xlu0 %v2889_v0, %s5060_s27 }
 0x878   : > { %v2319_v20 = vpop.xlane.xlu1 %2318  ;;  %2028 = vrot.lane.b32.xlu2 %v1991_v23, %s5059_s24 }
 0x879   : > { %4880 = vrcp.f32 %v2319_v20 }
 0x87a   : > { %v2404_v19 = vpop.f32.mrf.mxu1  ;;  %4882 = vrcp.f32 %v2770_v49 }
 0x87b   : > { %v2440_v8 = vpack.c.bf16 %v2404_v19, %v2404_v19  ;;  %v2858_v11 = vpop.f32.mrf.mxu0 }
 0x87c   : > { %v2892_v1 = vpack.c.bf16 %v2858_v11, %v2858_v11 }
 0x87d   : > { %2473 = vrot.lane.b32.xlu0 %v2439_v32, %s5061_s28  ;;  %2475 = vrot.lane.b32.xlu1 %v2440_v8, %s5061_s28  ;;  %v1994_v32 = vpack.c.bf16 %v6703_v55, %v6703_v55 }
 0x87f   : > { %v4881_v14 = vpop.eup %4880 }
 0x880   : > { %2928 = vrot.lane.b32.xlu2 %v2892_v1, %s5060_s27  ;;  %v2353_v7 = vmul.f32 %v4881_v14, %v6698_v40  ;;  %v4518_v40 = vld [vmem:[%s5194_s19] sm:$0xff]  ;;  %v4883_v34 = vpop.eup %4882 }
 0x881   : > { %3092 = vmatpush.bf16.msra.mxu2 %v4518_v40  ;;  %v2804_v26 = vmul.f32 %v4883_v34, %v6693_v58 }
 0x882   : > { %v2362_v16 = vpack.c.bf16 %v2353_v7, %v2352_v41  ;;  %v1996_v7 = vpack.c.bf16 %v6707_v2, %v6707_v2 }
 0x883   : > { %v2860_v63 = vpop.f32.mrf.mxu0 }
 0x884   : > { %2426 = vmatmul.bf16.gmra.mxu1 %v2362_v16  ;;  %v2893_v42 = vpack.c.bf16 %v2860_v63, %v2860_v63  ;;  %v1997_v16 = vpack.c.bf16 %v6710_v13, %v6710_v13 }
 0x885   : > { %2926 = vrot.lane.b32.xlu0 %v2891_v6, %s5060_s27  ;;  %2026 = vrot.lane.b32.xlu1 %v1990_v36, %s5059_s24 }
 0x888   : > { %2032 = vrot.lane.b32.xlu2 %v1993_v56, %s5059_s24 }
 0x88b   : > { %v2863_v37 = vpop.f32.mrf.mxu0 }
 0x88c   : > { %v2894_v46 = vpack.c.bf16 %v2863_v37, %v2863_v37 }
 0x890   : > { %2932 = vrot.lane.b32.xlu2 %v2894_v46, %s5060_s27 }
 0x893   : > { %v2865_v10 = vpop.f32.mrf.mxu0 }
 0x894   : > { %v2895_v0 = vpack.c.bf16 %v2865_v10, %v2865_v10 }
 0x898   : > { %2036 = vrot.lane.b32.xlu2 %v1995_v39, %s5059_s24 }
 0x8a3   : > { %v2772_v4 = vpop.xlane.xlu0 %2771 }
 0x8ab   : > { %v2768_v38 = vpop.xlane.xlu2 %2767 }
 0x8ac   : > { %4884 = vrcp.f32 %v2768_v38 }
 0x8ad   : > { %v2407_v35 = vpop.f32.mrf.mxu1 }
 0x8ae   : > { %v2441_v60 = vpack.c.bf16 %v2407_v35, %v2407_v35 }
 0x8b0   : > { %2477 = vrot.lane.b32.xlu0 %v2441_v60, %s5061_s28 }
 0x8b2   : > { %v4885_v24 = vpop.eup %4884 }
 0x8b3   : > { %v2323_v12 = vpop.xlane.xlu2 %2322  ;;  %v2803_v28 = vmul.f32 %v4885_v24, %v6721_v29  ;;  %v1992_v29 = vpack.c.bf16 %v6688_v18, %v6688_v18 }
 0x8b4   : > { %4886 = vrcp.f32 %v2323_v12 }
 0x8b5   : > { %v2409_v21 = vpop.f32.mrf.mxu1  ;;  %v2813_v43 = vpack.c.bf16 %v2804_v26, %v2803_v28  ;;  %v1999_v26 = vpack.c.bf16 %v6726_v5, %v6726_v5 }
 0x8b6   : > { %v2442_v25 = vpack.c.bf16 %v2409_v21, %v2409_v21  ;;  %v2021_v52 = vpop.permute.xlu0 %2020 }
 0x8b7   : > { %2068 = vst.msk [vmem:[#allocation2 + $0x4] sm:$0xf] %vm2066_vm9, %v2021_v52  ;;  %2877 = vmatmul.bf16.gmra.mxu0 %v2813_v43  ;;  %v1998_v43 = vpack.c.bf16 %v6719_v15, %v6719_v15  ;;  %v2000_v15 = vpack.c.bf16 %v6735_v27, %v6735_v27 }
 0x8b8   : > { %2930 = vrot.lane.b32.xlu0 %v2893_v42, %s5060_s27  ;;  %2479 = vrot.lane.b32.xlu1 %v2442_v25, %s5061_s28 }
 0x8ba   : > { %v4887_v61 = vpop.eup %4886 }
 0x8bb   : > { %v2019_v54 = vpop.permute.xlu2 %2018  ;;  %v2321_v22 = vpop.xlane.xlu1 %2320  ;;  %v2355_v53 = vmul.f32 %v4887_v61, %v6729_v31 }
 0x8bc   : > { %2067 = vst.msk [vmem:[#allocation2] sm:$0xf] %vm2066_vm9, %v2019_v54  ;;  %4888 = vrcp.f32 %v2321_v22 }
 0x8bd   : > { %v2412_v58 = vpop.f32.mrf.mxu1  ;;  %4890 = vrcp.f32 %v2772_v4 }
 0x8be   : > { %v2443_v17 = vpack.c.bf16 %v2412_v58, %v2412_v58 }
 0x8c0   : > { %2481 = vrot.lane.b32.xlu0 %v2443_v17, %s5061_s28  ;;  %2030 = vrot.lane.b32.xlu1 %v1992_v29, %s5059_s24 }
 0x8c2   : > { %v4889_v47 = vpop.eup %4888 }
 0x8c3   : > { %v2921_v3 = vpop.permute.xlu2 %2920  ;;  %v2774_v48 = vpop.xlane.xlu1 %2773  ;;  %v2354_v57 = vmul.f32 %v4889_v47, %v6738_v30 }
 0x8c4   : > { %4892 = vrcp.f32 %v2774_v48  ;;  %v4891_v59 = vpop.eup %4890 }
 0x8c5   : > { %v2414_v44 = vpop.f32.mrf.mxu1  ;;  %v2363_v45 = vpack.c.bf16 %v2355_v53, %v2354_v57  ;;  %v2805_v20 = vmul.f32 %v4891_v59, %v6715_v33 }
 0x8c6   : > { %v2444_v18 = vpack.c.bf16 %v2414_v44, %v2414_v44 }
 0x8c7   : > { %2431 = vmatmul.bf16.gmra.mxu1 %v2363_v45 }
 0x8c8   : > { %2934 = vrot.lane.b32.xlu0 %v2895_v0, %s5060_s27  ;;  %2483 = vrot.lane.b32.xlu1 %v2444_v18, %s5061_s28  ;;  %v2001_v0 = vpack.c.bf16 %v6745_v51, %v6745_v51 }
 0x8ca   : > { %v4893_v50 = vpop.eup %4892 }
 0x8cb   : > { %v2025_v23 = vpop.permute.xlu2 %2024  ;;  %v2806_v19 = vmul.f32 %v4893_v50, %v6743_v62 }
 0x8cc   : > { %2070 = vst.msk [vmem:[#allocation2 + $0xc] sm:$0xf] %vm2066_vm9, %v2025_v23 }
 0x8cd   : > { %v2417_v31 = vpop.f32.mrf.mxu1  ;;  %v2814_v30 = vpack.c.bf16 %v2806_v19, %v2805_v20 }
 0x8ce   : > { %v2445_v8 = vpack.c.bf16 %v2417_v31, %v2417_v31 }
 0x8cf   : > { %2882 = vmatmul.bf16.gmra.mxu0 %v2814_v30 }
 0x8d0   : > { %2485 = vrot.lane.b32.xlu0 %v2445_v8, %s5061_s28  ;;  %2034 = vrot.lane.b32.xlu1 %v1994_v32, %s5059_s24 }
 0x8d3   : > { %v2925_v11 = vpop.permute.xlu2 %2924 }
 0x8d5   : > { %v2419_v9 = vpop.f32.mrf.mxu1  ;;  %v2868_v1 = vpop.f32.mrf.mxu0 }
 0x8d6   : > { %v2446_v14 = vpack.c.bf16 %v2419_v9, %v2419_v9  ;;  %v2896_v33 = vpack.c.bf16 %v2868_v1, %v2868_v1 }
 0x8d8   : > { %2487 = vrot.lane.b32.xlu1 %v2446_v14, %s5061_s28  ;;  %2936 = vrot.lane.b32.xlu2 %v2896_v33, %s5060_s27 }
 0x8db   : > { %v2029_v62 = vpop.permute.xlu2 %2028  ;;  %v2470_v41 = vpop.permute.xlu1 %2469 }
 0x8dc   : > { %2072 = vst.msk [vmem:[#allocation2 + $0x14] sm:$0xf] %vm2066_vm9, %v2029_v62 }
 0x8dd   : > { %2518 = vst.msk [vmem:[#allocation2] sm:$0xf] %vm2517_vm10, %v2470_v41  ;;  %v2870_v55 = vpop.f32.mrf.mxu0 }
 0x8de   : > { %2969 = vst.msk [vmem:[#allocation2] sm:$0xf] %vm2968_vm11, %v2921_v3  ;;  %v2897_v36 = vpack.c.bf16 %v2870_v55, %v2870_v55 }
 0x8df   : > { %v2472_v6 = vpop.permute.xlu0 %2471 }
 0x8e0   : > { %2519 = vst.msk [vmem:[#allocation2 + $0x4] sm:$0xf] %vm2517_vm10, %v2472_v6  ;;  %2038 = vrot.lane.b32.xlu1 %v1996_v7, %s5059_s24  ;;  %2040 = vrot.lane.b32.xlu2 %v1997_v16, %s5059_s24  ;;  %v6889_v6 = vld [vmem:[%s7463_s25] ss:$0 sm:$0xff] }
 0x8e1   : > { %2938 = vrot.lane.b32.xlu0 %v2897_v36, %s5060_s27 }
 0x8e3   : > { %v2929_v63 = vpop.permute.xlu2 %2928  ;;  %v2023_v56 = vpop.permute.xlu1 %2022 }
 0x8e4   : > { %2069 = vst.msk [vmem:[#allocation2 + $0x8] sm:$0xf] %vm2066_vm9, %v2023_v56 }
 0x8e7   : > { %v2923_v2 = vpop.permute.xlu0 %2922 }
 0x8e8   : > { %2970 = vst.msk [vmem:[#allocation2 + $0x4] sm:$0xf] %vm2968_vm11, %v2923_v2 }
 0x8e9   : > { %v2422_v13 = vpop.f32.mrf.mxu1 }
 0x8ea   : > { %v2447_v37 = vpack.c.bf16 %v2422_v13, %v2422_v13 }
 0x8eb   : > { %v2033_v46 = vpop.permute.xlu2 %2032 }
 0x8ec   : > { %2074 = vst.msk [vmem:[#allocation2 + $0x1c] sm:$0xf] %vm2066_vm9, %v2033_v46  ;;  %2489 = vrot.lane.b32.xlu0 %v2447_v37, %s5061_s28  ;;  %v4990_v37 = vld [vmem:[%s5230_s2] sm:$0xff] }
 0x8ef   : > { %v2476_v40 = vpop.permute.xlu1 %2475  ;;  %v2474_v39 = vpop.permute.xlu0 %2473  ;;  %v4510_v49 = vld [vmem:[#allocation2] sm:$0xff] }
 0x8f0   : > { %2521 = vst.msk [vmem:[#allocation2 + $0xc] sm:$0xf] %vm2517_vm10, %v2476_v40  ;;  %4428 = vmatmul.msk.bf16.vlgmr.msra.gmra.mxu2 %vm705_vm1, %v4510_v49 }
 0x8f1   : > { %2520 = vst.msk [vmem:[#allocation2 + $0x8] sm:$0xf] %vm2517_vm10, %v2474_v39  ;;  %v2424_v38 = vpop.f32.mrf.mxu1  ;;  %v2873_v35 = vpop.f32.mrf.mxu0 }
 0x8f2   : > { %2971 = vst.msk [vmem:[#allocation2 + $0x8] sm:$0xf] %vm2968_vm11, %v2925_v11  ;;  %v2448_v4 = vpack.c.bf16 %v2424_v38, %v2424_v38  ;;  %v2898_v60 = vpack.c.bf16 %v2873_v35, %v2873_v35  ;;  %v4991_v35 = vld [vmem:[%s5230_s2 + $0x8] sm:$0xff] }
 0x8f3   : > { %v2933_v34 = vpop.permute.xlu2 %2932 }
 0x8f4   : > { %2940 = vrot.lane.b32.xlu2 %v2898_v60, %s5060_s27  ;;  %2491 = vrot.lane.b32.xlu1 %v2448_v4, %s5061_s28 }
 0x8f7   : > { %v2027_v24 = vpop.permute.xlu1 %2026  ;;  %v2927_v12 = vpop.permute.xlu0 %2926 }
 0x8f8   : > { %2071 = vst.msk [vmem:[#allocation2 + $0x10] sm:$0xf] %vm2066_vm9, %v2027_v24 }
 0x8f9   : > { %2972 = vst.msk [vmem:[#allocation2 + $0xc] sm:$0xf] %vm2968_vm11, %v2927_v12  ;;  %v2875_v28 = vpop.f32.mrf.mxu0 }
 0x8fa   : > { %v2899_v21 = vpack.c.bf16 %v2875_v28, %v2875_v28  ;;  %v4992_v28 = vld [vmem:[%s5230_s2 + $0x10] sm:$0xff] }
 0x8fb   : > { %v2037_v42 = vpop.permute.xlu2 %2036 }
 0x8fc   : > { %2076 = vst.msk [vmem:[#allocation2 + $0x24] sm:$0xf] %vm2066_vm9, %v2037_v42  ;;  %2044 = vrot.lane.b32.xlu2 %v1999_v26, %s5059_s24  ;;  %2942 = vrot.lane.b32.xlu0 %v2899_v21, %s5060_s27 }
 0x8fd   : > { %2042 = vrot.lane.b32.xlu1 %v1998_v43, %s5059_s24 }
 0x900   : > { %v4511_v25 = vld [vmem:[#allocation2 + $0x8] sm:$0xff] }
 0x901   : > { %v2427_v52 = vpop.f32.mrf.mxu1  ;;  %4429 = vmatmul.msk.bf16.gmra.mxu2 %vm705_vm1, %v4511_v25  ;;  %v4993_v25 = vld [vmem:[%s5230_s2 + $0x18] sm:$0xff] }
 0x902   : > { %v2449_v54 = vpack.c.bf16 %v2427_v52, %v2427_v52 }
 0x904   : > { %2493 = vrot.lane.b32.xlu0 %v2449_v54, %s5061_s28 }
 0x909   : > { %v2429_v5 = vpop.f32.mrf.mxu1 }
 0x90a   : > { %v2450_v22 = vpack.c.bf16 %v2429_v5, %v2429_v5 }
 0x90c   : > { %2495 = vrot.lane.b32.xlu1 %v2450_v22, %s5061_s28 }
 0x914   : > { %2046 = vrot.lane.b32.xlu1 %v2000_v15, %s5059_s24 }
 0x922   : > { %v2478_v58 = vpop.permute.xlu0 %2477 }
 0x923   : > { %2522 = vst.msk [vmem:[#allocation2 + $0x10] sm:$0xf] %vm2517_vm10, %v2478_v58 }
 0x924   : > { %2973 = vst.msk [vmem:[#allocation2 + $0x10] sm:$0xf] %vm2968_vm11, %v2929_v63 }
 0x92a   : > { %v2480_v29 = vpop.permute.xlu1 %2479  ;;  %v2931_v17 = vpop.permute.xlu0 %2930 }
 0x92b   : > { %2523 = vst.msk [vmem:[#allocation2 + $0x14] sm:$0xf] %vm2517_vm10, %v2480_v29 }
 0x92c   : > { %2974 = vst.msk [vmem:[#allocation2 + $0x14] sm:$0xf] %vm2968_vm11, %v2931_v17 }
 0x932   : > { %v2031_v61 = vpop.permute.xlu1 %2030  ;;  %v2937_v47 = vpop.permute.xlu2 %2936 }
 0x933   : > { %2073 = vst.msk [vmem:[#allocation2 + $0x18] sm:$0xf] %vm2066_vm9, %v2031_v61  ;;  %v2482_v10 = vpop.permute.xlu0 %2481  ;;  %v4512_v3 = vld [vmem:[#allocation2 + $0x10] sm:$0xff] }
 0x934   : > { %2524 = vst.msk [vmem:[#allocation2 + $0x18] sm:$0xf] %vm2517_vm10, %v2482_v10  ;;  %v2878_v27 = vpop.f32.mrf.mxu0  ;;  %4430 = vmatmul.msk.bf16.gmra.mxu2 %vm705_vm1, %v4512_v3  ;;  %v4994_v10 = vld [vmem:[%s5230_s2 + $0x20] sm:$0xff] }
 0x935   : > { %2975 = vst.msk [vmem:[#allocation2 + $0x18] sm:$0xf] %vm2968_vm11, %v2933_v34  ;;  %v2900_v48 = vpack.c.bf16 %v2878_v27, %v2878_v27 }
 0x937   : > { %2944 = vrot.lane.b32.xlu2 %v2900_v48, %s5060_s27 }
 0x93a   : > { %v2484_v57 = vpop.permute.xlu1 %2483  ;;  %v2041_v53 = vpop.permute.xlu2 %2040 }
 0x93b   : > { %2525 = vst.msk [vmem:[#allocation2 + $0x1c] sm:$0xf] %vm2517_vm10, %v2484_v57  ;;  %v2935_v44 = vpop.permute.xlu0 %2934 }
 0x93c   : > { %2078 = vst.msk [vmem:[#allocation2 + $0x2c] sm:$0xf] %vm2066_vm9, %v2041_v53  ;;  %v2880_v45 = vpop.f32.mrf.mxu0 }
 0x93d   : > { %2976 = vst.msk [vmem:[#allocation2 + $0x1c] sm:$0xf] %vm2968_vm11, %v2935_v44  ;;  %v2901_v18 = vpack.c.bf16 %v2880_v45, %v2880_v45  ;;  %v4995_v44 = vld [vmem:[%s5230_s2 + $0x28] sm:$0xff] }
 0x93f   : > { %2048 = vrot.lane.b32.xlu2 %v2001_v0, %s5059_s24  ;;  %2946 = vrot.lane.b32.xlu0 %v2901_v18, %s5060_s27 }
 0x942   : > { %v2035_v59 = vpop.permute.xlu1 %2034 }
 0x943   : > { %2075 = vst.msk [vmem:[#allocation2 + $0x20] sm:$0xf] %vm2066_vm9, %v2035_v59  ;;  %v2486_v50 = vpop.permute.xlu0 %2485 }
 0x944   : > { %2526 = vst.msk [vmem:[#allocation2 + $0x20] sm:$0xf] %vm2517_vm10, %v2486_v50  ;;  %v2432_v23 = vpop.f32.mrf.mxu1  ;;  %v4513_v20 = vld [vmem:[#allocation2 + $0x18] sm:$0xff] }
 0x945   : > { %2977 = vst.msk [vmem:[#allocation2 + $0x20] sm:$0xf] %vm2968_vm11, %v2937_v47  ;;  %v2451_v19 = vpack.c.bf16 %v2432_v23, %v2432_v23  ;;  %4431 = vmatmul.msk.bf16.gmra.mxu2 %vm705_vm1, %v4513_v20  ;;  %v4996_v23 = vld [vmem:[%s5230_s2 + $0x30] sm:$0xff] }
 0x947   : > { %2497 = vrot.lane.b32.xlu0 %v2451_v19, %s5061_s28 }
 0x94a   : > { %v2488_v51 = vpop.permute.xlu1 %2487 }
 0x94b   : > { %2527 = vst.msk [vmem:[#allocation2 + $0x24] sm:$0xf] %vm2517_vm10, %v2488_v51 }
 0x94c   : > { %v2434_v31 = vpop.f32.mrf.mxu1  ;;  %v2883_v30 = vpop.f32.mrf.mxu0 }
 0x94d   : > { %v2452_v32 = vpack.c.bf16 %v2434_v31, %v2434_v31  ;;  %v2902_v8 = vpack.c.bf16 %v2883_v30, %v2883_v30  ;;  %v7464_v30 = vld [vmem:[#allocation10_spill] sm:$0xff] }
 0x94e   : > { %v2941_v11 = vpop.permute.xlu2 %2940 }
 0x94f   : > { %2499 = vrot.lane.b32.xlu1 %v2452_v32, %s5061_s28  ;;  %2948 = vrot.lane.b32.xlu2 %v2902_v8, %s5060_s27 }
 0x952   : > { %v2039_v9 = vpop.permute.xlu1 %2038 }
 0x953   : > { %2077 = vst.msk [vmem:[#allocation2 + $0x28] sm:$0xf] %vm2066_vm9, %v2039_v9  ;;  %v2939_v1 = vpop.permute.xlu0 %2938 }
 0x954   : > { %2978 = vst.msk [vmem:[#allocation2 + $0x24] sm:$0xf] %vm2968_vm11, %v2939_v1  ;;  %v2885_v14 = vpop.f32.mrf.mxu0 }
 0x955   : > { %v2903_v33 = vpack.c.bf16 %v2885_v14, %v2885_v14 }
 0x956   : > { %v2045_v62 = vpop.permute.xlu2 %2044 }
 0x957   : > { %2080 = vst.msk [vmem:[#allocation2 + $0x34] sm:$0xf] %vm2066_vm9, %v2045_v62  ;;  %2950 = vrot.lane.b32.xlu0 %v2903_v33, %s5060_s27 }
 0x95b   : > { %v4514_v41 = vld [vmem:[#allocation2 + $0x20] sm:$0xff] }
 0x95c   : > { %4432 = vmatmul.msk.bf16.gmra.mxu2 %vm705_vm1, %v4514_v41  ;;  %v4997_v41 = vld [vmem:[%s5230_s2 + $0x38] sm:$0xff] }
 0x95e   : > { %v2490_v55 = vpop.permute.xlu0 %2489 }
 0x95f   : > { %2528 = vst.msk [vmem:[#allocation2 + $0x28] sm:$0xf] %vm2517_vm10, %v2490_v55 }
 0x960   : > { %2979 = vst.msk [vmem:[#allocation2 + $0x28] sm:$0xf] %vm2968_vm11, %v2941_v11 }
 0x966   : > { %v2492_v7 = vpop.permute.xlu1 %2491 }
 0x967   : > { %2529 = vst.msk [vmem:[#allocation2 + $0x2c] sm:$0xf] %vm2517_vm10, %v2492_v7 }
 0x96e   : > { %v2943_v16 = vpop.permute.xlu0 %2942 }
 0x96f   : > { %v2043_v36 = vpop.permute.xlu1 %2042  ;;  %2980 = vst.msk [vmem:[#allocation2 + $0x2c] sm:$0xf] %vm2968_vm11, %v2943_v16 }
 0x970   : > { %2079 = vst.msk [vmem:[#allocation2 + $0x30] sm:$0xf] %vm2066_vm9, %v2043_v36 }
 0x973   : > { %v3094_v63 = vpop.f32.mrf.mxu2 }
 0x974   : > { %v3095_v56 = vadd.f32 %v6889_v6, %v3094_v63 }
 0x976   : > { %v2494_v2 = vpop.permute.xlu0 %2493  ;;  %v4515_v13 = vld [vmem:[#allocation2 + $0x28] sm:$0xff]  ;;  %v6893_v46 = vadd.f32 %v4990_v37, %v3095_v56 }
 0x977   : > { %2530 = vst.msk [vmem:[#allocation2 + $0x30] sm:$0xf] %vm2517_vm10, %v2494_v2  ;;  %4433 = vmatmul.msk.bf16.gmra.mxu2 %vm705_vm1, %v4515_v13 }
 0x978   : > { %v3152_v40 = vsel %vm705_vm1, %v6893_v46, 0.0 }
 0x979   : > { %3153 = vadd.xlane.f32.xlu1 %v3152_v40  ;;  %v4998_v40 = vld [vmem:[%s5230_s2 + $0x40] sm:$0xff] }
 0x97b   : > { %v3096_v39 = vpop.f32.mrf.mxu2 }
 0x97c   : > { %v3097_v49 = vadd.f32 %v6889_v6, %v3096_v39 }
 0x97e   : > { %v2496_v38 = vpop.permute.xlu1 %2495  ;;  %v6901_v4 = vadd.f32 %v4991_v35, %v3097_v49 }
 0x97f   : > { %2531 = vst.msk [vmem:[#allocation2 + $0x34] sm:$0xf] %vm2517_vm10, %v2496_v38 }
 0x980   : > { %v3155_v60 = vsel %vm705_vm1, %v6901_v4, 0.0 }
 0x981   : > { %3156 = vadd.xlane.f32.xlu2 %v3155_v60 }
 0x984   : > { %v3099_v34 = vpop.f32.mrf.mxu2 }
 0x985   : > { %v3100_v24 = vadd.f32 %v6889_v6, %v3099_v34 }
 0x986   : > { %v2047_v12 = vpop.permute.xlu1 %2046 }
 0x987   : > { %2081 = vst.msk [vmem:[#allocation2 + $0x38] sm:$0xf] %vm2066_vm9, %v2047_v12  ;;  %v6909_v26 = vadd.f32 %v4992_v28, %v3100_v24 }
 0x989   : > { %v3158_v21 = vsel %vm705_vm1, %v6909_v26, 0.0 }
 0x98a   : > { %3159 = vadd.xlane.f32.xlu0 %v3158_v21  ;;  %v4999_v21 = vld [vmem:[%s5230_s2 + $0x48] sm:$0xff] }
 0x98c   : > { %v3101_v43 = vpop.f32.mrf.mxu2 }
 0x98d   : > { %v3102_v42 = vadd.f32 %v6889_v6, %v3101_v43 }
 0x98f   : > { %v6915_v52 = vadd.f32 %v4993_v25, %v3102_v42 }
 0x991   : > { %v2945_v54 = vpop.permute.xlu2 %2944  ;;  %v3161_v5 = vsel %vm705_vm1, %v6915_v52, 0.0 }
 0x992   : > { %2981 = vst.msk [vmem:[#allocation2 + $0x30] sm:$0xf] %vm2968_vm11, %v2945_v54  ;;  %3162 = vadd.xlane.f32.xlu2 %v3161_v5 }
 0x999   : > { %v2049_v22 = vpop.permute.xlu2 %2048 }
 0x99a   : > { %2082 = vst.msk [vmem:[#allocation2 + $0x3c] sm:$0xf] %vm2066_vm9, %v2049_v22 }
 0x9a9   : > { %v2949_v47 = vpop.permute.xlu2 %2948 }
 0x9b1   : > { %v2947_v15 = vpop.permute.xlu0 %2946 }
 0x9b2   : > { %2982 = vst.msk [vmem:[#allocation2 + $0x34] sm:$0xf] %vm2968_vm11, %v2947_v15 }
 0x9b7   : > { %v3104_v58 = vpop.f32.mrf.mxu2 }
 0x9b8   : > { %v3105_v29 = vadd.f32 %v6889_v6, %v3104_v58  ;;  %v5000_v58 = vld [vmem:[%s5230_s2 + $0x50] sm:$0xff] }
 0x9b9   : > { %v2498_v17 = vpop.permute.xlu0 %2497  ;;  %v4516_v61 = vld [vmem:[#allocation2 + $0x30] sm:$0xff] }
 0x9ba   : > { %2532 = vst.msk [vmem:[#allocation2 + $0x38] sm:$0xf] %vm2517_vm10, %v2498_v17  ;;  %v6925_v3 = vadd.f32 %v4994_v10, %v3105_v29  ;;  %4434 = vmatmul.msk.bf16.gmra.mxu2 %vm705_vm1, %v4516_v61 }
 0x9bb   : > { %2983 = vst.msk [vmem:[#allocation2 + $0x38] sm:$0xf] %vm2968_vm11, %v2949_v47 }
 0x9bc   : > { %v3164_v27 = vsel %vm705_vm1, %v6925_v3, 0.0 }
 0x9bd   : > { %3165 = vadd.xlane.f32.xlu1 %v3164_v27 }
 0x9bf   : > { %v3106_v48 = vpop.f32.mrf.mxu2 }
 0x9c0   : > { %v3107_v53 = vadd.f32 %v6889_v6, %v3106_v48 }
 0x9c1   : > { %v2500_v57 = vpop.permute.xlu1 %2499 }
 0x9c2   : > { %2533 = vst.msk [vmem:[#allocation2 + $0x3c] sm:$0xf] %vm2517_vm10, %v2500_v57  ;;  %v6934_v45 = vadd.f32 %v4995_v44, %v3107_v53 }
 0x9c4   : > { %v3167_v0 = vsel %vm705_vm1, %v6934_v45, 0.0 }
 0x9c5   : > { %3168 = vadd.xlane.f32.xlu0 %v3167_v0 }
 0x9c8   : > { %v3109_v18 = vpop.f32.mrf.mxu2 }
 0x9c9   : > { %v2951_v59 = vpop.permute.xlu0 %2950  ;;  %v3110_v50 = vadd.f32 %v6889_v6, %v3109_v18  ;;  %v5001_v18 = vld [vmem:[%s5230_s2 + $0x58] sm:$0xff] }
 0x9ca   : > { %2984 = vst.msk [vmem:[#allocation2 + $0x3c] sm:$0xf] %vm2968_vm11, %v2951_v59 }
 0x9cb   : > { %v6941_v20 = vadd.f32 %v4996_v23, %v3110_v50 }
 0x9cd   : > { %v3170_v19 = vsel %vm705_vm1, %v6941_v20, 0.0 }
 0x9ce   : > { %3171 = vadd.xlane.f32.xlu0 %v3170_v19 }
 0x9d0   : > { %v3111_v8 = vpop.f32.mrf.mxu2 }
 0x9d1   : > { %v4517_v51 = vld [vmem:[#allocation2 + $0x38] sm:$0xff]  ;;  %v3112_v1 = vadd.f32 %v6889_v6, %v3111_v8 }
 0x9d2   : > { %4435 = vmatmul.msk.bf16.gmra.mxu2 %vm705_vm1, %v4517_v51 }
 0x9d3   : > { %v6956_v55 = vadd.f32 %v4997_v41, %v3112_v1  ;;  %v5002_v1 = vld [vmem:[%s5230_s2 + $0x60] sm:$0xff] }
 0x9d5   : > { %v3173_v2 = vsel %vm705_vm1, %v6956_v55, 0.0 }
 0x9df   : > { %v3114_v7 = vpop.f32.mrf.mxu2 }
 0x9e0   : > { %v3115_v63 = vadd.f32 %v6889_v6, %v3114_v7 }
 0x9e2   : > { %v6969_v39 = vadd.f32 %v4998_v40, %v3115_v63 }
 0x9e4   : > { %v3176_v60 = vsel %vm705_vm1, %v6969_v39, 0.0 }
 0x9e7   : > { %v3116_v38 = vpop.f32.mrf.mxu2 }
 0x9e8   : > { %v3117_v34 = vadd.f32 %v6889_v6, %v3116_v38 }
 0x9ea   : > { %v6982_v43 = vadd.f32 %v4999_v21, %v3117_v34 }
 0x9ec   : > { %v3154_v31 = vpop.xlane.xlu1 %3153  ;;  %v3179_v15 = vsel %vm705_vm1, %v6982_v43, 0.0 }
 0x9ed   : > { %v3200_v32 = vmul.f32 %v3154_v31, %v7464_v30 }
 0x9ef   : > { %v6948_v11 = vsub.f32 %v6893_v46, %v3200_v32 }
 0x9f1   : > { %v3232_v9 = vmul.f32 %v6948_v11, %v6948_v11 }
 0x9f3   : > { %v3248_v14 = vsel %vm705_vm1, %v3232_v9, 0.0 }
 0x9f4   : > { %v3157_v33 = vpop.xlane.xlu2 %3156  ;;  %3249 = vadd.xlane.f32.xlu2 %v3248_v14 }
 0x9f5   : > { %v3201_v62 = vmul.f32 %v3157_v33, %v7464_v30 }
 0x9f7   : > { %v6959_v16 = vsub.f32 %v6901_v4, %v3201_v62 }
 0x9f9   : > { %v3233_v36 = vmul.f32 %v6959_v16, %v6959_v16 }
 0x9fa   : > { %v3119_v25 = vpop.f32.mrf.mxu2 }
 0x9fb   : > { %v3251_v56 = vsel %vm705_vm1, %v3233_v36, 0.0  ;;  %v3120_v5 = vadd.f32 %v6889_v6, %v3119_v25  ;;  %v4520_v25 = vld [vmem:[%s5211_s26] sm:$0xff] }
 0x9fc   : > { %3252 = vadd.xlane.f32.xlu1 %v3251_v56  ;;  %3174 = vadd.xlane.f32.xlu2 %v3173_v2  ;;  %v5003_v56 = vld [vmem:[%s5230_s2 + $0x68] sm:$0xff] }
 0x9fd   : > { %v3160_v13 = vpop.xlane.xlu0 %3159  ;;  %v6994_v29 = vadd.f32 %v5000_v58, %v3120_v5 }
 0x9fe   : > { %v3202_v37 = vmul.f32 %v3160_v13, %v7464_v30 }
 0x9ff   : > { %v3182_v17 = vsel %vm705_vm1, %v6994_v29, 0.0 }
 0xa00   : > { %v6972_v49 = vsub.f32 %v6909_v26, %v3202_v37 }
 0xa02   : > { %v3234_v35 = vmul.f32 %v6972_v49, %v6972_v49  ;;  %v3121_v27 = vpop.f32.mrf.mxu2 }
 0xa03   : > { %v3122_v57 = vadd.f32 %v6889_v6, %v3121_v27 }
 0xa04   : > { %3177 = vadd.xlane.f32.xlu2 %v3176_v60  ;;  %v3254_v24 = vsel %vm705_vm1, %v3234_v35, 0.0  ;;  %v5004_v35 = vld [vmem:[%s5230_s2 + $0x78] sm:$0xff] }
 0xa05   : > { %v3163_v12 = vpop.xlane.xlu2 %3162  ;;  %3255 = vadd.xlane.f32.xlu1 %v3254_v24  ;;  %v7008_v59 = vadd.f32 %v5001_v18, %v3122_v57 }
 0xa06   : > { %v3203_v28 = vmul.f32 %v3163_v12, %v7464_v30  ;;  %v4521_v12 = vld [vmem:[%s5211_s26 + $0x8] sm:$0xff] }
 0xa07   : > { %v3185_v31 = vsel %vm705_vm1, %v7008_v59, 0.0  ;;  %3600 = vmatpush.bf16.msra.mxu1 %v4521_v12  ;;  %4530 = vmatpush.bf16.msrb.mxu2 %v4521_v12 }
 0xa08   : > { %v6985_v42 = vsub.f32 %v6915_v52, %v3203_v28 }
 0xa0a   : > { %v3235_v54 = vmul.f32 %v6985_v42, %v6985_v42 }
 0xa0b   : > { %3601 = vmatpush.bf16.msra.mxu1 %v4520_v25  ;;  %4531 = vmatpush.bf16.msrb.mxu2 %v4520_v25 }
 0xa0c   : > { %v3257_v22 = vsel %vm705_vm1, %v3235_v54, 0.0 }
 0xa0d   : > { %3258 = vadd.xlane.f32.xlu0 %v3257_v22  ;;  %3180 = vadd.xlane.f32.xlu1 %v3179_v15 }
 0xa15   : > { %3183 = vadd.xlane.f32.xlu1 %v3182_v17 }
 0xa30   : > { %v3166_v61 = vpop.xlane.xlu1 %3165 }
 0xa31   : > { %v3204_v47 = vmul.f32 %v3166_v61, %v7464_v30 }
 0xa33   : > { %v7000_v10 = vsub.f32 %v6925_v3, %v3204_v47 }
 0xa35   : > { %v3236_v48 = vmul.f32 %v7000_v10, %v7000_v10 }
 0xa37   : > { %v3260_v53 = vsel %vm705_vm1, %v3236_v48, 0.0 }
 0xa38   : > { %3261 = vadd.xlane.f32.xlu0 %v3260_v53  ;;  %v3169_v44 = vpop.xlane.xlu0 %3168 }
 0xa39   : > { %v3205_v0 = vmul.f32 %v3169_v44, %v7464_v30 }
 0xa3b   : > { %v7011_v50 = vsub.f32 %v6934_v45, %v3205_v0 }
 0xa3d   : > { %v3124_v23 = vpop.f32.mrf.mxu2  ;;  %v3237_v19 = vmul.f32 %v7011_v50, %v7011_v50 }
 0xa3e   : > { %v3125_v51 = vadd.f32 %v6889_v6, %v3124_v23 }
 0xa3f   : > { %v3263_v32 = vsel %vm705_vm1, %v3237_v19, 0.0 }
 0xa40   : > { %3186 = vadd.xlane.f32.xlu0 %v3185_v31  ;;  %3264 = vadd.xlane.f32.xlu2 %v3263_v32  ;;  %v7021_v14 = vadd.f32 %v5002_v1, %v3125_v51  ;;  %v5005_v32 = vld [vmem:[%s5230_s2 + $0x70] sm:$0xff] }
 0xa41   : > { %v3172_v8 = vpop.xlane.xlu0 %3171 }
 0xa42   : > { %v3206_v9 = vmul.f32 %v3172_v8, %v7464_v30  ;;  %v3188_v7 = vsel %vm705_vm1, %v7021_v14, 0.0 }
 0xa44   : > { %v7024_v33 = vsub.f32 %v6941_v20, %v3206_v9 }
 0xa45   : > { %v3126_v62 = vpop.f32.mrf.mxu2 }
 0xa46   : > { %v3238_v41 = vmul.f32 %v7024_v33, %v7024_v33  ;;  %v3127_v36 = vadd.f32 %v6889_v6, %v3126_v62 }
 0xa48   : > { %3189 = vadd.xlane.f32.xlu0 %v3188_v7  ;;  %v3266_v63 = vsel %vm705_vm1, %v3238_v41, 0.0  ;;  %v7033_v2 = vadd.f32 %v5003_v56, %v3127_v36 }
 0xa49   : > { %3267 = vadd.xlane.f32.xlu2 %v3266_v63 }
 0xa4a   : > { %v3191_v13 = vsel %vm705_vm1, %v7033_v2, 0.0 }
 0xa51   : > { %3192 = vadd.xlane.f32.xlu2 %v3191_v13 }
 0xa55   : > { %v3129_v37 = vpop.f32.mrf.mxu2 }
 0xa56   : > { %v3130_v57 = vadd.f32 %v6889_v6, %v3129_v37 }
 0xa58   : > { %v7058_v8 = vadd.f32 %v5005_v32, %v3130_v57 }
 0xa5a   : > { %v3194_v36 = vsel %vm705_vm1, %v7058_v8, 0.0 }
 0xa5d   : > { %v3131_v40 = vpop.f32.mrf.mxu2 }
 0xa5e   : > { %v3132_v38 = vadd.f32 %v6889_v6, %v3131_v40 }
 0xa60   : > { %v7039_v60 = vadd.f32 %v5004_v35, %v3132_v38 }
 0xa62   : > { %v3197_v34 = vsel %vm705_vm1, %v7039_v60, 0.0 }
 0xa63   : > { %3198 = vadd.xlane.f32.xlu0 %v3197_v34 }
 0xa67   : > { %v3250_v24 = vpop.xlane.xlu2 %3249 }
 0xa68   : > { %v3296_v28 = vmul.f32 %v3250_v24, %v7464_v30  ;;  %v7075_v24 = vld [vmem:[%s7465_s29] ss:$0 sm:$0xff] }
 0xa6a   : > { %v3312_v21 = vadd.f32 1e-05, %v3296_v28 }
 0xa6c   : > { %4894 = vrsqrt.f32 %v3312_v21  ;;  %vm3334_vm13 = vweird.f32 %v3312_v21 }
 0xa6f   : > { %v3253_v54 = vpop.xlane.xlu1 %3252  ;;  %v3175_v5 = vpop.xlane.xlu2 %3174 }
 0xa70   : > { %v3297_v22 = vmul.f32 %v3253_v54, %v7464_v30  ;;  %v3207_v15 = vmul.f32 %v3175_v5, %v7464_v30 }
 0xa72   : > { %v4895_v58 = vpop.eup %4894  ;;  %v3313_v17 = vadd.f32 1e-05, %v3297_v22  ;;  %v7049_v61 = vsub.f32 %v6956_v55, %v3207_v15 }
 0xa73   : > { %v3329_v47 = vmul.f32 %v4895_v58, %v3312_v21  ;;  %vm3335_vm12 = vweird.f32 %v4895_v58 }
 0xa74   : > { %4896 = vrsqrt.f32 %v3313_v17  ;;  %v3239_v27 = vmul.f32 %v7049_v61, %v7049_v61  ;;  %vm3336_vm14 = vmor %vm3334_vm13, %vm3335_vm12  ;;  %vm3344_vm0 = vweird.f32 %v3313_v17 }
 0xa75   : > { %v3330_v48 = vmul.f32 %v4895_v58, %v3329_v47 }
 0xa76   : > { %v3269_v53 = vsel %vm705_vm1, %v3239_v27, 0.0 }
 0xa77   : > { %v3331_v44 = vmul.f32 0.5, %v3330_v48  ;;  %v3178_v0 = vpop.xlane.xlu2 %3177  ;;  %3270 = vadd.xlane.f32.xlu1 %v3269_v53 }
 0xa78   : > { %v3208_v18 = vmul.f32 %v3178_v0, %v7464_v30  ;;  %v3256_v23 = vpop.xlane.xlu1 %3255 }
 0xa79   : > { %v3332_v19 = vsub.f32 1.5, %v3331_v44  ;;  %v3298_v51 = vmul.f32 %v3256_v23, %v7464_v30 }
 0xa7a   : > { %v4897_v31 = vpop.eup %4896  ;;  %v7061_v9 = vsub.f32 %v6969_v39, %v3208_v18 }
 0xa7b   : > { %v3333_v1 = vmul.f32 %v4895_v58, %v3332_v19  ;;  %v3339_v6 = vmul.f32 %v4897_v31, %v3313_v17  ;;  %v3314_v62 = vadd.f32 1e-05, %v3298_v51  ;;  %vm3345_vm15 = vweird.f32 %v4897_v31 }
 0xa7c   : > { %v3240_v41 = vmul.f32 %v7061_v9, %v7061_v9  ;;  %vm3346_vm2 = vmor %vm3344_vm0, %vm3345_vm15 }
 0xa7d   : > { %v3340_v7 = vmul.f32 %v4897_v31, %v3339_v6  ;;  %4898 = vrsqrt.f32 %v3314_v62  ;;  %v3337_v56 = vsel %vm3336_vm14, %v4895_v58, %v3333_v1  ;;  %v7088_v58 = vld [vmem:[%s623_s3] ss:$0 sm:$0xff]  ;;  %vm3354_vm4 = vweird.f32 %v3314_v62 }
 0xa7e   : > { %v3272_v63 = vsel %vm705_vm1, %v3240_v41, 0.0  ;;  %v3488_v12 = vmul.f32 %v3337_v56, %v6948_v11 }
 0xa7f   : > { %v3341_v13 = vmul.f32 0.5, %v3340_v7  ;;  %3195 = vadd.xlane.f32.xlu1 %v3194_v36  ;;  %3273 = vadd.xlane.f32.xlu2 %v3272_v63 }
 0xa80   : > { %v3181_v37 = vpop.xlane.xlu1 %3180  ;;  %v3259_v40 = vpop.xlane.xlu0 %3258  ;;  %v3507_v11 = vmul.f32 %v7075_v24, %v3488_v12 }
 0xa81   : > { %v3342_v38 = vsub.f32 1.5, %v3341_v13  ;;  %v3209_v35 = vmul.f32 %v3181_v37, %v7464_v30  ;;  %v3299_v34 = vmul.f32 %v3259_v40, %v7464_v30 }
 0xa82   : > { %v3526_v0 = vadd.f32 %v7088_v58, %v3507_v11 }
 0xa83   : > { %v4899_v28 = vpop.eup %4898  ;;  %v3343_v21 = vmul.f32 %v4897_v31, %v3342_v38  ;;  %v7079_v25 = vsub.f32 %v6982_v43, %v3209_v35  ;;  %v3315_v54 = vadd.f32 1e-05, %v3299_v34 }
 0xa84   : > { %v3349_v5 = vmul.f32 %v4899_v28, %v3314_v62  ;;  %vm3355_vm3 = vweird.f32 %v4899_v28 }
 0xa85   : > { %v3347_v22 = vsel %vm3346_vm2, %v4897_v31, %v3343_v21  ;;  %4900 = vrsqrt.f32 %v3315_v54  ;;  %v3241_v15 = vmul.f32 %v7079_v25, %v7079_v25  ;;  %vm3356_vm5 = vmor %vm3354_vm4, %vm3355_vm3  ;;  %vm3364_vm7 = vweird.f32 %v3315_v54 }
 0xa86   : > { %v3489_v17 = vmul.f32 %v3347_v22, %v6959_v16  ;;  %v3350_v47 = vmul.f32 %v4899_v28, %v3349_v5 }
 0xa87   : > { %v3275_v27 = vsel %vm705_vm1, %v3241_v15, 0.0 }
 0xa88   : > { %v3508_v48 = vmul.f32 %v7075_v24, %v3489_v17  ;;  %v3351_v57 = vmul.f32 0.5, %v3350_v47  ;;  %3276 = vadd.xlane.f32.xlu1 %v3275_v27  ;;  %v3184_v53 = vpop.xlane.xlu1 %3183 }
 0xa89   : > { %v3210_v44 = vmul.f32 %v3184_v53, %v7464_v30 }
 0xa8a   : > { %v3527_v18 = vadd.f32 %v7088_v58, %v3508_v48  ;;  %v3352_v23 = vsub.f32 1.5, %v3351_v57 }
 0xa8b   : > { %v4901_v19 = vpop.eup %4900  ;;  %v7098_v51 = vsub.f32 %v6994_v29, %v3210_v44 }
 0xa8c   : > { %v3542_v16 = vpack.c.bf16 %v3527_v18, %v3526_v0  ;;  %v3353_v31 = vmul.f32 %v4899_v28, %v3352_v23  ;;  %v3359_v32 = vmul.f32 %v4901_v19, %v3315_v54  ;;  %vm3365_vm6 = vweird.f32 %v4901_v19 }
 0xa8d   : > { %v3242_v1 = vmul.f32 %v7098_v51, %v7098_v51  ;;  %vm3366_vm8 = vmor %vm3364_vm7, %vm3365_vm6 }
 0xa8e   : > { %v3360_v6 = vmul.f32 %v4901_v19, %v3359_v32  ;;  %4444 = vmatmul.msk.bf16.vlgmr.msra.gmra.mxu1 %vm705_vm1, %v3542_v16  ;;  %v3357_v7 = vsel %vm3356_vm5, %v4899_v28, %v3353_v31 }
 0xa8f   : > { %v3278_v41 = vsel %vm705_vm1, %v3242_v1, 0.0  ;;  %v3490_v56 = vmul.f32 %v3357_v7, %v6972_v49 }
 0xa90   : > { %v3361_v36 = vmul.f32 0.5, %v3360_v6  ;;  %3279 = vadd.xlane.f32.xlu0 %v3278_v41 }
 0xa91   : > { %v3509_v62 = vmul.f32 %v7075_v24, %v3490_v56 }
 0xa92   : > { %v3362_v63 = vsub.f32 1.5, %v3361_v36 }
 0xa93   : > { %v3528_v35 = vadd.f32 %v7088_v58, %v3509_v62 }
 0xa94   : > { %v3363_v13 = vmul.f32 %v4901_v19, %v3362_v63 }
 0xa96   : > { %v3367_v37 = vsel %vm3366_vm8, %v4901_v19, %v3363_v13 }
 0xa97   : > { %v3491_v40 = vmul.f32 %v3367_v37, %v6985_v42 }
 0xa99   : > { %v3510_v38 = vmul.f32 %v7075_v24, %v3491_v40 }
 0xa9b   : > { %v3529_v34 = vadd.f32 %v7088_v58, %v3510_v38 }
 0xa9d   : > { %v3543_v12 = vpack.c.bf16 %v3529_v34, %v3528_v35 }
 0xa9f   : > { %4445 = vmatmul.msk.bf16.gmra.mxu1 %vm705_vm1, %v3543_v12 }
 0xaab   : > { %v3262_v28 = vpop.xlane.xlu0 %3261 }
 0xaac   : > { %v3300_v49 = vmul.f32 %v3262_v28, %v7464_v30 }
 0xaae   : > { %v3316_v21 = vadd.f32 1e-05, %v3300_v49 }
 0xab0   : > { %4902 = vrsqrt.f32 %v3316_v21  ;;  %vm3374_vm10 = vweird.f32 %v3316_v21 }
 0xab3   : > { %v3265_v54 = vpop.xlane.xlu2 %3264  ;;  %v3187_v5 = vpop.xlane.xlu0 %3186 }
 0xab4   : > { %v3301_v42 = vmul.f32 %v3265_v54, %v7464_v30  ;;  %v3211_v22 = vmul.f32 %v3187_v5, %v7464_v30 }
 0xab6   : > { %v4903_v15 = vpop.eup %4902  ;;  %v3317_v11 = vadd.f32 1e-05, %v3301_v42  ;;  %v7115_v17 = vsub.f32 %v7008_v59, %v3211_v22 }
 0xab7   : > { %v3369_v47 = vmul.f32 %v4903_v15, %v3316_v21  ;;  %vm3375_vm9 = vweird.f32 %v4903_v15 }
 0xab8   : > { %4904 = vrsqrt.f32 %v3317_v11  ;;  %v3243_v27 = vmul.f32 %v7115_v17, %v7115_v17  ;;  %vm3376_vm11 = vmor %vm3374_vm10, %vm3375_vm9  ;;  %vm3384_vm13 = vweird.f32 %v3317_v11 }
 0xab9   : > { %v3370_v48 = vmul.f32 %v4903_v15, %v3369_v47 }
 0xaba   : > { %v3281_v57 = vsel %vm705_vm1, %v3243_v27, 0.0 }
 0xabb   : > { %v3371_v53 = vmul.f32 0.5, %v3370_v48  ;;  %3282 = vadd.xlane.f32.xlu2 %v3281_v57  ;;  %v3190_v44 = vpop.xlane.xlu0 %3189 }
 0xabc   : > { %v3268_v0 = vpop.xlane.xlu2 %3267  ;;  %v3212_v18 = vmul.f32 %v3190_v44, %v7464_v30 }
 0xabd   : > { %v3372_v23 = vsub.f32 1.5, %v3371_v53  ;;  %v3302_v5 = vmul.f32 %v3268_v0, %v7464_v30 }
 0xabe   : > { %v4905_v19 = vpop.eup %4904  ;;  %v7122_v16 = vsub.f32 %v7021_v14, %v3212_v18 }
 0xabf   : > { %v3373_v31 = vmul.f32 %v4903_v15, %v3372_v23  ;;  %v3379_v32 = vmul.f32 %v4905_v19, %v3317_v11  ;;  %vm3385_vm12 = vweird.f32 %v4905_v19 }
 0xac0   : > { %v3244_v1 = vmul.f32 %v7122_v16, %v7122_v16  ;;  %vm3386_vm14 = vmor %vm3384_vm13, %vm3385_vm12 }
 0xac1   : > { %v3380_v6 = vmul.f32 %v4905_v19, %v3379_v32  ;;  %v3377_v7 = vsel %vm3376_vm11, %v4903_v15, %v3373_v31 }
 0xac2   : > { %v3284_v41 = vsel %vm705_vm1, %v3244_v1, 0.0  ;;  %v3492_v37 = vmul.f32 %v3377_v7, %v7000_v10 }
 0xac3   : > { %v3381_v36 = vmul.f32 0.5, %v3380_v6  ;;  %3285 = vadd.xlane.f32.xlu1 %v3284_v41 }
 0xac4   : > { %v3193_v63 = vpop.xlane.xlu2 %3192  ;;  %v3511_v12 = vmul.f32 %v7075_v24, %v3492_v37 }
 0xac5   : > { %v3382_v56 = vsub.f32 1.5, %v3381_v36  ;;  %v3213_v13 = vmul.f32 %v3193_v63, %v7464_v30 }
 0xac6   : > { %v3530_v10 = vadd.f32 %v7088_v58, %v3511_v12 }
 0xac7   : > { %v3383_v40 = vmul.f32 %v4905_v19, %v3382_v56  ;;  %v7130_v62 = vsub.f32 %v7033_v2, %v3213_v13 }
 0xac9   : > { %v3387_v38 = vsel %vm3386_vm14, %v4905_v19, %v3383_v40  ;;  %v3245_v35 = vmul.f32 %v7130_v62, %v7130_v62  ;;  %v4529_v40 = vld [vmem:[%s5225_s22 + $0x38] sm:$0xff] }
 0xaca   : > { %v3493_v34 = vmul.f32 %v3387_v38, %v7011_v50  ;;  %v3318_v50 = vadd.f32 1e-05, %v3302_v5  ;;  %4055 = vmatpush.bf16.msrb.mxu0 %v4529_v40  ;;  %4532 = vmatpush.bf16.msra.mxu3 %v4529_v40 }
 0xacb   : > { %v3287_v28 = vsel %vm705_vm1, %v3245_v35, 0.0 }
 0xacc   : > { %3288 = vadd.xlane.f32.xlu0 %v3287_v28  ;;  %v3512_v49 = vmul.f32 %v7075_v24, %v3493_v34  ;;  %4906 = vrsqrt.f32 %v3318_v50  ;;  %vm3394_vm0 = vweird.f32 %v3318_v50 }
 0xace   : > { %v3531_v21 = vadd.f32 %v7088_v58, %v3512_v49 }
 0xad0   : > { %v3544_v54 = vpack.c.bf16 %v3531_v21, %v3530_v10  ;;  %v4528_v21 = vld [vmem:[%s5225_s22 + $0x30] sm:$0xff] }
 0xad1   : > { %4056 = vmatpush.bf16.msrb.mxu0 %v4528_v21  ;;  %4533 = vmatpush.bf16.msra.mxu3 %v4528_v21 }
 0xad2   : > { %4446 = vmatmul.msk.bf16.gmra.mxu1 %vm705_vm1, %v3544_v54  ;;  %v4907_v27 = vpop.eup %4906 }
 0xad3   : > { %v3389_v48 = vmul.f32 %v4907_v27, %v3318_v50  ;;  %vm3395_vm15 = vweird.f32 %v4907_v27 }
 0xad4   : > { %vm3396_vm2 = vmor %vm3394_vm0, %vm3395_vm15 }
 0xad5   : > { %v3390_v57 = vmul.f32 %v4907_v27, %v3389_v48 }
 0xad6   : > { %v3199_v42 = vpop.xlane.xlu0 %3198 }
 0xad7   : > { %v3215_v22 = vmul.f32 %v3199_v42, %v7464_v30  ;;  %v3391_v18 = vmul.f32 0.5, %v3390_v57 }
 0xad9   : > { %v7144_v15 = vsub.f32 %v7039_v60, %v3215_v22  ;;  %v3392_v23 = vsub.f32 1.5, %v3391_v18 }
 0xadb   : > { %v3247_v11 = vmul.f32 %v7144_v15, %v7144_v15  ;;  %v3393_v36 = vmul.f32 %v4907_v27, %v3392_v23 }
 0xadd   : > { %v3293_v47 = vsel %vm705_vm1, %v3247_v11, 0.0  ;;  %v3397_v38 = vsel %vm3396_vm2, %v4907_v27, %v3393_v36  ;;  %v4527_v27 = vld [vmem:[%s5225_s22 + $0x28] sm:$0xff] }
 0xade   : > { %3294 = vadd.xlane.f32.xlu1 %v3293_v47  ;;  %v3494_v10 = vmul.f32 %v3397_v38, %v7024_v33  ;;  %4057 = vmatpush.bf16.msrb.mxu0 %v4527_v27 }
 0xadf   : > { %4534 = vmatpush.bf16.msra.mxu3 %v4527_v27 }
 0xae0   : > { %v3513_v47 = vmul.f32 %v7075_v24, %v3494_v10 }
 0xaea   : > { %v3271_v53 = vpop.xlane.xlu1 %3270 }
 0xaeb   : > { %v3303_v44 = vmul.f32 %v3271_v53, %v7464_v30  ;;  %v3532_v53 = vadd.f32 %v7088_v58, %v3513_v47 }
 0xaed   : > { %v3319_v0 = vadd.f32 1e-05, %v3303_v44 }
 0xaef   : > { %4908 = vrsqrt.f32 %v3319_v0  ;;  %vm3404_vm4 = vweird.f32 %v3319_v0 }
 0xaf2   : > { %v3196_v19 = vpop.xlane.xlu1 %3195  ;;  %v3274_v31 = vpop.xlane.xlu2 %3273 }
 0xaf3   : > { %v3214_v32 = vmul.f32 %v3196_v19, %v7464_v30  ;;  %v3304_v1 = vmul.f32 %v3274_v31, %v7464_v30  ;;  %v7174_v31 = vld [vmem:[%s631_s17] ss:$0 sm:$0xff] }
 0xaf5   : > { %v4909_v6 = vpop.eup %4908  ;;  %v7153_v41 = vsub.f32 %v7058_v8, %v3214_v32  ;;  %v3320_v7 = vadd.f32 1e-05, %v3304_v1  ;;  %v4525_v1 = vld [vmem:[%s5225_s22 + $0x18] sm:$0xff] }
 0xaf6   : > { %v3399_v63 = vmul.f32 %v4909_v6, %v3319_v0  ;;  %vm3405_vm3 = vweird.f32 %v4909_v6  ;;  %v4526_v0 = vld [vmem:[%s5225_s22 + $0x20] sm:$0xff] }
 0xaf7   : > { %4910 = vrsqrt.f32 %v3320_v7  ;;  %v3246_v56 = vmul.f32 %v7153_v41, %v7153_v41  ;;  %vm3406_vm5 = vmor %vm3404_vm4, %vm3405_vm3  ;;  %4058 = vmatpush.bf16.msrb.mxu0 %v4526_v0  ;;  %4535 = vmatpush.bf16.msra.mxu3 %v4526_v0  ;;  %vm3414_vm7 = vweird.f32 %v3320_v7 }
 0xaf8   : > { %v3400_v13 = vmul.f32 %v4909_v6, %v3399_v63 }
 0xaf9   : > { %v3290_v37 = vsel %vm705_vm1, %v3246_v56, 0.0 }
 0xafa   : > { %v3401_v35 = vmul.f32 0.5, %v3400_v13  ;;  %3291 = vadd.xlane.f32.xlu2 %v3290_v37  ;;  %v4524_v37 = vld [vmem:[%s5225_s22 + $0x10] sm:$0xff] }
 0xafb   : > { %v3277_v34 = vpop.xlane.xlu1 %3276  ;;  %4059 = vmatpush.bf16.msrb.mxu0 %v4525_v1  ;;  %4536 = vmatpush.bf16.msra.mxu3 %v4525_v1 }
 0xafc   : > { %v3402_v12 = vsub.f32 1.5, %v3401_v35  ;;  %v3305_v28 = vmul.f32 %v3277_v34, %v7464_v30 }
 0xafd   : > { %v4911_v49 = vpop.eup %4910 }
 0xafe   : > { %v3403_v54 = vmul.f32 %v4909_v6, %v3402_v12  ;;  %v3409_v5 = vmul.f32 %v4911_v49, %v3320_v7  ;;  %v3321_v42 = vadd.f32 1e-05, %v3305_v28  ;;  %vm3415_vm6 = vweird.f32 %v4911_v49  ;;  %v4523_v28 = vld [vmem:[%s5225_s22 + $0x8] sm:$0xff] }
 0xaff   : > { %vm3416_vm8 = vmor %vm3414_vm7, %vm3415_vm6  ;;  %4060 = vmatpush.bf16.msrb.mxu0 %v4524_v37  ;;  %4537 = vmatpush.bf16.msra.mxu3 %v4524_v37 }
 0xb00   : > { %v3407_v22 = vsel %vm3406_vm5, %v4909_v6, %v3403_v54  ;;  %v3410_v50 = vmul.f32 %v4911_v49, %v3409_v5  ;;  %4912 = vrsqrt.f32 %v3321_v42  ;;  %vm3424_vm10 = vweird.f32 %v3321_v42 }
 0xb01   : > { %v3495_v11 = vmul.f32 %v3407_v22, %v7049_v61 }
 0xb02   : > { %v3411_v48 = vmul.f32 0.5, %v3410_v50 }
 0xb03   : > { %v3514_v33 = vmul.f32 %v7075_v24, %v3495_v11  ;;  %v3280_v12 = vpop.xlane.xlu0 %3279  ;;  %4061 = vmatpush.bf16.msrb.mxu0 %v4523_v28  ;;  %4538 = vmatpush.bf16.msra.mxu3 %v4523_v28 }
 0xb04   : > { %v3412_v57 = vsub.f32 1.5, %v3411_v48 }
 0xb05   : > { %v3533_v44 = vadd.f32 %v7088_v58, %v3514_v33 }
 0xb06   : > { %v4913_v18 = vpop.eup %4912  ;;  %v3413_v23 = vmul.f32 %v4911_v49, %v3412_v57 }
 0xb07   : > { %v3419_v61 = vmul.f32 %v4913_v18, %v3321_v42  ;;  %v3545_v19 = vpack.c.bf16 %v3533_v44, %v3532_v53  ;;  %vm3425_vm9 = vweird.f32 %v4913_v18  ;;  %v4522_v42 = vld [vmem:[%s5225_s22] sm:$0xff] }
 0xb08   : > { %v3417_v6 = vsel %vm3416_vm8, %v4911_v49, %v3413_v23  ;;  %vm3426_vm11 = vmor %vm3424_vm10, %vm3425_vm9  ;;  %4062 = vmatpush.bf16.msrb.mxu0 %v4522_v42  ;;  %4539 = vmatpush.bf16.msra.mxu3 %v4522_v42 }
 0xb09   : > { %v3420_v32 = vmul.f32 %v4913_v18, %v3419_v61  ;;  %4447 = vmatmul.msk.bf16.gmra.mxu1 %vm705_vm1, %v3545_v19  ;;  %v3496_v40 = vmul.f32 %v3417_v6, %v7061_v9  ;;  %v3306_v9 = vmul.f32 %v3280_v12, %v7464_v30 }
 0xb0b   : > { %v3421_v36 = vmul.f32 0.5, %v3420_v32  ;;  %v3603_v63 = vpop.f32.mrf.mxu1  ;;  %v3515_v10 = vmul.f32 %v7075_v24, %v3496_v40  ;;  %v7196_v47 = vadd.f32 1e-05, %v3306_v9 }
 0xb0c   : > { %v7179_v56 = vadd.f32 %v7174_v31, %v3603_v63 }
 0xb0d   : > { %v3422_v13 = vsub.f32 1.5, %v3421_v36  ;;  %v3534_v50 = vadd.f32 %v7088_v58, %v3515_v10  ;;  %vm3434_vm6 = vweird.f32 %v7196_v47 }
 0xb0e   : > { %v4452_v7 = vmul.f32 -1.702, %v7179_v56 }
 0xb0f   : > { %v3423_v38 = vmul.f32 %v4913_v18, %v3422_v13 }
 0xb10   : > { %v3675_v35 = vmul.f32 1.442695, %v4452_v7 }
 0xb11   : > { %v3427_v34 = vsel %vm3426_vm11, %v4913_v18, %v3423_v38 }
 0xb12   : > { %v3497_v49 = vmul.f32 %v3427_v34, %v7079_v25  ;;  %4914 = vpow2.f32 %v3675_v35 }
 0xb13   : > { %v3605_v21 = vpop.f32.mrf.mxu1 }
 0xb14   : > { %v7189_v54 = vadd.f32 %v7174_v31, %v3605_v21  ;;  %v3516_v5 = vmul.f32 %v7075_v24, %v3497_v49 }
 0xb16   : > { %v4453_v22 = vmul.f32 -1.702, %v7189_v54  ;;  %v3535_v25 = vadd.f32 %v7088_v58, %v3516_v5 }
 0xb18   : > { %v4915_v11 = vpop.eup %4914  ;;  %v3677_v27 = vmul.f32 1.442695, %v4453_v22  ;;  %v3546_v48 = vpack.c.bf16 %v3535_v25, %v3534_v50 }
 0xb19   : > { %v3707_v33 = vadd.f32 1.0, %v4915_v11 }
 0xb1a   : > { %4916 = vpow2.f32 %v3677_v27  ;;  %4448 = vmatmul.msk.bf16.gmra.mxu1 %vm705_vm1, %v3546_v48 }
 0xb1b   : > { %4918 = vrcp.f32 %v3707_v33  ;;  %v3734_v28 = vand.u32 2147483648, %v3707_v33  ;;  %vm3728_vm13 = vweird.f32 %v3707_v33  ;;  %v3732_v10 = vand.u32 2147483647, %v3707_v33 }
 0xb1c   : > { %4920 = vrsqrt.f32 %v7196_v47  ;;  %v3608_v57 = vpop.f32.mrf.mxu1 }
 0xb1d   : > { %v7201_v53 = vadd.f32 %v7174_v31, %v3608_v57  ;;  %v3735_v11 = vor.u32 1.1754944e-38, %v3734_v28  ;;  %vm3733_vm0 = vcmp.eq.f32.partialorder %v3732_v10, 8.507059e+37 }
 0xb1f   : > { %v4454_v44 = vmul.f32 -1.702, %v7201_v53 }
 0xb20   : > { %v4917_v0 = vpop.eup %4916 }
 0xb21   : > { %v4919_v18 = vpop.eup %4918  ;;  %v3708_v23 = vadd.f32 1.0, %v4917_v0  ;;  %v3679_v61 = vmul.f32 1.442695, %v4454_v44 }
 0xb22   : > { %v7204_v19 = vpop.eup %4920  ;;  %v3724_v32 = vmul.f32 %v4919_v18, %v3707_v33  ;;  %vm3729_vm12 = vweird.f32 %v4919_v18 }
 0xb23   : > { %4922 = vrcp.f32 %v3708_v23  ;;  %v3429_v36 = vmul.f32 %v7204_v19, %v7196_v47  ;;  %vm3730_vm14 = vmor %vm3728_vm13, %vm3729_vm12  ;;  %v3749_v5 = vand.u32 2147483648, %v3708_v23  ;;  %v3747_v50 = vand.u32 2147483647, %v3708_v23 }
 0xb24   : > { %v3725_v1 = vsub.f32 1.0, %v3724_v32  ;;  %4924 = vpow2.f32 %v3679_v61  ;;  %v3610_v6 = vpop.f32.mrf.mxu1  ;;  %vm3743_vm2 = vweird.f32 %v3708_v23  ;;  %vm3435_vm5 = vweird.f32 %v7204_v19 }
 0xb25   : > { %v7209_v63 = vadd.f32 %v7174_v31, %v3610_v6  ;;  %v3430_v7 = vmul.f32 %v7204_v19, %v3429_v36  ;;  %v3750_v33 = vor.u32 1.1754944e-38, %v3749_v5  ;;  %vm3748_vm4 = vcmp.eq.f32.partialorder %v3747_v50, 8.507059e+37  ;;  %vm3436_vm7 = vmor %vm3434_vm6, %vm3435_vm5 }
 0xb26   : > { %v3726_v13 = vmul.f32 %v4919_v18, %v3725_v1 }
 0xb27   : > { %v4455_v37 = vmul.f32 -1.702, %v7209_v63  ;;  %v3431_v9 = vmul.f32 0.5, %v3430_v7 }
 0xb28   : > { %v3727_v34 = vadd.f32 %v4919_v18, %v3726_v13 }
 0xb29   : > { %v4923_v40 = vpop.eup %4922  ;;  %v3681_v38 = vmul.f32 1.442695, %v4455_v37  ;;  %v3432_v61 = vsub.f32 1.5, %v3431_v9 }
 0xb2a   : > { %v4925_v35 = vpop.eup %4924  ;;  %v3739_v12 = vmul.f32 %v4923_v40, %v3708_v23  ;;  %v3731_v42 = vsel %vm3730_vm14, %v4919_v18, %v3727_v34  ;;  %vm3744_vm15 = vweird.f32 %v4923_v40 }
 0xb2b   : > { %v7213_v49 = vadd.f32 1.0, %v4925_v35  ;;  %4926 = vpow2.f32 %v3681_v38  ;;  %v3736_v44 = vsel %vm3733_vm0, %v3735_v11, %v3731_v42  ;;  %vm3745_vm3 = vmor %vm3743_vm2, %vm3744_vm15  ;;  %v3433_v23 = vmul.f32 %v7204_v19, %v3432_v61 }
 0xb2c   : > { %v3740_v21 = vsub.f32 1.0, %v3739_v12  ;;  %v3963_v36 = vmul.f32 %v3736_v44, %v7179_v56 }
 0xb2d   : > { %4928 = vrcp.f32 %v7213_v49  ;;  %v3437_v28 = vsel %vm3436_vm7, %v7204_v19, %v3433_v23  ;;  %v3762_v10 = vand.u32 2147483647, %v7213_v49  ;;  %v3764_v42 = vand.u32 2147483648, %v7213_v49 }
 0xb2e   : > { %v3741_v22 = vmul.f32 %v4923_v40, %v3740_v21  ;;  %v3283_v25 = vpop.xlane.xlu2 %3282  ;;  %vm3758_vm9 = vweird.f32 %v7213_v49 }
 0xb2f   : > { %v3307_v27 = vmul.f32 %v3283_v25, %v7464_v30  ;;  %v3498_v25 = vmul.f32 %v3437_v28, %v7098_v51  ;;  %vm7236_vm11 = vcmp.eq.f32.partialorder %v3762_v10, 8.507059e+37 }
 0xb30   : > { %v3742_v48 = vadd.f32 %v4923_v40, %v3741_v22 }
 0xb31   : > { %v4927_v57 = vpop.eup %4926  ;;  %v3323_v0 = vadd.f32 1e-05, %v3307_v27  ;;  %v3517_v28 = vmul.f32 %v7075_v24, %v3498_v25 }
 0xb32   : > { %v3746_v32 = vsel %vm3745_vm3, %v4923_v40, %v3742_v48  ;;  %v3710_v1 = vadd.f32 1.0, %v4927_v57 }
 0xb33   : > { %v4929_v18 = vpop.eup %4928  ;;  %v3751_v6 = vsel %vm3748_vm4, %v3750_v33, %v3746_v32  ;;  %4930 = vrsqrt.f32 %v3323_v0  ;;  %v3765_v33 = vor.u32 1.1754944e-38, %v3764_v42  ;;  %vm3444_vm15 = vweird.f32 %v3323_v0 }
 0xb34   : > { %v3964_v13 = vmul.f32 %v3751_v6, %v7189_v54  ;;  %v3754_v37 = vmul.f32 %v4929_v18, %v7213_v49  ;;  %4932 = vrcp.f32 %v3710_v1  ;;  %vm3759_vm8 = vweird.f32 %v4929_v18 }
 0xb35   : > { %v3779_v50 = vand.u32 2147483648, %v3710_v1  ;;  %vm7232_vm10 = vmor %vm3758_vm9, %vm3759_vm8  ;;  %v3777_v44 = vand.u32 2147483647, %v3710_v1  ;;  %vm3773_vm14 = vweird.f32 %v3710_v1 }
 0xb36   : > { %v3979_v7 = vpack.c.bf16 %v3964_v13, %v3963_v36  ;;  %v3755_v38 = vsub.f32 1.0, %v3754_v37  ;;  %v3286_v35 = vpop.xlane.xlu1 %3285 }
 0xb37   : > { %v3308_v40 = vmul.f32 %v3286_v35, %v7464_v30  ;;  %v3780_v36 = vor.u32 1.1754944e-38, %v3779_v50  ;;  %vm3778_vm2 = vcmp.eq.f32.partialorder %v3777_v44, 8.507059e+37 }
 0xb38   : > { %v3756_v34 = vmul.f32 %v4929_v18, %v3755_v38  ;;  %4063 = vmatmul.bf16.vlgmr.msrb.gmra.mxu0 %v3979_v7 }
 0xb39   : > { %v4931_v12 = vpop.eup %4930  ;;  %v7224_v56 = vadd.f32 1e-05, %v3308_v40 }
 0xb3a   : > { %v4933_v54 = vpop.eup %4932  ;;  %v3439_v21 = vmul.f32 %v4931_v12, %v3323_v0  ;;  %v3757_v9 = vadd.f32 %v4929_v18, %v3756_v34  ;;  %vm3445_vm13 = vweird.f32 %v4931_v12 }
 0xb3b   : > { %v3769_v5 = vmul.f32 %v4933_v54, %v3710_v1  ;;  %4934 = vrsqrt.f32 %v7224_v56  ;;  %vm3774_vm12 = vweird.f32 %v4933_v54  ;;  %vm3446_vm3 = vmor %vm3444_vm15, %vm3445_vm13  ;;  %vm3454_vm5 = vweird.f32 %v7224_v56 }
 0xb3c   : > { %v3440_v47 = vmul.f32 %v4931_v12, %v3439_v21  ;;  %v3761_v48 = vsel %vm7232_vm10, %v4929_v18, %v3757_v9  ;;  %vm3775_vm0 = vmor %vm3773_vm14, %vm3774_vm12 }
 0xb3d   : > { %v3770_v22 = vsub.f32 1.0, %v3769_v5  ;;  %v3766_v13 = vsel %vm7236_vm11, %v3765_v33, %v3761_v48 }
 0xb3e   : > { %v3441_v27 = vmul.f32 0.5, %v3440_v47  ;;  %v3965_v34 = vmul.f32 %v3766_v13, %v7201_v53 }
 0xb3f   : > { %v3771_v57 = vmul.f32 %v4933_v54, %v3770_v22  ;;  %v3289_v49 = vpop.xlane.xlu0 %3288 }
 0xb40   : > { %v3442_v61 = vsub.f32 1.5, %v3441_v27  ;;  %v3309_v51 = vmul.f32 %v3289_v49, %v7464_v30 }
 0xb41   : > { %v4935_v32 = vpop.eup %4934  ;;  %v3772_v6 = vadd.f32 %v4933_v54, %v3771_v57 }
 0xb42   : > { %v3443_v37 = vmul.f32 %v4931_v12, %v3442_v61  ;;  %v3449_v18 = vmul.f32 %v4935_v32, %v7224_v56  ;;  %v3325_v23 = vadd.f32 1e-05, %v3309_v51  ;;  %vm3455_vm4 = vweird.f32 %v4935_v32 }
 0xb43   : > { %v3776_v7 = vsel %vm3775_vm0, %v4933_v54, %v3772_v6  ;;  %v3536_v54 = vadd.f32 %v7088_v58, %v3517_v28  ;;  %vm3456_vm6 = vmor %vm3454_vm5, %vm3455_vm4 }
 0xb44   : > { %v3781_v38 = vsel %vm3778_vm2, %v3780_v36, %v3776_v7  ;;  %v3447_v35 = vsel %vm3446_vm3, %v4931_v12, %v3443_v37  ;;  %v3450_v40 = vmul.f32 %v4935_v32, %v3449_v18  ;;  %4936 = vrsqrt.f32 %v3325_v23 }
 0xb45   : > { %v3966_v1 = vmul.f32 %v3781_v38, %v7209_v63  ;;  %v3499_v0 = vmul.f32 %v3447_v35, %v7115_v17  ;;  %vm3464_vm8 = vweird.f32 %v3325_v23 }
 0xb46   : > { %v3451_v10 = vmul.f32 0.5, %v3450_v40 }
 0xb47   : > { %v3980_v21 = vpack.c.bf16 %v3966_v1, %v3965_v34  ;;  %v3518_v9 = vmul.f32 %v7075_v24, %v3499_v0 }
 0xb48   : > { %v3452_v5 = vsub.f32 1.5, %v3451_v10 }
 0xb49   : > { %4068 = vmatmul.bf16.vlgmr.msra.gmra.mxu3 %v3980_v21  ;;  %v3537_v12 = vadd.f32 %v7088_v58, %v3518_v9 }
 0xb4a   : > { %v4937_v42 = vpop.eup %4936  ;;  %v3453_v47 = vmul.f32 %v4935_v32, %v3452_v5 }
 0xb4b   : > { %v3459_v53 = vmul.f32 %v4937_v42, %v3325_v23  ;;  %v3547_v22 = vpack.c.bf16 %v3537_v12, %v3536_v54  ;;  %vm3465_vm7 = vweird.f32 %v4937_v42 }
 0xb4c   : > { %v3457_v63 = vsel %vm3456_vm6, %v4935_v32, %v3453_v47  ;;  %vm3466_vm9 = vmor %vm3464_vm8, %vm3465_vm7 }
 0xb4d   : > { %v3460_v17 = vmul.f32 %v4937_v42, %v3459_v53  ;;  %4449 = vmatmul.msk.bf16.gmra.mxu1 %vm705_vm1, %v3547_v22  ;;  %v3500_v27 = vmul.f32 %v3457_v63, %v7122_v16 }
 0xb4f   : > { %v3461_v50 = vmul.f32 0.5, %v3460_v17  ;;  %v3613_v25 = vpop.f32.mrf.mxu1  ;;  %v3519_v61 = vmul.f32 %v7075_v24, %v3500_v27 }
 0xb50   : > { %v7256_v11 = vadd.f32 %v7174_v31, %v3613_v25 }
 0xb51   : > { %v3462_v19 = vsub.f32 1.5, %v3461_v50  ;;  %v3295_v49 = vpop.xlane.xlu1 %3294  ;;  %v3538_v13 = vadd.f32 %v7088_v58, %v3519_v61 }
 0xb52   : > { %v4456_v48 = vmul.f32 -1.702, %v7256_v11  ;;  %v3311_v32 = vmul.f32 %v3295_v49, %v7464_v30 }
 0xb53   : > { %v3463_v57 = vmul.f32 %v4937_v42, %v3462_v19 }
 0xb54   : > { %v3683_v56 = vmul.f32 1.442695, %v4456_v48  ;;  %v3327_v23 = vadd.f32 1e-05, %v3311_v32 }
 0xb55   : > { %v3467_v44 = vsel %vm3466_vm9, %v4937_v42, %v3463_v57 }
 0xb56   : > { %v3501_v33 = vmul.f32 %v3467_v44, %v7130_v62  ;;  %4938 = vpow2.f32 %v3683_v56  ;;  %vm3484_vm4 = vweird.f32 %v3327_v23 }
 0xb57   : > { %v3615_v51 = vpop.f32.mrf.mxu1 }
 0xb58   : > { %v3616_v6 = vadd.f32 %v7174_v31, %v3615_v51  ;;  %v3520_v16 = vmul.f32 %v7075_v24, %v3501_v33 }
 0xb5a   : > { %v4457_v36 = vmul.f32 -1.702, %v3616_v6  ;;  %v3539_v37 = vadd.f32 %v7088_v58, %v3520_v16 }
 0xb5c   : > { %v4939_v18 = vpop.eup %4938  ;;  %v3685_v7 = vmul.f32 1.442695, %v4457_v36  ;;  %v3548_v38 = vpack.c.bf16 %v3539_v37, %v3538_v13 }
 0xb5d   : > { %v3711_v62 = vadd.f32 1.0, %v4939_v18 }
 0xb5e   : > { %4940 = vpow2.f32 %v3685_v7  ;;  %4450 = vmatmul.msk.bf16.gmra.mxu1 %vm705_vm1, %v3548_v38 }
 0xb5f   : > { %4942 = vrcp.f32 %v3711_v62  ;;  %v3794_v53 = vand.u32 2147483648, %v3711_v62  ;;  %vm3788_vm11 = vweird.f32 %v3711_v62  ;;  %v3792_v22 = vand.u32 2147483647, %v3711_v62 }
 0xb60   : > { %4944 = vrsqrt.f32 %v3327_v23 }
 0xb61   : > { %v3795_v57 = vor.u32 1.1754944e-38, %v3794_v53  ;;  %vm3793_vm14 = vcmp.eq.f32.partialorder %v3792_v22, 8.507059e+37 }
 0xb64   : > { %v4941_v35 = vpop.eup %4940 }
 0xb65   : > { %v4943_v40 = vpop.eup %4942  ;;  %v3712_v34 = vadd.f32 1.0, %v4941_v35 }
 0xb66   : > { %v4945_v1 = vpop.eup %4944  ;;  %v3784_v0 = vmul.f32 %v4943_v40, %v3711_v62  ;;  %vm3789_vm10 = vweird.f32 %v4943_v40 }
 0xb67   : > { %4946 = vrcp.f32 %v3712_v34  ;;  %v3479_v10 = vmul.f32 %v4945_v1, %v3327_v23  ;;  %vm3790_vm12 = vmor %vm3788_vm11, %vm3789_vm10  ;;  %v3807_v25 = vand.u32 2147483647, %v3712_v34  ;;  %v3809_v19 = vand.u32 2147483648, %v3712_v34 }
 0xb68   : > { %v3785_v28 = vsub.f32 1.0, %v3784_v0  ;;  %vm3803_vm15 = vweird.f32 %v3712_v34  ;;  %vm3485_vm3 = vweird.f32 %v4945_v1 }
 0xb69   : > { %v3480_v5 = vmul.f32 %v4945_v1, %v3479_v10  ;;  %vm3808_vm2 = vcmp.eq.f32.partialorder %v3807_v25, 8.507059e+37  ;;  %vm3486_vm5 = vmor %vm3484_vm4, %vm3485_vm3 }
 0xb6a   : > { %v3786_v21 = vmul.f32 %v4943_v40, %v3785_v28 }
 0xb6b   : > { %v3481_v50 = vmul.f32 0.5, %v3480_v5 }
 0xb6c   : > { %v3787_v12 = vadd.f32 %v4943_v40, %v3786_v21 }
 0xb6d   : > { %v4947_v9 = vpop.eup %4946  ;;  %v3292_v54 = vpop.xlane.xlu2 %3291  ;;  %v3482_v49 = vsub.f32 1.5, %v3481_v50 }
 0xb6e   : > { %v3799_v42 = vmul.f32 %v4947_v9, %v3712_v34  ;;  %v3310_v47 = vmul.f32 %v3292_v54, %v7464_v30  ;;  %v3791_v27 = vsel %vm3790_vm12, %v4943_v40, %v3787_v12  ;;  %vm3804_vm13 = vweird.f32 %v4947_v9 }
 0xb6f   : > { %v3796_v44 = vsel %vm3793_vm14, %v3795_v57, %v3791_v27  ;;  %vm3805_vm0 = vmor %vm3803_vm15, %vm3804_vm13  ;;  %v3810_v30 = vor.u32 1.1754944e-38, %v3809_v19  ;;  %v3483_v36 = vmul.f32 %v4945_v1, %v3482_v49 }
 0xb70   : > { %v3800_v17 = vsub.f32 1.0, %v3799_v42  ;;  %v3326_v63 = vadd.f32 1e-05, %v3310_v47  ;;  %v3967_v32 = vmul.f32 %v3796_v44, %v7256_v11 }
 0xb71   : > { %v3487_v7 = vsel %vm3486_vm5, %v4945_v1, %v3483_v36 }
 0xb72   : > { %v3801_v48 = vmul.f32 %v4947_v9, %v3800_v17  ;;  %4948 = vrsqrt.f32 %v3326_v63  ;;  %v3503_v35 = vmul.f32 %v3487_v7, %v7144_v15  ;;  %vm3474_vm7 = vweird.f32 %v3326_v63 }
 0xb74   : > { %v3802_v56 = vadd.f32 %v4947_v9, %v3801_v48  ;;  %v3522_v11 = vmul.f32 %v7075_v24, %v3503_v35 }
 0xb76   : > { %v3806_v33 = vsel %vm3805_vm0, %v4947_v9, %v3802_v56  ;;  %v3541_v1 = vadd.f32 %v7088_v58, %v3522_v11 }
 0xb77   : > { %v3811_v61 = vsel %vm3808_vm2, %v3810_v30, %v3806_v33 }
 0xb78   : > { %v4949_v51 = vpop.eup %4948  ;;  %v3968_v16 = vmul.f32 %v3811_v61, %v3616_v6 }
 0xb79   : > { %v3469_v13 = vmul.f32 %v4949_v51, %v3326_v63  ;;  %vm3475_vm6 = vweird.f32 %v4949_v51 }
 0xb7a   : > { %v3981_v37 = vpack.c.bf16 %v3968_v16, %v3967_v32  ;;  %vm3476_vm8 = vmor %vm3474_vm7, %vm3475_vm6 }
 0xb7b   : > { %v3470_v18 = vmul.f32 %v4949_v51, %v3469_v13 }
 0xb7c   : > { %4073 = vmatmul.bf16.gmra.mxu3 %v3981_v37 }
 0xb7d   : > { %v3471_v38 = vmul.f32 0.5, %v3470_v18 }
 0xb7f   : > { %v3472_v62 = vsub.f32 1.5, %v3471_v38 }
 0xb81   : > { %v3473_v40 = vmul.f32 %v4949_v51, %v3472_v62 }
 0xb83   : > { %v3477_v34 = vsel %vm3476_vm8, %v4949_v51, %v3473_v40 }
 0xb84   : > { %v3502_v6 = vmul.f32 %v3477_v34, %v7153_v41 }
 0xb86   : > { %v3521_v0 = vmul.f32 %v7075_v24, %v3502_v6  ;;  %v3618_v23 = vpop.f32.mrf.mxu1 }
 0xb87   : > { %v7275_v28 = vadd.f32 %v7174_v31, %v3618_v23 }
 0xb88   : > { %v3540_v10 = vadd.f32 %v7088_v58, %v3521_v0 }
 0xb89   : > { %v4458_v15 = vmul.f32 -1.702, %v7275_v28 }
 0xb8a   : > { %v3549_v21 = vpack.c.bf16 %v3541_v1, %v3540_v10 }
 0xb8b   : > { %v3687_v9 = vmul.f32 1.442695, %v4458_v15 }
 0xb8c   : > { %4451 = vmatmul.msk.bf16.vlgmr.msrb.gmra.mxu2 %vm705_vm1, %v3549_v21 }
 0xb8d   : > { %4950 = vpow2.f32 %v3687_v9 }
 0xb8e   : > { %v3620_v5 = vpop.f32.mrf.mxu1 }
 0xb8f   : > { %v3621_v41 = vadd.f32 %v7174_v31, %v3620_v5  ;;  %v7296_v5 = vld [vmem:[%s639_s23] ss:$0 sm:$0xff] }
 0xb91   : > { %v4459_v54 = vmul.f32 -1.702, %v3621_v41 }
 0xb93   : > { %v4951_v24 = vpop.eup %4950  ;;  %v3689_v12 = vmul.f32 1.442695, %v4459_v54 }
 0xb94   : > { %v3713_v42 = vadd.f32 1.0, %v4951_v24 }
 0xb95   : > { %4952 = vpow2.f32 %v3689_v12 }
 0xb96   : > { %4954 = vrcp.f32 %v3713_v42  ;;  %v3824_v51 = vand.u32 2147483648, %v3713_v42  ;;  %vm3818_vm10 = vweird.f32 %v3713_v42  ;;  %v3822_v16 = vand.u32 2147483647, %v3713_v42 }
 0xb97   : > { %v3623_v47 = vpop.f32.mrf.mxu1 }
 0xb98   : > { %v7283_v53 = vadd.f32 %v7174_v31, %v3623_v47  ;;  %v3825_v38 = vor.u32 1.1754944e-38, %v3824_v51  ;;  %vm3823_vm13 = vcmp.eq.f32.partialorder %v3822_v16, 8.507059e+37 }
 0xb9a   : > { %v4460_v58 = vmul.f32 -1.702, %v7283_v53 }
 0xb9b   : > { %v4953_v22 = vpop.eup %4952 }
 0xb9c   : > { %v4955_v17 = vpop.eup %4954  ;;  %v3714_v63 = vadd.f32 1.0, %v4953_v22  ;;  %v3691_v50 = vmul.f32 1.442695, %v4460_v58 }
 0xb9d   : > { %v3814_v25 = vmul.f32 %v4955_v17, %v3713_v42  ;;  %vm3819_vm9 = vweird.f32 %v4955_v17 }
 0xb9e   : > { %4956 = vrcp.f32 %v3714_v63  ;;  %vm3820_vm11 = vmor %vm3818_vm10, %vm3819_vm9  ;;  %v3839_v13 = vand.u32 2147483648, %v3714_v63  ;;  %v3837_v7 = vand.u32 2147483647, %v3714_v63  ;;  %vm3833_vm14 = vweird.f32 %v3714_v63 }
 0xb9f   : > { %v3815_v19 = vsub.f32 1.0, %v3814_v25  ;;  %4958 = vpow2.f32 %v3691_v50  ;;  %v3625_v27 = vpop.f32.mrf.mxu1 }
 0xba0   : > { %v7287_v48 = vadd.f32 %v7174_v31, %v3625_v27  ;;  %v3840_v34 = vor.u32 1.1754944e-38, %v3839_v13  ;;  %vm3838_vm0 = vcmp.eq.f32.partialorder %v3837_v7, 8.507059e+37 }
 0xba1   : > { %v3816_v57 = vmul.f32 %v4955_v17, %v3815_v19 }
 0xba2   : > { %v4461_v56 = vmul.f32 -1.702, %v7287_v48 }
 0xba3   : > { %v3817_v33 = vadd.f32 %v4955_v17, %v3816_v57 }
 0xba4   : > { %v4957_v44 = vpop.eup %4956  ;;  %v3693_v49 = vmul.f32 1.442695, %v4461_v56 }
 0xba5   : > { %v4959_v30 = vpop.eup %4958  ;;  %v3829_v61 = vmul.f32 %v4957_v44, %v3714_v63  ;;  %v3821_v37 = vsel %vm3820_vm11, %v4955_v17, %v3817_v33  ;;  %vm3834_vm12 = vweird.f32 %v4957_v44 }
 0xba6   : > { %v3715_v32 = vadd.f32 1.0, %v4959_v30  ;;  %4960 = vpow2.f32 %v3693_v49  ;;  %v3826_v40 = vsel %vm3823_vm13, %v3825_v38, %v3821_v37  ;;  %vm3835_vm15 = vmor %vm3833_vm14, %vm3834_vm12 }
 0xba7   : > { %v3830_v36 = vsub.f32 1.0, %v3829_v61  ;;  %v3969_v1 = vmul.f32 %v3826_v40, %v7275_v28 }
 0xba8   : > { %4962 = vrcp.f32 %v3715_v32  ;;  %vm3848_vm3 = vweird.f32 %v3715_v32  ;;  %v3852_v58 = vand.u32 2147483647, %v3715_v32 }
 0xba9   : > { %v3831_v18 = vmul.f32 %v4957_v44, %v3830_v36 }
 0xbaa   : > { %vm3853_vm6 = vcmp.eq.f32.partialorder %v3852_v58, 8.507059e+37 }
 0xbab   : > { %v3832_v62 = vadd.f32 %v4957_v44, %v3831_v18 }
 0xbac   : > { %v4961_v35 = vpop.eup %4960 }
 0xbad   : > { %v3836_v11 = vsel %vm3835_vm15, %v4957_v44, %v3832_v62  ;;  %v3716_v6 = vadd.f32 1.0, %v4961_v35 }
 0xbae   : > { %v4963_v0 = vpop.eup %4962  ;;  %v3841_v23 = vsel %vm3838_vm0, %v3840_v34, %v3836_v11 }
 0xbaf   : > { %v3970_v10 = vmul.f32 %v3841_v23, %v3621_v41  ;;  %v3844_v15 = vmul.f32 %v4963_v0, %v3715_v32  ;;  %4964 = vrcp.f32 %v3716_v6  ;;  %vm3849_vm2 = vweird.f32 %v4963_v0 }
 0xbb0   : > { %v3854_v41 = vand.u32 2147483648, %v3715_v32  ;;  %vm3850_vm4 = vmor %vm3848_vm3, %vm3849_vm2  ;;  %v3869_v63 = vand.u32 2147483648, %v3716_v6  ;;  %v3867_v19 = vand.u32 2147483647, %v3716_v6  ;;  %vm3863_vm7 = vweird.f32 %v3716_v6 }
 0xbb1   : > { %v3845_v21 = vsub.f32 1.0, %v3844_v15  ;;  %v3982_v9 = vpack.c.bf16 %v3970_v10, %v3969_v1 }
 0xbb2   : > { %v3855_v27 = vor.u32 1.1754944e-38, %v3854_v41  ;;  %v3870_v44 = vor.u32 1.1754944e-38, %v3869_v63  ;;  %vm3868_vm9 = vcmp.eq.f32.partialorder %v3867_v19, 8.507059e+37 }
 0xbb3   : > { %v3846_v54 = vmul.f32 %v4963_v0, %v3845_v21  ;;  %4078 = vmatmul.bf16.gmra.mxu3 %v3982_v9 }
 0xbb5   : > { %v4965_v24 = vpop.eup %4964  ;;  %v4064_v12 = vpop.f32.mrf.mxu0  ;;  %v3847_v42 = vadd.f32 %v4963_v0, %v3846_v54 }
 0xbb6   : > { %v3859_v47 = vmul.f32 %v4965_v24, %v3716_v6  ;;  %v4065_v28 = vadd.f32 %v7296_v5, %v4064_v12  ;;  %vm3864_vm5 = vweird.f32 %v4965_v24 }
 0xbb7   : > { %v3851_v50 = vsel %vm3850_vm4, %v4963_v0, %v3847_v42  ;;  %vm3865_vm8 = vmor %vm3863_vm7, %vm3864_vm5 }
 0xbb8   : > { %v3860_v22 = vsub.f32 1.0, %v3859_v47  ;;  %v4104_v17 = vadd.f32 %v4065_v28, %v6893_v46  ;;  %v3856_v56 = vsel %vm3853_vm6, %v3855_v27, %v3851_v50 }
 0xbb9   : > { %v3971_v61 = vmul.f32 %v3856_v56, %v7283_v53 }
 0xbba   : > { %v3861_v25 = vmul.f32 %v4965_v24, %v3860_v22  ;;  %4120 = vst.msk [vmem:[%s5230_s2] sm:$0xff] %vm705_vm1, %v4104_v17 }
 0xbbc   : > { %v3862_v57 = vadd.f32 %v4965_v24, %v3861_v25 }
 0xbbd   : > { %v4066_v49 = vpop.f32.mrf.mxu0 }
 0xbbe   : > { %v3866_v30 = vsel %vm3865_vm8, %v4965_v24, %v3862_v57  ;;  %v4067_v46 = vadd.f32 %v7296_v5, %v4066_v49 }
 0xbbf   : > { %v3871_v33 = vsel %vm3868_vm9, %v3870_v44, %v3866_v30 }
 0xbc0   : > { %v3972_v51 = vmul.f32 %v3871_v33, %v7287_v48  ;;  %v4105_v32 = vadd.f32 %v4067_v46, %v6901_v4 }
 0xbc2   : > { %4121 = vst.msk [vmem:[%s5230_s2 + $0x8] sm:$0xff] %vm705_vm1, %v4105_v32  ;;  %v3983_v16 = vpack.c.bf16 %v3972_v51, %v3971_v61 }
 0xbc4   : > { %4083 = vmatmul.bf16.gmra.mxu3 %v3983_v16 }
 0xbca   : > { %v3628_v36 = vpop.f32.mrf.mxu1 }
 0xbcb   : > { %v7309_v13 = vadd.f32 %v7174_v31, %v3628_v36 }
 0xbcc   : > { %v4069_v37 = vpop.f32.mrf.mxu3 }
 0xbcd   : > { %v4462_v18 = vmul.f32 -1.702, %v7309_v13  ;;  %v4070_v7 = vadd.f32 %v7296_v5, %v4069_v37 }
 0xbcf   : > { %v3695_v38 = vmul.f32 1.442695, %v4462_v18  ;;  %v4106_v53 = vadd.f32 %v4070_v7, %v6909_v26 }
 0xbd1   : > { %4966 = vpow2.f32 %v3695_v38  ;;  %4122 = vst.msk [vmem:[%s5230_s2 + $0x10] sm:$0xff] %vm705_vm1, %v4106_v53 }
 0xbd2   : > { %v3630_v4 = vpop.f32.mrf.mxu1 }
 0xbd3   : > { %v3631_v48 = vadd.f32 %v7174_v31, %v3630_v4 }
 0xbd4   : > { %v4071_v62 = vpop.f32.mrf.mxu3 }
 0xbd5   : > { %v4463_v35 = vmul.f32 -1.702, %v3631_v48  ;;  %v4072_v40 = vadd.f32 %v7296_v5, %v4071_v62 }
 0xbd7   : > { %v4967_v34 = vpop.eup %4966  ;;  %v3697_v11 = vmul.f32 1.442695, %v4463_v35  ;;  %v4107_v6 = vadd.f32 %v4072_v40, %v6915_v52 }
 0xbd8   : > { %v3717_v0 = vadd.f32 1.0, %v4967_v34 }
 0xbd9   : > { %4968 = vpow2.f32 %v3697_v11  ;;  %4123 = vst.msk [vmem:[%s5230_s2 + $0x18] sm:$0xff] %vm705_vm1, %v4107_v6 }
 0xbda   : > { %4970 = vrcp.f32 %v3717_v0  ;;  %v3884_v63 = vand.u32 2147483648, %v3717_v0  ;;  %vm3878_vm11 = vweird.f32 %v3717_v0  ;;  %v3882_v25 = vand.u32 2147483647, %v3717_v0 }
 0xbdb   : > { %v3633_v26 = vpop.f32.mrf.mxu1 }
 0xbdc   : > { %v7322_v23 = vadd.f32 %v7174_v31, %v3633_v26  ;;  %v3885_v49 = vor.u32 1.1754944e-38, %v3884_v63  ;;  %vm3883_vm14 = vcmp.eq.f32.partialorder %v3882_v25, 8.507059e+37 }
 0xbde   : > { %v4464_v1 = vmul.f32 -1.702, %v7322_v23 }
 0xbdf   : > { %v4969_v10 = vpop.eup %4968 }
 0xbe0   : > { %v4971_v15 = vpop.eup %4970  ;;  %v3718_v21 = vadd.f32 1.0, %v4969_v10  ;;  %v3699_v9 = vmul.f32 1.442695, %v4464_v1 }
 0xbe1   : > { %v3874_v54 = vmul.f32 %v4971_v15, %v3717_v0  ;;  %vm3879_vm10 = vweird.f32 %v4971_v15 }
 0xbe2   : > { %4972 = vrcp.f32 %v3718_v21  ;;  %vm3880_vm12 = vmor %vm3878_vm11, %vm3879_vm10  ;;  %v3899_v27 = vand.u32 2147483648, %v3718_v21  ;;  %v3897_v44 = vand.u32 2147483647, %v3718_v21  ;;  %vm3893_vm15 = vweird.f32 %v3718_v21 }
 0xbe3   : > { %v3875_v24 = vsub.f32 1.0, %v3874_v54  ;;  %4974 = vpow2.f32 %v3699_v9  ;;  %v3635_v52 = vpop.f32.mrf.mxu1 }
 0xbe4   : > { %v7326_v12 = vadd.f32 %v7174_v31, %v3635_v52  ;;  %v3900_v61 = vor.u32 1.1754944e-38, %v3899_v27  ;;  %vm3898_vm2 = vcmp.eq.f32.partialorder %v3897_v44, 8.507059e+37 }
 0xbe5   : > { %v3876_v42 = vmul.f32 %v4971_v15, %v3875_v24 }
 0xbe6   : > { %v4465_v47 = vmul.f32 -1.702, %v7326_v12 }
 0xbe7   : > { %v3877_v22 = vadd.f32 %v4971_v15, %v3876_v42 }
 0xbe8   : > { %v4973_v28 = vpop.eup %4972  ;;  %v3701_v41 = vmul.f32 1.442695, %v4465_v47 }
 0xbe9   : > { %v4975_v58 = vpop.eup %4974  ;;  %v3889_v17 = vmul.f32 %v4973_v28, %v3718_v21  ;;  %v3881_v57 = vsel %vm3880_vm12, %v4971_v15, %v3877_v22  ;;  %vm3894_vm13 = vweird.f32 %v4973_v28 }
 0xbea   : > { %v3719_v50 = vadd.f32 1.0, %v4975_v58  ;;  %4976 = vpow2.f32 %v3701_v41  ;;  %v3886_v33 = vsel %vm3883_vm14, %v3885_v49, %v3881_v57  ;;  %vm3895_vm0 = vmor %vm3893_vm15, %vm3894_vm13 }
 0xbeb   : > { %v3890_v19 = vsub.f32 1.0, %v3889_v17  ;;  %v3973_v37 = vmul.f32 %v3886_v33, %v7309_v13 }
 0xbec   : > { %4978 = vrcp.f32 %v3719_v50  ;;  %v3914_v34 = vand.u32 2147483648, %v3719_v50  ;;  %vm3908_vm4 = vweird.f32 %v3719_v50  ;;  %v3912_v11 = vand.u32 2147483647, %v3719_v50 }
 0xbed   : > { %v3891_v56 = vmul.f32 %v4973_v28, %v3890_v19 }
 0xbee   : > { %vm3913_vm7 = vcmp.eq.f32.partialorder %v3912_v11, 8.507059e+37 }
 0xbef   : > { %v3892_v30 = vadd.f32 %v4973_v28, %v3891_v56 }
 0xbf0   : > { %v4977_v46 = vpop.eup %4976 }
 0xbf1   : > { %v3896_v51 = vsel %vm3895_vm0, %v4973_v28, %v3892_v30  ;;  %v3720_v32 = vadd.f32 1.0, %v4977_v46 }
 0xbf2   : > { %v4979_v16 = vpop.eup %4978  ;;  %v3901_v36 = vsel %vm3898_vm2, %v3900_v61, %v3896_v51 }
 0xbf3   : > { %v3974_v18 = vmul.f32 %v3901_v36, %v3631_v48  ;;  %v3904_v7 = vmul.f32 %v4979_v16, %v3719_v50  ;;  %4980 = vrcp.f32 %v3720_v32  ;;  %vm3909_vm3 = vweird.f32 %v4979_v16 }
 0xbf4   : > { %vm3910_vm5 = vmor %vm3908_vm4, %vm3909_vm3  ;;  %v3929_v0 = vand.u32 2147483648, %v3720_v32  ;;  %v3927_v13 = vand.u32 2147483647, %v3720_v32  ;;  %v3915_v48 = vor.u32 1.1754944e-38, %v3914_v34  ;;  %vm3923_vm8 = vweird.f32 %v3720_v32 }
 0xbf5   : > { %v3905_v38 = vsub.f32 1.0, %v3904_v7  ;;  %v3984_v53 = vpack.c.bf16 %v3974_v18, %v3973_v37 }
 0xbf6   : > { %v3930_v54 = vor.u32 1.1754944e-38, %v3929_v0  ;;  %vm3928_vm10 = vcmp.eq.f32.partialorder %v3927_v13, 8.507059e+37 }
 0xbf7   : > { %v3906_v4 = vmul.f32 %v4979_v16, %v3905_v38  ;;  %4088 = vmatmul.bf16.gmra.mxu3 %v3984_v53 }
 0xbf9   : > { %v4981_v62 = vpop.eup %4980  ;;  %v3907_v35 = vadd.f32 %v4979_v16, %v3906_v4 }
 0xbfa   : > { %v3919_v40 = vmul.f32 %v4981_v62, %v3720_v32  ;;  %vm3924_vm6 = vweird.f32 %v4981_v62 }
 0xbfb   : > { %v3911_v26 = vsel %vm3910_vm5, %v4979_v16, %v3907_v35  ;;  %vm3925_vm9 = vmor %vm3923_vm8, %vm3924_vm6 }
 0xbfc   : > { %v3920_v6 = vsub.f32 1.0, %v3919_v40  ;;  %v3916_v9 = vsel %vm3913_vm7, %v3915_v48, %v3911_v26 }
 0xbfd   : > { %v3975_v47 = vmul.f32 %v3916_v9, %v7322_v23 }
 0xbfe   : > { %v3921_v1 = vmul.f32 %v4981_v62, %v3920_v6 }
 0xbff   : > { %v4074_v10 = vpop.f32.mrf.mxu3 }
 0xc00   : > { %v3922_v15 = vadd.f32 %v4981_v62, %v3921_v1  ;;  %v4075_v21 = vadd.f32 %v7296_v5, %v4074_v10 }
 0xc02   : > { %v3926_v24 = vsel %vm3925_vm9, %v4981_v62, %v3922_v15  ;;  %v4108_v52 = vadd.f32 %v4075_v21, %v6925_v3 }
 0xc03   : > { %v3931_v42 = vsel %vm3928_vm10, %v3930_v54, %v3926_v24 }
 0xc04   : > { %v3976_v28 = vmul.f32 %v3931_v42, %v7326_v12  ;;  %4124 = vst.msk [vmem:[%s5230_s2 + $0x20] sm:$0xff] %vm705_vm1, %v4108_v52 }
 0xc06   : > { %v3985_v41 = vpack.c.bf16 %v3976_v28, %v3975_v47 }
 0xc07   : > { %v4076_v58 = vpop.f32.mrf.mxu3 }
 0xc08   : > { %v4077_v22 = vadd.f32 %v7296_v5, %v4076_v58  ;;  %4093 = vmatmul.bf16.gmra.mxu3 %v3985_v41 }
 0xc0a   : > { %v4109_v17 = vadd.f32 %v4077_v22, %v6934_v45 }
 0xc0c   : > { %4125 = vst.msk [vmem:[%s5230_s2 + $0x28] sm:$0xff] %vm705_vm1, %v4109_v17 }
 0xc0f   : > { %v3638_v63 = vpop.f32.mrf.mxu2 }
 0xc10   : > { %v3639_v50 = vadd.f32 %v7174_v31, %v3638_v63 }
 0xc12   : > { %v4466_v3 = vmul.f32 -1.702, %v3639_v50 }
 0xc14   : > { %v3703_v25 = vmul.f32 1.442695, %v4466_v3 }
 0xc16   : > { %4982 = vpow2.f32 %v3703_v25 }
 0xc17   : > { %v3640_v23 = vpop.f32.mrf.mxu2 }
 0xc18   : > { %v3641_v12 = vadd.f32 %v7174_v31, %v3640_v23 }
 0xc1a   : > { %v4467_v19 = vmul.f32 -1.702, %v3641_v12 }
 0xc1c   : > { %v4983_v27 = vpop.eup %4982  ;;  %v3705_v57 = vmul.f32 1.442695, %v4467_v19 }
 0xc1d   : > { %v3721_v56 = vadd.f32 1.0, %v4983_v27 }
 0xc1e   : > { %4984 = vpow2.f32 %v3705_v57 }
 0xc1f   : > { %4986 = vrcp.f32 %v3721_v56  ;;  %v3944_v16 = vand.u32 2147483648, %v3721_v56  ;;  %vm3938_vm12 = vweird.f32 %v3721_v56  ;;  %v3942_v31 = vand.u32 2147483647, %v3721_v56 }
 0xc21   : > { %v3945_v53 = vor.u32 1.1754944e-38, %v3944_v16  ;;  %vm3943_vm15 = vcmp.eq.f32.partialorder %v3942_v31, 8.507059e+37 }
 0xc24   : > { %v4985_v44 = vpop.eup %4984 }
 0xc25   : > { %v4987_v49 = vpop.eup %4986  ;;  %v3722_v45 = vadd.f32 1.0, %v4985_v44 }
 0xc26   : > { %v3934_v30 = vmul.f32 %v4987_v49, %v3721_v56  ;;  %vm3939_vm11 = vweird.f32 %v4987_v49 }
 0xc27   : > { %4988 = vrcp.f32 %v3722_v45  ;;  %vm3940_vm13 = vmor %vm3938_vm12, %vm3939_vm11  ;;  %v3959_v37 = vand.u32 2147483648, %v3722_v45  ;;  %v3957_v38 = vand.u32 2147483647, %v3722_v45  ;;  %vm3953_vm0 = vweird.f32 %v3722_v45 }
 0xc28   : > { %v3935_v46 = vsub.f32 1.0, %v3934_v30 }
 0xc29   : > { %v3960_v35 = vor.u32 1.1754944e-38, %v3959_v37  ;;  %vm3958_vm3 = vcmp.eq.f32.partialorder %v3957_v38, 8.507059e+37 }
 0xc2a   : > { %v3936_v33 = vmul.f32 %v4987_v49, %v3935_v46 }
 0xc2c   : > { %v3937_v51 = vadd.f32 %v4987_v49, %v3936_v33 }
 0xc2d   : > { %v4989_v61 = vpop.eup %4988 }
 0xc2e   : > { %v3949_v32 = vmul.f32 %v4989_v61, %v3722_v45  ;;  %v3941_v18 = vsel %vm3940_vm13, %v4987_v49, %v3937_v51  ;;  %vm3954_vm14 = vweird.f32 %v4989_v61 }
 0xc2f   : > { %v3946_v62 = vsel %vm3943_vm15, %v3945_v53, %v3941_v18  ;;  %vm3955_vm2 = vmor %vm3953_vm0, %vm3954_vm14 }
 0xc30   : > { %v3950_v36 = vsub.f32 1.0, %v3949_v32  ;;  %v3977_v0 = vmul.f32 %v3946_v62, %v3639_v50 }
 0xc32   : > { %v3951_v7 = vmul.f32 %v4989_v61, %v3950_v36 }
 0xc34   : > { %v3952_v4 = vadd.f32 %v4989_v61, %v3951_v7 }
 0xc36   : > { %v3956_v40 = vsel %vm3955_vm2, %v4989_v61, %v3952_v4  ;;  %v4079_v34 = vpop.f32.mrf.mxu3 }
 0xc37   : > { %v3961_v11 = vsel %vm3958_vm3, %v3960_v35, %v3956_v40  ;;  %v4080_v6 = vadd.f32 %v7296_v5, %v4079_v34 }
 0xc38   : > { %v3978_v26 = vmul.f32 %v3961_v11, %v3641_v12 }
 0xc39   : > { %v4110_v1 = vadd.f32 %v4080_v6, %v6941_v20 }
 0xc3a   : > { %v3986_v13 = vpack.c.bf16 %v3978_v26, %v3977_v0 }
 0xc3b   : > { %4126 = vst.msk [vmem:[%s5230_s2 + $0x30] sm:$0xff] %vm705_vm1, %v4110_v1 }
 0xc3c   : > { %4098 = vmatmul.bf16.gmra.mxu3 %v3986_v13 }
 0xc3e   : > { %v4081_v48 = vpop.f32.mrf.mxu3 }
 0xc3f   : > { %v4082_v10 = vadd.f32 %v7296_v5, %v4081_v48 }
 0xc41   : > { %v4111_v15 = vadd.f32 %v4082_v10, %v6956_v55 }
 0xc43   : > { %4127 = vst.msk [vmem:[%s5230_s2 + $0x38] sm:$0xff] %vm705_vm1, %v4111_v15 }
 0xc47   : > { %v4084_v21 = vpop.f32.mrf.mxu3 }
 0xc48   : > { %v4085_v9 = vadd.f32 %v7296_v5, %v4084_v21 }
 0xc4a   : > { %v4112_v54 = vadd.f32 %v4085_v9, %v6969_v39 }
 0xc4c   : > { %4128 = vst.msk [vmem:[%s5230_s2 + $0x40] sm:$0xff] %vm705_vm1, %v4112_v54 }
 0xc4f   : > { %v4086_v20 = vpop.f32.mrf.mxu3 }
 0xc50   : > { %v4087_v24 = vadd.f32 %v7296_v5, %v4086_v20 }
 0xc52   : > { %v4113_v52 = vadd.f32 %v4087_v24, %v6982_v43 }
 0xc54   : > { %4129 = vst.msk [vmem:[%s5230_s2 + $0x48] sm:$0xff] %vm705_vm1, %v4113_v52 }
 0xc7a   : > { %v4089_v55 = vpop.f32.mrf.mxu3 }
 0xc7b   : > { %v4090_v42 = vadd.f32 %v7296_v5, %v4089_v55 }
 0xc7d   : > { %v4114_v47 = vadd.f32 %v4090_v42, %v6994_v29 }
 0xc7f   : > { %4130 = vst.msk [vmem:[%s5230_s2 + $0x50] sm:$0xff] %vm705_vm1, %v4114_v47 }
 0xc82   : > { %v4091_v39 = vpop.f32.mrf.mxu3 }
 0xc83   : > { %v4092_v28 = vadd.f32 %v7296_v5, %v4091_v39 }
 0xc85   : > { %v4115_v41 = vadd.f32 %v4092_v28, %v7008_v59 }
 0xc87   : > { %4131 = vst.msk [vmem:[%s5230_s2 + $0x58] sm:$0xff] %vm705_vm1, %v4115_v41 }
 0xc8b   : > { %v4094_v43 = vpop.f32.mrf.mxu3 }
 0xc8c   : > { %v4095_v58 = vadd.f32 %v7296_v5, %v4094_v43 }
 0xc8e   : > { %v4116_v22 = vadd.f32 %v4095_v58, %v7021_v14 }
 0xc90   : > { %4132 = vst.msk [vmem:[%s5230_s2 + $0x60] sm:$0xff] %vm705_vm1, %v4116_v22 }
 0xc93   : > { %v4096_v17 = vpop.f32.mrf.mxu3 }
 0xc94   : > { %v4097_v29 = vadd.f32 %v7296_v5, %v4096_v17 }
 0xc96   : > { %v4117_v63 = vadd.f32 %v4097_v29, %v7033_v2 }
 0xc98   : > { %4133 = vst.msk [vmem:[%s5230_s2 + $0x68] sm:$0xff] %vm705_vm1, %v4117_v63 }
 0xcbf   : > { %v4099_v50 = vpop.f32.mrf.mxu3 }
 0xcc0   : > { %v4100_v59 = vadd.f32 %v7296_v5, %v4099_v50 }
 0xcc2   : > { %v4118_v3 = vadd.f32 %v4100_v59, %v7058_v8 }
 0xcc4   : > { %4134 = vst.msk [vmem:[%s5230_s2 + $0x70] sm:$0xff] %vm705_vm1, %v4118_v3 }
 0xcc7   : > { %v4101_v25 = vpop.f32.mrf.mxu3 }
 0xcc8   : > { %v4102_v23 = vadd.f32 %v7296_v5, %v4101_v25 }
 0xcca   : > { %v4119_v14 = vadd.f32 %v4102_v23, %v7039_v60 }
 0xccc   : > { %4135 = vst.msk [vmem:[%s5230_s2 + $0x78] sm:$0xff] %vm705_vm1, %v4119_v14 }
 0xccd PF: > { %s7470_s15 = sld [smem:[#allocation6_spill]] }
 0xcce   : > { %s7471_s25 = sld [smem:[#allocation4_spill]] }
 0xccf   : > { %s7472_s26 = sld [smem:[#allocation5_spill]] }
 0xcd0   : > { %s7473_s27 = sld [smem:[#allocation7_spill]] }
 0xcd1   : > { %s7474_s28 = sld [smem:[#allocation8_spill]] }
 0xcd3   : > { %s23_s29 = sadd.s32 1, %s7470_s15  }
 0xcd4   : > { %p20_p8 = scmp.ge.s32.totalorder %s23_s29, 6  }
 0xcd6   :  { %22 = sbr.rel (!%p20_p8) target bundleno = 5 (0x5), region = 142 }

</bundles_post_ra>
